<compile_context>
chip_gen: v7x
topology: tpu7x:2x2x1
jax: 0.10.0
libtpu: 0.0.40
codegen_flags: <defaults>
</compile_context>

<pallas_src>
import numpy as np
import jax
import jax.numpy as jnp
from jax.experimental import pallas as pl
from jax.experimental.pallas import tpu as pltpu

LEAKY_SLOPE = 0.2
BN_EPS = 0.8            # nn.BatchNorm1d(out_feat, 0.8): 0.8 lands on the eps arg
TRUNK_DIMS = (128, 256, 512, 1024)   # hidden widths of the four `block`s


def _leaky(x):
    return jnp.where(x >= 0, x, LEAKY_SLOPE * x)


def _round_up(x, m):
    return ((x + m - 1) // m) * m


def _pick_tile(total, candidates):
    for c in candidates:
        if c <= total and total % c == 0:
            return c
    return total  # fall back to a full-extent block (always legal)


def _vmem_capacity_bytes():
    try:
        return int(pltpu.get_tpu_info().vmem_capacity_bytes)
    except Exception:
        return 64 * 1024 * 1024       # conservative (v7x) default


def _vmem_limit(estimate_bytes):
    # Generation-aware: allow up to ~75% of physical VMEM (≈96 MiB on v5e/v6e,
    # ≈48 MiB on v7x) but never request less than the actual footprint.
    cap = int(0.75 * _vmem_capacity_bytes())
    return int(min(max(int(1.5 * estimate_bytes), 32 * 1024 * 1024), cap))


# ---------------------------------------------------------------------------
# Shared trunk body: Linear+LeakyReLU, then 3x (Linear + BatchNorm + LeakyReLU)
# ---------------------------------------------------------------------------
def _trunk_compute(x_ref,
                   w1_ref, b1_ref,
                   w2_ref, b2_ref, g2_ref, be2_ref,
                   w3_ref, b3_ref, g3_ref, be3_ref,
                   w4_ref, b4_ref, g4_ref, be4_ref):
    def linear(h, w_ref, b_ref):
        # bf16 x bf16 on the MXU, f32 accumulation, f32 bias add.
        return jnp.dot(h.astype(jnp.bfloat16), w_ref[...],
                       preferred_element_type=jnp.float32) + b_ref[...]

    def bn_leaky(h, g_ref, be_ref):
        # Training-mode BatchNorm1d folded into one scale/shift per element.
        # var = E[x^2] - mean^2 (one fewer full-tensor pass; eps=0.8 keeps it safe).
        mean = jnp.mean(h, axis=0, keepdims=True)
        var = jnp.mean(jnp.square(h), axis=0, keepdims=True) - jnp.square(mean)
        scale = g_ref[...] * jax.lax.rsqrt(var + BN_EPS)    # rsqrt -> EUP
        shift = be_ref[...] - mean * scale
        return _leaky(h * scale + shift)

    h = _leaky(linear(x_ref[...], w1_ref, b1_ref))            # block(in, 128)
    h = bn_leaky(linear(h, w2_ref, b2_ref), g2_ref, be2_ref)  # block(128, 256)
    h = bn_leaky(linear(h, w3_ref, b3_ref), g3_ref, be3_ref)  # block(256, 512)
    h = bn_leaky(linear(h, w4_ref, b4_ref), g4_ref, be4_ref)  # block(512, 1024)
    return h                                                  # f32 (B, 1024)


# ---------------------------------------------------------------------------
# Kernel A (split path, 1/2): trunk only -> bf16 hidden activations
# ---------------------------------------------------------------------------
def trunk_kernel(*refs):
    h_ref = refs[-1]
    h = _trunk_compute(*refs[:-1])
    h_ref[...] = h.astype(h_ref.dtype)


# ---------------------------------------------------------------------------
# Kernel B (split path, 2/2): Linear(1024, out_dim_pad) + Tanh, tiled
# ---------------------------------------------------------------------------
def head_kernel(h_ref, w5_ref, b5_ref, out_ref):
    acc = jnp.dot(h_ref[...], w5_ref[...],
                  preferred_element_type=jnp.float32) + b5_ref[...]
    out_ref[...] = jnp.tanh(acc)


# ---------------------------------------------------------------------------
# Kernel C (fused path, small/medium problems): trunk + head + tanh in one call
# ---------------------------------------------------------------------------
def fused_kernel(*refs):
    out_ref = refs[-1]
    w5_ref, b5_ref = refs[-3], refs[-2]
    h = _trunk_compute(*refs[:-3])
    acc = jnp.dot(h.astype(jnp.bfloat16), w5_ref[...],
                  preferred_element_type=jnp.float32) + b5_ref[...]
    out_ref[...] = jnp.tanh(acc)


# ---------------------------------------------------------------------------
# Parameters (mimic PyTorch defaults), stored kernel-ready:
#   * Linear weights as bf16 (in, out)
#   * w1 fan_in zero-padded to a 128 multiple (zero rows -> exact)
#   * w5/b5 fan_out zero-padded to a 128 multiple (zero cols, sliced off later)
# ---------------------------------------------------------------------------
def init_params(key, latent_dim, n_classes, img_shape):
    out_dim = int(np.prod(img_shape))
    out_dim_pad = _round_up(out_dim, 128)
    in_dim = latent_dim + n_classes
    in_dim_pad = _round_up(in_dim, 128)
    dims = [in_dim, *TRUNK_DIMS, out_dim]

    params = {}
    keys = jax.random.split(key, 11)
    ki = 0

    # nn.Embedding(n_classes, n_classes): N(0, 1)
    params["emb"] = jax.random.normal(keys[ki], (n_classes, n_classes), jnp.float32)
    ki += 1

    # Linear layers: U(-1/sqrt(fan_in), 1/sqrt(fan_in))
    for li in range(5):
        fan_in, fan_out = dims[li], dims[li + 1]
        bound = 1.0 / np.sqrt(fan_in)
        w = jax.random.uniform(keys[ki], (fan_in, fan_out), jnp.float32, -bound, bound)
        ki += 1
        b = jax.random.uniform(keys[ki], (1, fan_out), jnp.float32, -bound, bound)
        ki += 1
        if li == 0 and in_dim_pad != fan_in:
            w = jnp.pad(w, ((0, in_dim_pad - fan_in), (0, 0)))      # zero rows
        if li == 4 and out_dim_pad != fan_out:
            w = jnp.pad(w, ((0, 0), (0, out_dim_pad - fan_out)))    # zero cols
            b = jnp.pad(b, ((0, 0), (0, out_dim_pad - fan_out)))
        params[f"w{li+1}"] = w.astype(jnp.bfloat16)
        params[f"b{li+1}"] = b

    # BatchNorm affine params (blocks 2..4): gamma=1, beta=0
    for li, f in zip((2, 3, 4), TRUNK_DIMS[1:]):
        params[f"g{li}"] = jnp.ones((1, f), jnp.float32)
        params[f"be{li}"] = jnp.zeros((1, f), jnp.float32)

    return params


def _trunk_weight_elems(in_dim_pad):
    return in_dim_pad * 128 + 128 * 256 + 256 * 512 + 512 * 1024


def _fused_footprint_bytes(B, in_dim_pad, out_dim_pad):
    w_elems = _trunk_weight_elems(in_dim_pad) + 1024 * out_dim_pad
    return (2 * w_elems                               # bf16 weights
            + 4 * (sum(TRUNK_DIMS) + out_dim_pad)     # biases
            + 8 * (256 + 512 + 1024)                  # gamma/beta
            + 2 * B * in_dim_pad                      # x (bf16)
            + 4 * B * sum(TRUNK_DIMS)                 # f32 intermediates (rough)
            + 4 * B * out_dim_pad)                    # f32 output


# ---------------------------------------------------------------------------
# Forward pass
# ---------------------------------------------------------------------------
def generator_forward(noise, labels, params, img_shape, *, force_split=False):
    # Embedding gather + concat stays as tiny XLA glue.
    # TODO(synk): could be fused in-kernel with a PrefetchScalarGridSpec row-gather.
    emb = jnp.take(params["emb"], labels, axis=0)              # (B, n_classes)
    gen_input = jnp.concatenate([emb, noise], axis=-1)         # (B, latent+n_classes)

    B = gen_input.shape[0]
    in_dim = gen_input.shape[1]
    in_dim_pad = params["w1"].shape[0]
    out_dim = int(np.prod(img_shape))
    out_dim_pad = params["w5"].shape[1]
    hid = TRUNK_DIMS[-1]

    if in_dim_pad != in_dim:                                   # pad K to 128-multiple
        gen_input = jnp.pad(gen_input, ((0, 0), (0, in_dim_pad - in_dim)))
    gen_input = gen_input.astype(jnp.bfloat16)                 # halve the x DMA

    vmem = pl.BlockSpec(memory_space=pltpu.MemorySpace.VMEM)
    trunk_args = [gen_input,
                  params["w1"], params["b1"],
                  params["w2"], params["b2"], params["g2"], params["be2"],
                  params["w3"], params["b3"], params["g3"], params["be3"],
                  params["w4"], params["b4"], params["g4"], params["be4"]]

    fused_bytes = _fused_footprint_bytes(B, in_dim_pad, out_dim_pad)
    use_fused = (not force_split) and fused_bytes <= int(0.4 * _vmem_capacity_bytes())

    if use_fused:
        # ---------------- single fused call (latency-bound regime) ----------
        w_elems = _trunk_weight_elems(in_dim_pad) + hid * out_dim_pad
        img_flat = pl.pallas_call(
            fused_kernel,
            out_shape=jax.ShapeDtypeStruct((B, out_dim_pad), jnp.float32),
            in_specs=[vmem] * (len(trunk_args) + 2),
            out_specs=vmem,
            compiler_params=pltpu.CompilerParams(
                vmem_limit_bytes=_vmem_limit(fused_bytes)),
            cost_estimate=pl.CostEstimate(
                flops=int(2 * B * w_elems),
                transcendentals=int(B * out_dim_pad + 256 + 512 + 1024),
                bytes_accessed=int(fused_bytes)),
        )(*trunk_args, params["w5"], params["b5"])
    else:
        # ------------------------------ trunk -------------------------------
        w_elems = _trunk_weight_elems(in_dim_pad)
        trunk_bytes = (2 * w_elems
                       + 4 * sum(TRUNK_DIMS) + 8 * (256 + 512 + 1024)
                       + 2 * B * in_dim_pad + 2 * B * hid)
        trunk_vmem = trunk_bytes + 4 * B * sum(TRUNK_DIMS)     # f32 intermediates

        h = pl.pallas_call(
            trunk_kernel,
            out_shape=jax.ShapeDtypeStruct((B, hid), jnp.bfloat16),
            in_specs=[vmem] * len(trunk_args),
            out_specs=vmem,
            compiler_params=pltpu.CompilerParams(
                vmem_limit_bytes=_vmem_limit(trunk_vmem)),
            cost_estimate=pl.CostEstimate(
                flops=int(2 * B * w_elems),
                transcendentals=int(256 + 512 + 1024),
                bytes_accessed=int(trunk_bytes)),
        )(*trunk_args)

        # ------------------------------- head -------------------------------
        # Grid order: column tiles OUTER, batch tiles INNER -> w5's block index
        # depends only on the outer axis, so the big weight stream is fetched
        # once while the small activation tile is what gets revisited.
        tb = _pick_tile(B, (512, 256, 128, 64, 32, 16, 8))      # batch tile (MXU M)
        tn = _pick_tile(out_dim_pad, (2048, 1024, 512, 256, 128))
        grid = (out_dim_pad // tn, B // tb)

        head_bytes = 2 * B * hid + 2 * hid * out_dim_pad + 4 * out_dim_pad \
                     + 4 * B * out_dim_pad
        head_vmem = 2 * (2 * tb * hid + 2 * hid * tn + 4 * tn + 4 * tb * tn)

        img_flat = pl.pallas_call(
            head_kernel,
            out_shape=jax.ShapeDtypeStruct((B, out_dim_pad), jnp.float32),
            grid=grid,
            in_specs=[pl.BlockSpec((tb, hid), lambda j, i: (i, 0)),
                      pl.BlockSpec((hid, tn), lambda j, i: (0, j)),
                      pl.BlockSpec((1, tn), lambda j, i: (0, j))],
            out_specs=pl.BlockSpec((tb, tn), lambda j, i: (i, j)),
            compiler_params=pltpu.CompilerParams(
                dimension_semantics=("parallel", "parallel"),
                vmem_limit_bytes=_vmem_limit(head_vmem)),
            cost_estimate=pl.CostEstimate(
                flops=int(2 * B * hid * out_dim_pad),
                transcendentals=int(B * out_dim_pad),
                bytes_accessed=int(head_bytes)),
        )(h, params["w5"], params["b5"])

    # Drop the zero-padded columns, then PyTorch: img.view(img.size(0), *img_shape)
    return img_flat[:, :out_dim].reshape(B, *img_shape)


# ---------------------------------------------------------------------------
# Pure-JAX reference (mirrors the kernel math) for a correctness check
# ---------------------------------------------------------------------------
def reference_forward(noise, labels, params, img_shape):
    emb = jnp.take(params["emb"], labels, axis=0)
    x = jnp.concatenate([emb, noise], axis=-1)
    B = x.shape[0]
    in_dim_pad = params["w1"].shape[0]
    if in_dim_pad != x.shape[1]:
        x = jnp.pad(x, ((0, 0), (0, in_dim_pad - x.shape[1])))
    x = x.astype(jnp.bfloat16)

    def linear(h, w, b):
        return jnp.dot(h.astype(jnp.bfloat16), w,
                       preferred_element_type=jnp.float32) + b

    def bn_leaky(h, g, be):
        mean = jnp.mean(h, axis=0, keepdims=True)
        var = jnp.mean(jnp.square(h), axis=0, keepdims=True) - jnp.square(mean)
        scale = g * jax.lax.rsqrt(var + BN_EPS)
        shift = be - mean * scale
        return _leaky(h * scale + shift)

    h = _leaky(linear(x, params["w1"], params["b1"]))
    h = bn_leaky(linear(h, params["w2"], params["b2"]), params["g2"], params["be2"])
    h = bn_leaky(linear(h, params["w3"], params["b3"]), params["g3"], params["be3"])
    h = bn_leaky(linear(h, params["w4"], params["b4"]), params["g4"], params["be4"])
    out = jnp.tanh(linear(h, params["w5"], params["b5"]))
    out_dim = int(np.prod(img_shape))
    return out[:, :out_dim].reshape(B, *img_shape)


if __name__ == "__main__":
    latent_dim = 32
    n_classes = 10
    img_shape = (1, 16, 16)   # (C, H, W) -> out_dim = 256
    batch = 8

    key = jax.random.PRNGKey(0)
    k_params, k_noise, k_labels = jax.random.split(key, 3)

    params = init_params(k_params, latent_dim, n_classes, img_shape)
    noise = jax.random.normal(k_noise, (batch, latent_dim), jnp.float32)
    labels = jax.random.randint(k_labels, (batch,), 0, n_classes)

    ref = jax.block_until_ready(reference_forward(noise, labels, params, img_shape))

    # Fused (single-call) path — the one the demo shapes select.
    img = jax.block_until_ready(generator_forward(noise, labels, params, img_shape))
    assert img.shape == (batch, *img_shape), img.shape
    assert img.dtype == jnp.float32
    assert bool(jnp.all(jnp.isfinite(img)))
    assert bool(jnp.all(jnp.abs(img) <= 1.0))          # tanh output range
    assert float(jnp.max(jnp.abs(img - ref))) < 2e-2, "fused path mismatch"

    # Split (trunk + tiled head) path — exercised explicitly for coverage.
    img2 = jax.block_until_ready(
        generator_forward(noise, labels, params, img_shape, force_split=True))
    assert img2.shape == (batch, *img_shape)
    assert bool(jnp.all(jnp.isfinite(img2)))
    assert float(jnp.max(jnp.abs(img2 - ref))) < 2e-2, "split path mismatch"

    print("KERNEL_OK")
</pallas_src>

<mosaic_0001>
module attributes {stable_mosaic.version = 11 : i64} {
  func.func @fused_kernel(%arg0: memref<8x128xbf16, #tpu.memory_space<vmem>>, %arg1: memref<128x128xbf16, #tpu.memory_space<vmem>>, %arg2: memref<1x128xf32, #tpu.memory_space<vmem>>, %arg3: memref<128x256xbf16, #tpu.memory_space<vmem>>, %arg4: memref<1x256xf32, #tpu.memory_space<vmem>>, %arg5: memref<1x256xf32, #tpu.memory_space<vmem>>, %arg6: memref<1x256xf32, #tpu.memory_space<vmem>>, %arg7: memref<256x512xbf16, #tpu.memory_space<vmem>>, %arg8: memref<1x512xf32, #tpu.memory_space<vmem>>, %arg9: memref<1x512xf32, #tpu.memory_space<vmem>>, %arg10: memref<1x512xf32, #tpu.memory_space<vmem>>, %arg11: memref<512x1024xbf16, #tpu.memory_space<vmem>>, %arg12: memref<1x1024xf32, #tpu.memory_space<vmem>>, %arg13: memref<1x1024xf32, #tpu.memory_space<vmem>>, %arg14: memref<1x1024xf32, #tpu.memory_space<vmem>>, %arg15: memref<1024x256xbf16, #tpu.memory_space<vmem>>, %arg16: memref<1x256xf32, #tpu.memory_space<vmem>>, %arg17: memref<8x256xf32, #tpu.memory_space<vmem>>) attributes {dimension_semantics = [], scalar_prefetch = 0 : i64, scratch_operands = 0 : i64, tpu.core_type = #tpu.core_type<tc>} {
    %c0 = arith.constant 0 : index
    %c0_0 = arith.constant 0 : index
    %0 = vector.load %arg0[%c0, %c0_0] : memref<8x128xbf16, #tpu.memory_space<vmem>>, vector<8x128xbf16>
    %c0_1 = arith.constant 0 : index
    %c0_2 = arith.constant 0 : index
    %1 = vector.load %arg1[%c0_1, %c0_2] : memref<128x128xbf16, #tpu.memory_space<vmem>>, vector<128x128xbf16>
    %cst = arith.constant dense<0.000000e+00> : vector<8x128xf32>
    %2 = tpu.matmul %0, %1, %cst {dimension_numbers = #tpu.dot_dimension_numbers<[1], [0], [0], [1], [0, 0, 1, 1], [], []>} : vector<8x128xbf16>, vector<128x128xbf16>, vector<8x128xf32> -> vector<8x128xf32>
    %c0_3 = arith.constant 0 : index
    %c0_4 = arith.constant 0 : index
    %3 = vector.load %arg2[%c0_3, %c0_4] : memref<1x128xf32, #tpu.memory_space<vmem>>, vector<1x128xf32>
    %4 = vector.broadcast %3 : vector<1x128xf32> to vector<8x128xf32>
    %5 = arith.addf %2, %4 : vector<8x128xf32>
    %cst_5 = arith.constant 0.000000e+00 : f32
    %6 = vector.broadcast %cst_5 : f32 to vector<8x128xf32>
    %7 = arith.cmpf oge, %5, %6 : vector<8x128xf32>
    %cst_6 = arith.constant 2.000000e-01 : f32
    %8 = vector.broadcast %cst_6 : f32 to vector<8x128xf32>
    %9 = arith.mulf %8, %5 : vector<8x128xf32>
    %10 = arith.select %7, %5, %9 : vector<8x128xi1>, vector<8x128xf32>
    %11 = arith.truncf %10 : vector<8x128xf32> to vector<8x128xbf16>
    %c0_7 = arith.constant 0 : index
    %c0_8 = arith.constant 0 : index
    %12 = vector.load %arg3[%c0_7, %c0_8] : memref<128x256xbf16, #tpu.memory_space<vmem>>, vector<128x256xbf16>
    %cst_9 = arith.constant dense<0.000000e+00> : vector<8x256xf32>
    %13 = tpu.matmul %11, %12, %cst_9 {dimension_numbers = #tpu.dot_dimension_numbers<[1], [0], [0], [1], [0, 0, 1, 1], [], []>} : vector<8x128xbf16>, vector<128x256xbf16>, vector<8x256xf32> -> vector<8x256xf32>
    %c0_10 = arith.constant 0 : index
    %c0_11 = arith.constant 0 : index
    %14 = vector.load %arg4[%c0_10, %c0_11] : memref<1x256xf32, #tpu.memory_space<vmem>>, vector<1x256xf32>
    %15 = vector.broadcast %14 : vector<1x256xf32> to vector<8x256xf32>
    %16 = arith.addf %13, %15 : vector<8x256xf32>
    %cst_12 = arith.constant dense<0.000000e+00> : vector<256xf32>
    %17 = vector.multi_reduction <add>, %16, %cst_12 [0] : vector<8x256xf32> to vector<256xf32>
    %18 = vector.shape_cast %17 : vector<256xf32> to vector<1x256xf32>
    %cst_13 = arith.constant 8.000000e+00 : f32
    %19 = vector.broadcast %cst_13 : f32 to vector<1x256xf32>
    %20 = arith.divf %18, %19 : vector<1x256xf32>
    %21 = arith.mulf %16, %16 : vector<8x256xf32>
    %cst_14 = arith.constant dense<0.000000e+00> : vector<256xf32>
    %22 = vector.multi_reduction <add>, %21, %cst_14 [0] : vector<8x256xf32> to vector<256xf32>
    %23 = vector.shape_cast %22 : vector<256xf32> to vector<1x256xf32>
    %cst_15 = arith.constant 8.000000e+00 : f32
    %24 = vector.broadcast %cst_15 : f32 to vector<1x256xf32>
    %25 = arith.divf %23, %24 : vector<1x256xf32>
    %26 = arith.mulf %20, %20 : vector<1x256xf32>
    %27 = arith.subf %25, %26 : vector<1x256xf32>
    %c0_16 = arith.constant 0 : index
    %c0_17 = arith.constant 0 : index
    %28 = vector.load %arg5[%c0_16, %c0_17] : memref<1x256xf32, #tpu.memory_space<vmem>>, vector<1x256xf32>
    %cst_18 = arith.constant 8.000000e-01 : f32
    %29 = vector.broadcast %cst_18 : f32 to vector<1x256xf32>
    %30 = arith.addf %27, %29 : vector<1x256xf32>
    %31 = math.rsqrt %30 : vector<1x256xf32>
    %32 = arith.mulf %28, %31 : vector<1x256xf32>
    %c0_19 = arith.constant 0 : index
    %c0_20 = arith.constant 0 : index
    %33 = vector.load %arg6[%c0_19, %c0_20] : memref<1x256xf32, #tpu.memory_space<vmem>>, vector<1x256xf32>
    %34 = arith.mulf %20, %32 : vector<1x256xf32>
    %35 = arith.subf %33, %34 : vector<1x256xf32>
    %36 = vector.broadcast %32 : vector<1x256xf32> to vector<8x256xf32>
    %37 = arith.mulf %16, %36 : vector<8x256xf32>
    %38 = vector.broadcast %35 : vector<1x256xf32> to vector<8x256xf32>
    %39 = arith.addf %37, %38 : vector<8x256xf32>
    %cst_21 = arith.constant 0.000000e+00 : f32
    %40 = vector.broadcast %cst_21 : f32 to vector<8x256xf32>
    %41 = arith.cmpf oge, %39, %40 : vector<8x256xf32>
    %cst_22 = arith.constant 2.000000e-01 : f32
    %42 = vector.broadcast %cst_22 : f32 to vector<8x256xf32>
    %43 = arith.mulf %42, %39 : vector<8x256xf32>
    %44 = arith.select %41, %39, %43 : vector<8x256xi1>, vector<8x256xf32>
    %45 = arith.truncf %44 : vector<8x256xf32> to vector<8x256xbf16>
    %c0_23 = arith.constant 0 : index
    %c0_24 = arith.constant 0 : index
    %46 = vector.load %arg7[%c0_23, %c0_24] : memref<256x512xbf16, #tpu.memory_space<vmem>>, vector<256x512xbf16>
    %cst_25 = arith.constant dense<0.000000e+00> : vector<8x512xf32>
    %47 = tpu.matmul %45, %46, %cst_25 {dimension_numbers = #tpu.dot_dimension_numbers<[1], [0], [0], [1], [0, 0, 1, 1], [], []>} : vector<8x256xbf16>, vector<256x512xbf16>, vector<8x512xf32> -> vector<8x512xf32>
    %c0_26 = arith.constant 0 : index
    %c0_27 = arith.constant 0 : index
    %48 = vector.load %arg8[%c0_26, %c0_27] : memref<1x512xf32, #tpu.memory_space<vmem>>, vector<1x512xf32>
    %49 = vector.broadcast %48 : vector<1x512xf32> to vector<8x512xf32>
    %50 = arith.addf %47, %49 : vector<8x512xf32>
    %cst_28 = arith.constant dense<0.000000e+00> : vector<512xf32>
    %51 = vector.multi_reduction <add>, %50, %cst_28 [0] : vector<8x512xf32> to vector<512xf32>
    %52 = vector.shape_cast %51 : vector<512xf32> to vector<1x512xf32>
    %cst_29 = arith.constant 8.000000e+00 : f32
    %53 = vector.broadcast %cst_29 : f32 to vector<1x512xf32>
    %54 = arith.divf %52, %53 : vector<1x512xf32>
    %55 = arith.mulf %50, %50 : vector<8x512xf32>
    %cst_30 = arith.constant dense<0.000000e+00> : vector<512xf32>
    %56 = vector.multi_reduction <add>, %55, %cst_30 [0] : vector<8x512xf32> to vector<512xf32>
    %57 = vector.shape_cast %56 : vector<512xf32> to vector<1x512xf32>
    %cst_31 = arith.constant 8.000000e+00 : f32
    %58 = vector.broadcast %cst_31 : f32 to vector<1x512xf32>
    %59 = arith.divf %57, %58 : vector<1x512xf32>
    %60 = arith.mulf %54, %54 : vector<1x512xf32>
    %61 = arith.subf %59, %60 : vector<1x512xf32>
    %c0_32 = arith.constant 0 : index
    %c0_33 = arith.constant 0 : index
    %62 = vector.load %arg9[%c0_32, %c0_33] : memref<1x512xf32, #tpu.memory_space<vmem>>, vector<1x512xf32>
    %cst_34 = arith.constant 8.000000e-01 : f32
    %63 = vector.broadcast %cst_34 : f32 to vector<1x512xf32>
    %64 = arith.addf %61, %63 : vector<1x512xf32>
    %65 = math.rsqrt %64 : vector<1x512xf32>
    %66 = arith.mulf %62, %65 : vector<1x512xf32>
    %c0_35 = arith.constant 0 : index
    %c0_36 = arith.constant 0 : index
    %67 = vector.load %arg10[%c0_35, %c0_36] : memref<1x512xf32, #tpu.memory_space<vmem>>, vector<1x512xf32>
    %68 = arith.mulf %54, %66 : vector<1x512xf32>
    %69 = arith.subf %67, %68 : vector<1x512xf32>
    %70 = vector.broadcast %66 : vector<1x512xf32> to vector<8x512xf32>
    %71 = arith.mulf %50, %70 : vector<8x512xf32>
    %72 = vector.broadcast %69 : vector<1x512xf32> to vector<8x512xf32>
    %73 = arith.addf %71, %72 : vector<8x512xf32>
    %cst_37 = arith.constant 0.000000e+00 : f32
    %74 = vector.broadcast %cst_37 : f32 to vector<8x512xf32>
    %75 = arith.cmpf oge, %73, %74 : vector<8x512xf32>
    %cst_38 = arith.constant 2.000000e-01 : f32
    %76 = vector.broadcast %cst_38 : f32 to vector<8x512xf32>
    %77 = arith.mulf %76, %73 : vector<8x512xf32>
    %78 = arith.select %75, %73, %77 : vector<8x512xi1>, vector<8x512xf32>
    %79 = arith.truncf %78 : vector<8x512xf32> to vector<8x512xbf16>
    %c0_39 = arith.constant 0 : index
    %c0_40 = arith.constant 0 : index
    %80 = vector.load %arg11[%c0_39, %c0_40] : memref<512x1024xbf16, #tpu.memory_space<vmem>>, vector<512x1024xbf16>
    %cst_41 = arith.constant dense<0.000000e+00> : vector<8x1024xf32>
    %81 = tpu.matmul %79, %80, %cst_41 {dimension_numbers = #tpu.dot_dimension_numbers<[1], [0], [0], [1], [0, 0, 1, 1], [], []>} : vector<8x512xbf16>, vector<512x1024xbf16>, vector<8x1024xf32> -> vector<8x1024xf32>
    %c0_42 = arith.constant 0 : index
    %c0_43 = arith.constant 0 : index
    %82 = vector.load %arg12[%c0_42, %c0_43] : memref<1x1024xf32, #tpu.memory_space<vmem>>, vector<1x1024xf32>
    %83 = vector.broadcast %82 : vector<1x1024xf32> to vector<8x1024xf32>
    %84 = arith.addf %81, %83 : vector<8x1024xf32>
    %cst_44 = arith.constant dense<0.000000e+00> : vector<1024xf32>
    %85 = vector.multi_reduction <add>, %84, %cst_44 [0] : vector<8x1024xf32> to vector<1024xf32>
    %86 = vector.shape_cast %85 : vector<1024xf32> to vector<1x1024xf32>
    %cst_45 = arith.constant 8.000000e+00 : f32
    %87 = vector.broadcast %cst_45 : f32 to vector<1x1024xf32>
    %88 = arith.divf %86, %87 : vector<1x1024xf32>
    %89 = arith.mulf %84, %84 : vector<8x1024xf32>
    %cst_46 = arith.constant dense<0.000000e+00> : vector<1024xf32>
    %90 = vector.multi_reduction <add>, %89, %cst_46 [0] : vector<8x1024xf32> to vector<1024xf32>
    %91 = vector.shape_cast %90 : vector<1024xf32> to vector<1x1024xf32>
    %cst_47 = arith.constant 8.000000e+00 : f32
    %92 = vector.broadcast %cst_47 : f32 to vector<1x1024xf32>
    %93 = arith.divf %91, %92 : vector<1x1024xf32>
    %94 = arith.mulf %88, %88 : vector<1x1024xf32>
    %95 = arith.subf %93, %94 : vector<1x1024xf32>
    %c0_48 = arith.constant 0 : index
    %c0_49 = arith.constant 0 : index
    %96 = vector.load %arg13[%c0_48, %c0_49] : memref<1x1024xf32, #tpu.memory_space<vmem>>, vector<1x1024xf32>
    %cst_50 = arith.constant 8.000000e-01 : f32
    %97 = vector.broadcast %cst_50 : f32 to vector<1x1024xf32>
    %98 = arith.addf %95, %97 : vector<1x1024xf32>
    %99 = math.rsqrt %98 : vector<1x1024xf32>
    %100 = arith.mulf %96, %99 : vector<1x1024xf32>
    %c0_51 = arith.constant 0 : index
    %c0_52 = arith.constant 0 : index
    %101 = vector.load %arg14[%c0_51, %c0_52] : memref<1x1024xf32, #tpu.memory_space<vmem>>, vector<1x1024xf32>
    %102 = arith.mulf %88, %100 : vector<1x1024xf32>
    %103 = arith.subf %101, %102 : vector<1x1024xf32>
    %104 = vector.broadcast %100 : vector<1x1024xf32> to vector<8x1024xf32>
    %105 = arith.mulf %84, %104 : vector<8x1024xf32>
    %106 = vector.broadcast %103 : vector<1x1024xf32> to vector<8x1024xf32>
    %107 = arith.addf %105, %106 : vector<8x1024xf32>
    %cst_53 = arith.constant 0.000000e+00 : f32
    %108 = vector.broadcast %cst_53 : f32 to vector<8x1024xf32>
    %109 = arith.cmpf oge, %107, %108 : vector<8x1024xf32>
    %cst_54 = arith.constant 2.000000e-01 : f32
    %110 = vector.broadcast %cst_54 : f32 to vector<8x1024xf32>
    %111 = arith.mulf %110, %107 : vector<8x1024xf32>
    %112 = arith.select %109, %107, %111 : vector<8x1024xi1>, vector<8x1024xf32>
    %113 = arith.truncf %112 : vector<8x1024xf32> to vector<8x1024xbf16>
    %c0_55 = arith.constant 0 : index
    %c0_56 = arith.constant 0 : index
    %114 = vector.load %arg15[%c0_55, %c0_56] : memref<1024x256xbf16, #tpu.memory_space<vmem>>, vector<1024x256xbf16>
    %cst_57 = arith.constant dense<0.000000e+00> : vector<8x256xf32>
    %115 = tpu.matmul %113, %114, %cst_57 {dimension_numbers = #tpu.dot_dimension_numbers<[1], [0], [0], [1], [0, 0, 1, 1], [], []>} : vector<8x1024xbf16>, vector<1024x256xbf16>, vector<8x256xf32> -> vector<8x256xf32>
    %c0_58 = arith.constant 0 : index
    %c0_59 = arith.constant 0 : index
    %116 = vector.load %arg16[%c0_58, %c0_59] : memref<1x256xf32, #tpu.memory_space<vmem>>, vector<1x256xf32>
    %117 = vector.broadcast %116 : vector<1x256xf32> to vector<8x256xf32>
    %118 = arith.addf %115, %117 : vector<8x256xf32>
    %119 = math.tanh %118 : vector<8x256xf32>
    %c0_60 = arith.constant 0 : index
    %c0_61 = arith.constant 0 : index
    %120 = vector.load %arg17[%c0_60, %c0_61] : memref<8x256xf32, #tpu.memory_space<vmem>>, vector<8x256xf32>
    tpu.vector_store %arg17[%c0_60, %c0_61], %119 {strides = array<i32>} : memref<8x256xf32, #tpu.memory_space<vmem>>, vector<8x256xf32>,
    return
  }
}

</mosaic_0001>

<bundles_post_ra>
// kernel: tpu_custom_call.1
= control target key start
LH: loop header
LB: loop body
LE: loop exit
PB: predicated region body
PF: predicated region fallthrough
CT: control target
= control target key end

     0   :  { %s6278_s0 = inlined_call_operand.hbm [shape: bf16[8,128], index: 0, kind: input, shape index: {}]   ;;  %s6279_s1 = inlined_call_operand.hbm [shape: bf16[128,128], index: 1, kind: input, shape index: {}]   ;;  %s6280_s2 = inlined_call_operand.vmem [shape: f32[1,128], index: 2, kind: input, shape index: {}]   ;;  %s6281_s3 = inlined_call_operand.hbm [shape: bf16[128,256], index: 3, kind: input, shape index: {}]   ;;  %s6282_s4 = inlined_call_operand.hbm [shape: f32[1,256], index: 4, kind: input, shape index: {}]   ;;  %s6283_s5 = inlined_call_operand.hbm [shape: f32[1,256], index: 5, kind: input, shape index: {}]   ;;  %s6284_s6 = inlined_call_operand.hbm [shape: f32[1,256], index: 6, kind: input, shape index: {}]   ;;  %s6285_s7 = inlined_call_operand.hbm [shape: bf16[256,512], index: 7, kind: input, shape index: {}]   ;;  %s6286_s8 = inlined_call_operand.vmem [shape: f32[1,512], index: 8, kind: input, shape index: {}]   ;;  %s6287_s9 = inlined_call_operand.vmem [shape: f32[1,512], index: 9, kind: input, shape index: {}]   ;;  %s6288_s10 = inlined_call_operand.vmem [shape: f32[1,512], index: 10, kind: input, shape index: {}]   ;;  %s6289_s11 = inlined_call_operand.hbm [shape: bf16[512,1024], index: 11, kind: input, shape index: {}]   ;;  %s6290_s12 = inlined_call_operand.vmem [shape: f32[1,1024], index: 12, kind: input, shape index: {}]   ;;  %s6291_s13 = inlined_call_operand.vmem [shape: f32[1,1024], index: 13, kind: input, shape index: {}]   ;;  %s6292_s14 = inlined_call_operand.vmem [shape: f32[1,1024], index: 14, kind: input, shape index: {}]   ;;  %s6293_s15 = inlined_call_operand.hbm [shape: bf16[1024,256], index: 15, kind: input, shape index: {}]   ;;  %s6294_s16 = inlined_call_operand.vmem [shape: f32[1,256], index: 16, kind: input, shape index: {}]   ;;  %s6295_s17 = inlined_call_operand.hbm [shape: f32[8,256], index: 17, kind: output, shape index: {}]  }
   0x1   :  { %6299 = sst [smem:[#allocation24_spill]] %s6278_s0 }
   0x2   :  { %6300 = sst [smem:[#allocation25_spill]] %s6279_s1 }
   0x3   :  { %6301 = sst [smem:[#allocation26_spill]] %s6294_s16 }
   0x4   :  { %6302 = sst [smem:[#allocation27_spill]] %s6295_s17 }
   0x5   :  { %22 = vsyncpa [#allocation3], 0 }
   0x6   :  { %23 = vsyncpa [#allocation6], 0 }
   0x7   :  { %24 = vsyncpa [#allocation9], 0 }
   0x8   :  { %25 = vsyncpa [#allocation12], 0 }
   0x9   :  { %26 = vsyncpa [#allocation15], 0 }
   0xa   :  { %27 = vsyncpa [#allocation4], 0  ;;  %s5675_s24 = smov [#allocation5]   ;;  %s6303_s28 = sld [smem:[#allocation25_spill]] }
   0xb   :  { %s43_s25 = sshll.u32 %s5675_s24, 4  ;;  %s44_s25 = int_to_ptr.vmem [resolvable:$true] %s43_s25 }
  0x10   :  { %s5443_s29 = scalar_lea.hbm %s6303_s28, 1024 }
  0x11   :  { %p5444_p0 = scmp.ne.s32.totalorder %s6303_s28, %s5443_s29  ;;  %p5447_p1 = scmp.lt.u32.totalorder %s5443_s29, %s6303_s28 }
  0x13   :  { %p5449_p2 = pnand %p5447_p1, %p5444_p0 }
  0x15   :  { %5452 = shalt.err (!%p5449_p2)
}
  0x16   :  { %s5453_s1 = scalar_lea.vmem %s44_s25, 1024  ;;  %p5458_p4 = scmp.lt.s32.totalorder %s44_s25, %s44_s25 }
  0x17   :  { %p5454_p3 = scmp.ne.s32.totalorder %s44_s25, %s5453_s1  ;;  %p5459_p5 = scmp.lt.s32.totalorder %s5453_s1, %s5453_s1 }
  0x19   :  { %p5460_p6 = por %p5459_p5, %p5458_p4 }
  0x1b   :  { %p5461_p7 = pnand %p5460_p6, %p5454_p3 }
  0x1d   :  { %5464 = shalt.err (!%p5461_p7)
}
  0x1e   :  { %s5676_s20 = smov 64   ;;  %s5677_s21 = smov 4  }
  0x1f   :  { %49 = dma.hbm_to_vmem [thread:$0]  %s6303_s28, 1024, %s44_s25, [#allocation6], %s5676_s20, %s5676_s20, %s5677_s21  }
  0x20   :  { %s5678_s24 = smov [#allocation8]   ;;  %s5679_s27 = smov [#allocation11]  }
  0x21   :  { %s70_s26 = sshll.u32 %s5678_s24, 4  ;;  %s90_s29 = sshll.u32 %s5679_s27, 4  ;;  %s71_s26 = int_to_ptr.vmem [resolvable:$true] %s70_s26  ;;  %s91_s29 = int_to_ptr.vmem [resolvable:$true] %s90_s29 }
  0x22   :  { %s5465_s18 = scalar_lea.hbm %s6282_s4, 32 }
  0x23   :  { %p5466_p8 = scmp.ne.s32.totalorder %s6282_s4, %s5465_s18  ;;  %p5469_p9 = scmp.lt.u32.totalorder %s5465_s18, %s6282_s4 }
  0x25   :  { %p5471_p10 = pnand %p5469_p9, %p5466_p8 }
  0x27   :  { %5474 = shalt.err (!%p5471_p10)
}
  0x28   :  { %s5475_s25 = scalar_lea.vmem %s71_s26, 32  ;;  %p5480_p12 = scmp.lt.s32.totalorder %s71_s26, %s71_s26 }
  0x29   :  { %p5476_p11 = scmp.ne.s32.totalorder %s71_s26, %s5475_s25  ;;  %p5481_p13 = scmp.lt.s32.totalorder %s5475_s25, %s5475_s25 }
  0x2b   :  { %p5482_p0 = por %p5481_p13, %p5480_p12 }
  0x2d   :  { %p5483_p1 = pnand %p5482_p0, %p5476_p11 }
  0x2f   :  { %5486 = shalt.err (!%p5483_p1)
}
  0x30   :  { %73 = dma.hbm_to_vmem [thread:$0]  %s6282_s4, 32, %s71_s26, [#allocation9]  }
  0x31   :  { %s5487_s23 = scalar_lea.hbm %s6284_s6, 32 }
  0x32   :  { %p5488_p2 = scmp.ne.s32.totalorder %s6284_s6, %s5487_s23  ;;  %p5491_p3 = scmp.lt.u32.totalorder %s5487_s23, %s6284_s6 }
  0x34   :  { %p5493_p4 = pnand %p5491_p3, %p5488_p2 }
  0x36   :  { %5496 = shalt.err (!%p5493_p4)
}
  0x37   :  { %s5497_s0 = scalar_lea.vmem %s91_s29, 32  ;;  %p5502_p6 = scmp.lt.s32.totalorder %s91_s29, %s91_s29 }
  0x38   :  { %p5498_p5 = scmp.ne.s32.totalorder %s91_s29, %s5497_s0  ;;  %p5503_p7 = scmp.lt.s32.totalorder %s5497_s0, %s5497_s0 }
  0x3a   :  { %p5504_p8 = por %p5503_p7, %p5502_p6 }
  0x3c   :  { %p5505_p9 = pnand %p5504_p8, %p5498_p5 }
  0x3e   :  { %5508 = shalt.err (!%p5505_p9)
}
  0x3f   :  { %93 = dma.hbm_to_vmem [thread:$0]  %s6284_s6, 32, %s91_s29, [#allocation12]  }
  0x40   :  { %s5680_s30 = smov [#allocation14]   ;;  %s5509_s25 = scalar_lea.hbm %s6289_s11, 32768 }
  0x41   :  { %s117_s18 = sshll.u32 %s5680_s30, 4  ;;  %p5510_p10 = scmp.ne.s32.totalorder %s6289_s11, %s5509_s25  ;;  %s118_s18 = int_to_ptr.vmem [resolvable:$true] %s117_s18 }
  0x42   :  { %p5513_p11 = scmp.lt.u32.totalorder %s5509_s25, %s6289_s11 }
  0x44   :  { %p5515_p12 = pnand %p5513_p11, %p5510_p10 }
  0x46   :  { %5518 = shalt.err (!%p5515_p12)
}
  0x47   :  { %s5519_s23 = scalar_lea.vmem %s118_s18, 32768  ;;  %p5524_p0 = scmp.lt.s32.totalorder %s118_s18, %s118_s18 }
  0x48   :  { %p5520_p13 = scmp.ne.s32.totalorder %s118_s18, %s5519_s23  ;;  %p5525_p1 = scmp.lt.s32.totalorder %s5519_s23, %s5519_s23 }
  0x4a   :  { %p5526_p2 = por %p5525_p1, %p5524_p0 }
  0x4c   :  { %p5527_p3 = pnand %p5526_p2, %p5520_p13 }
  0x4e   :  { %5530 = shalt.err (!%p5527_p3)
}
  0x4f   :  { %s5681_s6 = smov 512   ;;  %s5682_s29 = smov 32  }
  0x50   :  { %123 = dma.hbm_to_vmem [thread:$0]  %s6289_s11, 32768, %s118_s18, [#allocation15], %s5681_s6, %s5681_s6, %s5682_s29  }
  0x51   :  { %s5683_s24 = smov [#allocation2]   ;;  %s5684_s0 = smov [#allocation7]  }
  0x52   :  { %s34_s27 = sshll.u32 %s5683_s24, 4  ;;  %s57_s4 = sshll.u32 %s5684_s0, 4  ;;  %s35_s27 = int_to_ptr.vmem [resolvable:$true] %s34_s27  ;;  %s5835_s4 = int_to_ptr.vmem [resolvable:$true] %s57_s4 }
  0x53   :  { %s6304_s19 = sld [smem:[#allocation24_spill]] }
  0x59   :  { %s5531_s1 = scalar_lea.hbm %s6304_s19, 64 }
  0x5a   :  { %p5532_p4 = scmp.ne.s32.totalorder %s6304_s19, %s5531_s1  ;;  %p5535_p5 = scmp.lt.u32.totalorder %s5531_s1, %s6304_s19 }
  0x5c   :  { %p5537_p6 = pnand %p5535_p5, %p5532_p4 }
  0x5e   :  { %5540 = shalt.err (!%p5537_p6)
}
  0x5f   :  { %s5541_s11 = scalar_lea.vmem %s35_s27, 64  ;;  %p5546_p8 = scmp.lt.s32.totalorder %s35_s27, %s35_s27 }
  0x60   :  { %p5542_p7 = scmp.ne.s32.totalorder %s35_s27, %s5541_s11  ;;  %p5547_p9 = scmp.lt.s32.totalorder %s5541_s11, %s5541_s11 }
  0x62   :  { %p5548_p10 = por %p5547_p9, %p5546_p8 }
  0x64   :  { %p5549_p11 = pnand %p5548_p10, %p5542_p7 }
  0x66   :  { %5552 = shalt.err (!%p5549_p11)
}
  0x67   :  { %37 = dma.hbm_to_vmem [thread:$0]  %s6304_s19, 64, %s35_s27, [#allocation3]  }
  0x68   :  { %s5553_s29 = scalar_lea.hbm %s6281_s3, 2048 }
  0x69   :  { %p5554_p12 = scmp.ne.s32.totalorder %s6281_s3, %s5553_s29  ;;  %p5557_p13 = scmp.lt.u32.totalorder %s5553_s29, %s6281_s3 }
  0x6b   :  { %p5559_p0 = pnand %p5557_p13, %p5554_p12 }
  0x6d   :  { %5562 = shalt.err (!%p5559_p0)
}
  0x6e   :  { %s5563_s26 = scalar_lea.vmem %s5835_s4, 2048  ;;  %p5568_p2 = scmp.lt.s32.totalorder %s5835_s4, %s5835_s4 }
  0x6f   :  { %p5564_p1 = scmp.ne.s32.totalorder %s5835_s4, %s5563_s26  ;;  %p5569_p3 = scmp.lt.s32.totalorder %s5563_s26, %s5563_s26 }
  0x71   :  { %p5570_p4 = por %p5569_p3, %p5568_p2 }
  0x73   :  { %p5571_p5 = pnand %p5570_p4, %p5564_p1 }
  0x75   :  { %5574 = shalt.err (!%p5571_p5)
}
  0x76   :  { %s5685_s27 = smov 128   ;;  %s5686_s30 = smov 8  }
  0x77   :  { %63 = dma.hbm_to_vmem [thread:$0]  %s6281_s3, 2048, %s5835_s4, [#allocation6], %s5685_s27, %s5685_s27, %s5686_s30  }
  0x78   :  { %s5687_s25 = smov [#allocation10]   ;;  %s5688_s20 = smov [#allocation13]  }
  0x79   :  { %s80_s28 = sshll.u32 %s5687_s25, 4  ;;  %s99_s21 = sshll.u32 %s5688_s20, 4  ;;  %s81_s28 = int_to_ptr.vmem [resolvable:$true] %s80_s28  ;;  %s5869_s21 = int_to_ptr.vmem [resolvable:$true] %s99_s21 }
  0x7a   :  { %s5575_s22 = scalar_lea.hbm %s6283_s5, 32 }
  0x7b   :  { %p5576_p6 = scmp.ne.s32.totalorder %s6283_s5, %s5575_s22  ;;  %p5579_p7 = scmp.lt.u32.totalorder %s5575_s22, %s6283_s5 }
  0x7d   :  { %p5581_p8 = pnand %p5579_p7, %p5576_p6 }
  0x7f   :  { %5584 = shalt.err (!%p5581_p8)
}
  0x80   :  { %s5585_s3 = scalar_lea.vmem %s81_s28, 32  ;;  %p5590_p10 = scmp.lt.s32.totalorder %s81_s28, %s81_s28 }
  0x81   :  { %p5586_p9 = scmp.ne.s32.totalorder %s81_s28, %s5585_s3  ;;  %p5591_p11 = scmp.lt.s32.totalorder %s5585_s3, %s5585_s3 }
  0x83   :  { %p5592_p12 = por %p5591_p11, %p5590_p10 }
  0x85   :  { %p5593_p13 = pnand %p5592_p12, %p5586_p9 }
  0x87   :  { %5596 = shalt.err (!%p5593_p13)
}
  0x88   :  { %83 = dma.hbm_to_vmem [thread:$0]  %s6283_s5, 32, %s81_s28, [#allocation9]  }
  0x89   :  { %s5597_s26 = scalar_lea.hbm %s6285_s7, 8192 }
  0x8a   :  { %p5598_p0 = scmp.ne.s32.totalorder %s6285_s7, %s5597_s26  ;;  %p5601_p1 = scmp.lt.u32.totalorder %s5597_s26, %s6285_s7 }
  0x8c   :  { %p5603_p2 = pnand %p5601_p1, %p5598_p0 }
  0x8e   :  { %5606 = shalt.err (!%p5603_p2)
}
  0x8f   :  { %s5607_s11 = scalar_lea.vmem %s5869_s21, 8192  ;;  %p5612_p4 = scmp.lt.s32.totalorder %s5869_s21, %s5869_s21 }
  0x90   :  { %p5608_p3 = scmp.ne.s32.totalorder %s5869_s21, %s5607_s11  ;;  %p5613_p5 = scmp.lt.s32.totalorder %s5607_s11, %s5607_s11 }
  0x92   :  { %p5614_p6 = por %p5613_p5, %p5612_p4 }
  0x94   :  { %p5615_p7 = pnand %p5614_p6, %p5608_p3 }
  0x96   :  { %5618 = shalt.err (!%p5615_p7)
}
  0x97   :  { %s5689_s5 = smov 256   ;;  %s5690_s28 = smov 16  }
  0x98   :  { %105 = dma.hbm_to_vmem [thread:$0]  %s6285_s7, 8192, %s5869_s21, [#allocation12], %s5689_s5, %s5689_s5, %s5690_s28  }
  0x99   :  { %s5691_s23 = smov [#allocation16]   ;;  %s5619_s3 = scalar_lea.hbm %s6293_s15, 16384 }
  0x9a   :  { %s135_s6 = sshll.u32 %s5691_s23, 4  ;;  %p5620_p8 = scmp.ne.s32.totalorder %s6293_s15, %s5619_s3  ;;  %s136_s6 = int_to_ptr.vmem [resolvable:$true] %s135_s6 }
  0x9b   :  { %p5623_p9 = scmp.lt.u32.totalorder %s5619_s3, %s6293_s15 }
  0x9d   :  { %p5625_p10 = pnand %p5623_p9, %p5620_p8 }
  0x9f   :  { %5628 = shalt.err (!%p5625_p10)
}
  0xa0   :  { %s5629_s26 = scalar_lea.vmem %s136_s6, 16384  ;;  %p5634_p12 = scmp.lt.s32.totalorder %s136_s6, %s136_s6 }
  0xa1   :  { %p5630_p11 = scmp.ne.s32.totalorder %s136_s6, %s5629_s26  ;;  %p5635_p13 = scmp.lt.s32.totalorder %s5629_s26, %s5629_s26 }
  0xa3   :  { %p5636_p0 = por %p5635_p13, %p5634_p12 }
  0xa5   :  { %p5637_p1 = pnand %p5636_p0, %p5630_p11 }
  0xa7   :  { %5640 = shalt.err (!%p5637_p1)
}
  0xa8   :  { %141 = dma.hbm_to_vmem [thread:$0]  %s6293_s15, 16384, %s136_s6, [#allocation15], %s5685_s27, %s5685_s27, %s5686_s30  }
  0xa9   :  { %5663 = dma.done.wait [#allocation3], 64  }
  0xaa   :  { %5664 = vsyncadd [#allocation3], 4294967232 }
  0xab   :  { %5665 = dma.done.wait [#allocation6], 3072  }
  0xac   :  { %5666 = vsyncadd [#allocation6], 4294964224 }
  0xad   :  { %5667 = dma.done.wait [#allocation9], 64  }
  0xae   :  { %5668 = vsyncadd [#allocation9], 4294967232 }
  0xaf   :  { %5669 = dma.done.wait [#allocation12], 8224  }
  0xb0   :  { %5670 = vsyncadd [#allocation12], 4294959072 }
  0xb1   :  { %5671 = dma.done.wait [#allocation15], 49152  }
  0xb2   :  { %5672 = vsyncadd [#allocation15], 4294918144  ;;  %v5692_v0 = vmov 0.0   ;;  %vm5693_vm0 = vmmov 0   ;;  %v5091_v1 = vld [vmem:[#allocation5] sm:$0xff]   ;;  %v5092_v2 = vld [vmem:[#allocation5 + $0x8] sm:$0xff]  }
  0xb3   :  { %5013 = vmatprep.subr.bf16.mxu0 %v5692_v0  ;;  %5029 = vmatprep.mubr.msk.bf16.mxu0 %vm5693_vm0, %v5692_v0  ;;  %v5093_v3 = vld [vmem:[#allocation5 + $0x10] sm:$0xff]   ;;  %v5099_v4 = vld [vmem:[#allocation7 + $0x4] ss:$8 sps:$4 sm:$0xff]   ;;  %v5101_v5 = vld [vmem:[#allocation7] ss:$8 sps:$4 sm:$0xff]   ;;  %v5694_v26 = vmov 0  }
  0xb4   :  { %5014 = vmatpush3.bf16.msra.mxu0 %v5091_v1  ;;  %v5094_v6 = vld [vmem:[#allocation5 + $0x18] sm:$0xff]   ;;  %396 = vmatprep.subr.bf16.mxu1 %v5099_v4  ;;  %v5105_v9 = vld [vmem:[#allocation7 + $0x24] ss:$8 sps:$4 sm:$0xff]   ;;  %v5107_v12 = vld [vmem:[#allocation7 + $0x20] ss:$8 sps:$4 sm:$0xff]   ;;  %s6305_s28 = sld [smem:[#allocation26_spill]] }
  0xb5   :  { %5015 = vmatprep.subr.bf16.mxu0 %v5692_v0  ;;  %v5102_v7 = vld [vmem:[#allocation7 + $0x14] ss:$8 sps:$4 sm:$0xff]   ;;  %397 = vmatpush1.bf16.msra.mxu1 %v5101_v5  ;;  %v5104_v8 = vld [vmem:[#allocation7 + $0x10] ss:$8 sps:$4 sm:$0xff]   ;;  %v5095_v10 = vld [vmem:[#allocation5 + $0x20] sm:$0xff]   ;;  %v306_v5 = vlaneseq  ;;  %s5696_s18 = smov [#allocation17]  }
  0xb6   :  { %398 = vmatprep.subr.bf16.mxu1 %v5102_v7  ;;  %v5096_v11 = vld [vmem:[#allocation5 + $0x28] sm:$0xff]   ;;  %v5108_v13 = vld [vmem:[#allocation7 + $0x34] ss:$8 sps:$4 sm:$0xff]   ;;  %v5110_v14 = vld [vmem:[#allocation7 + $0x30] ss:$8 sps:$4 sm:$0xff]   ;;  %428 = vmatprep.mubr.bf16.mxu1 %v5694_v26  ;;  %s4518_s22 = sshll.u32 %s5696_s18, 4  ;;  %s4519_s22 = int_to_ptr.vmem [resolvable:$true] %s4518_s22 }
  0xb7   :  { %v5111_v15 = vld [vmem:[#allocation7 + $0x44] ss:$8 sps:$4 sm:$0xff]   ;;  %v5097_v16 = vld [vmem:[#allocation5 + $0x30] sm:$0xff]   ;;  %v5113_v17 = vld [vmem:[#allocation7 + $0x40] ss:$8 sps:$4 sm:$0xff]   ;;  %s5641_s23 = scalar_lea.vmem %s4519_s22, 256  ;;  %p5646_p3 = scmp.lt.s32.totalorder %s4519_s22, %s4519_s22 }
  0xb8   :  { %5016 = vmatpush3.bf16.msra.mxu0 %v5092_v2  ;;  %v5114_v18 = vld [vmem:[#allocation7 + $0x54] ss:$8 sps:$4 sm:$0xff]   ;;  %v5116_v20 = vld [vmem:[#allocation7 + $0x50] ss:$8 sps:$4 sm:$0xff]   ;;  %v5117_v22 = vld [vmem:[#allocation7 + $0x64] ss:$8 sps:$4 sm:$0xff]   ;;  %p5642_p2 = scmp.ne.s32.totalorder %s4519_s22, %s5641_s23  ;;  %p5647_p4 = scmp.lt.s32.totalorder %s5641_s23, %s5641_s23 }
  0xb9   :  { %5017 = vmatprep.subr.bf16.mxu0 %v5692_v0  ;;  %399 = vmatpush1.bf16.msra.mxu1 %v5104_v8  ;;  %v5098_v19 = vld [vmem:[#allocation5 + $0x38] sm:$0xff]   ;;  %v5119_v23 = vld [vmem:[#allocation7 + $0x60] ss:$8 sps:$4 sm:$0xff]   ;;  %v4531_v27 = vld [vmem:[%s6280_s2] ss:$0 sm:$0xff] }
  0xba   :  { %400 = vmatprep.subr.bf16.mxu1 %v5105_v9  ;;  %v172_v21 = vld [vmem:[#allocation2] sm:$0xf]  ;;  %v5122_v25 = vld [vmem:[#allocation7 + $0x70] ss:$8 sps:$4 sm:$0xff]   ;;  %v304_v8 = vld [vmem:[#allocation8] sm:$0x3]  ;;  %p5648_p5 = por %p5647_p4, %p5646_p3 }
  0xbb   :  { %v5120_v24 = vld [vmem:[#allocation7 + $0x74] ss:$8 sps:$4 sm:$0xff]  }
  0xbc   :  { %5018 = vmatpush3.bf16.msra.mxu0 %v5093_v3  ;;  %v5125_v36 = vld [vmem:[#allocation13 + $0x4] ss:$16 sps:$4 sm:$0xff]   ;;  %v5123_v37 = vld [vmem:[#allocation13] ss:$16 sps:$4 sm:$0xff]   ;;  %v5173_v4 = vld [vmem:[#allocation13 + $0xc] ss:$16 sps:$4 sm:$0xff]   ;;  %p5649_p6 = pnand %p5648_p5, %p5642_p2 }
  0xbd   :  { %5019 = vmatprep.subr.bf16.mxu0 %v5692_v0  ;;  %401 = vmatpush1.bf16.msra.mxu1 %v5107_v12  ;;  %v5128_v38 = vld [vmem:[#allocation13 + $0x24] ss:$16 sps:$4 sm:$0xff]   ;;  %v5126_v39 = vld [vmem:[#allocation13 + $0x20] ss:$16 sps:$4 sm:$0xff]  }
  0xbe   :  { %402 = vmatprep.subr.bf16.mxu1 %v5108_v13  ;;  %v5131_v40 = vld [vmem:[#allocation13 + $0x44] ss:$16 sps:$4 sm:$0xff]   ;;  %v5129_v41 = vld [vmem:[#allocation13 + $0x40] ss:$16 sps:$4 sm:$0xff]  }
  0xbf   :  { %v5134_v42 = vld [vmem:[#allocation13 + $0x64] ss:$16 sps:$4 sm:$0xff]   ;;  %v5132_v43 = vld [vmem:[#allocation13 + $0x60] ss:$16 sps:$4 sm:$0xff]  }
  0xc0   :  { %5020 = vmatpush3.bf16.msra.mxu0 %v5094_v6  ;;  %v5137_v44 = vld [vmem:[#allocation13 + $0x84] ss:$16 sps:$4 sm:$0xff]   ;;  %v5135_v45 = vld [vmem:[#allocation13 + $0x80] ss:$16 sps:$4 sm:$0xff]   ;;  %v5918_v6 = vshrl.u32 %v306_v5, 7 }
  0xc1   :  { %5021 = vmatprep.subr.bf16.mxu0 %v5692_v0  ;;  %403 = vmatpush1.bf16.msra.mxu1 %v5110_v14  ;;  %v5140_v46 = vld [vmem:[#allocation13 + $0xa4] ss:$16 sps:$4 sm:$0xff]   ;;  %v5138_v47 = vld [vmem:[#allocation13 + $0xa0] ss:$16 sps:$4 sm:$0xff]  }
  0xc2   :  { %404 = vmatprep.subr.bf16.mxu1 %v5111_v15  ;;  %v5143_v48 = vld [vmem:[#allocation13 + $0xc4] ss:$16 sps:$4 sm:$0xff]   ;;  %v5141_v49 = vld [vmem:[#allocation13 + $0xc0] ss:$16 sps:$4 sm:$0xff]   ;;  %v5921_v7 = vsub.s32 0, %v5918_v6  ;;  %v5924_v9 = vsub.s32 1, %v5918_v6 }
  0xc3   :  { %v5146_v50 = vld [vmem:[#allocation13 + $0xe4] ss:$16 sps:$4 sm:$0xff]   ;;  %v5144_v51 = vld [vmem:[#allocation13 + $0xe0] ss:$16 sps:$4 sm:$0xff]  }
  0xc4   :  { %5022 = vmatpush3.bf16.msra.mxu0 %v5095_v10  ;;  %v5149_v52 = vld [vmem:[#allocation13 + $0x104] ss:$16 sps:$4 sm:$0xff]   ;;  %v5147_v53 = vld [vmem:[#allocation13 + $0x100] ss:$16 sps:$4 sm:$0xff]   ;;  %v309_v10 = vrot.slane %v304_v8, %v5921_v7 }
  0xc5   :  { %5023 = vmatprep.subr.bf16.mxu0 %v5692_v0  ;;  %405 = vmatpush1.bf16.msra.mxu1 %v5113_v17  ;;  %v5152_v54 = vld [vmem:[#allocation13 + $0x124] ss:$16 sps:$4 sm:$0xff]   ;;  %v5150_v55 = vld [vmem:[#allocation13 + $0x120] ss:$16 sps:$4 sm:$0xff]  }
  0xc6   :  { %406 = vmatprep.subr.bf16.mxu1 %v5114_v18  ;;  %v5155_v56 = vld [vmem:[#allocation13 + $0x144] ss:$16 sps:$4 sm:$0xff]   ;;  %v5153_v57 = vld [vmem:[#allocation13 + $0x140] ss:$16 sps:$4 sm:$0xff]  }
  0xc7   :  { %v5158_v58 = vld [vmem:[#allocation13 + $0x164] ss:$16 sps:$4 sm:$0xff]   ;;  %v5156_v59 = vld [vmem:[#allocation13 + $0x160] ss:$16 sps:$4 sm:$0xff]  }
  0xc8   :  { %5024 = vmatpush3.bf16.msra.mxu0 %v5096_v11  ;;  %v5161_v60 = vld [vmem:[#allocation13 + $0x184] ss:$16 sps:$4 sm:$0xff]   ;;  %v5159_v61 = vld [vmem:[#allocation13 + $0x180] ss:$16 sps:$4 sm:$0xff]   ;;  %v313_v11 = vrot.slane %v304_v8, %v5924_v9 }
  0xc9   :  { %5025 = vmatprep.subr.bf16.mxu0 %v5692_v0  ;;  %407 = vmatpush1.bf16.msra.mxu1 %v5116_v20  ;;  %v5162_v62 = vld [vmem:[#allocation13 + $0x1a0] ss:$16 sps:$4 sm:$0xff]   ;;  %v5164_v63 = vld [vmem:[#allocation13 + $0x1a4] ss:$16 sps:$4 sm:$0xff]  }
  0xca   :  { %408 = vmatprep.subr.bf16.mxu1 %v5117_v22  ;;  %v5165_v1 = vld [vmem:[#allocation13 + $0x1c0] ss:$16 sps:$4 sm:$0xff]   ;;  %v5170_v2 = vld [vmem:[#allocation13 + $0x1e4] ss:$16 sps:$4 sm:$0xff]  }
  0xcb   :  { %v5168_v3 = vld [vmem:[#allocation13 + $0x1e0] ss:$16 sps:$4 sm:$0xff]  }
  0xcc   :  { %5026 = vmatpush3.bf16.msra.mxu0 %v5097_v16 }
  0xcd   :  { %5027 = vmatprep.subr.bf16.mxu0 %v5692_v0  ;;  %409 = vmatpush1.bf16.msra.mxu1 %v5119_v23  ;;  %v5167_v0 = vld [vmem:[#allocation13 + $0x1c4] ss:$16 sps:$4 sm:$0xff]  }
  0xce   :  { %410 = vmatprep.subr.bf16.mxu1 %v5120_v24 }
  0xd0   :  { %5028 = vmatpush3.bf16.msra.mxu0 %v5098_v19 }
  0xd1   :  { %411 = vmatpush1.bf16.msra.mxu1 %v5122_v25 }
  0xd2   :  { %958 = vmatprep.subr.bf16.mxu1 %v5125_v36 }
  0xd3   :  { %5030 = vmatmul.mubr.bf16.vlgmr.msra.gmra.mrb[0].mxu0 %v172_v21 }
 0x1a6   :  { %v278_v28 = vpop.f32.mrb[0].mxu0 }
 0x1a7   :  { %v279_v29 = vadd.f32 %v4531_v27, %v278_v28  ;;  %v5031_v30 = vpop.f32.mrb[1].mxu0 }
 0x1a8   :  { %v281_v31 = vpop.f32.mrb[2].mxu0 }
 0x1a9   :  { %vm284_vm1 = vcmp.ge.f32.partialorder %v279_v29, 0.0  ;;  %v285_v32 = vmul.f32 0.2, %v279_v29  ;;  %v5032_v33 = vpop.f32.mrb[3].mxu0 }
 0x1ab   :  { %v286_v34 = vsel %vm284_vm1, %v279_v29, %v285_v32 }
 0x1ac   :  { %v287_v35 = vpack.c.bf16 %v286_v34, %v286_v34 }
 0x1ae   :  { %429 = vmatmul.mubr.bf16.vlgmr.msra.gmra.mrb[0].mxu1 %v287_v35 }
 0x1af   :  { %959 = vmatpush1.bf16.msra.mxu1 %v5123_v37 }
 0x1b0   :  { %960 = vmatprep.subr.bf16.mxu1 %v5128_v38 }
 0x1b3   :  { %961 = vmatpush1.bf16.msra.mxu1 %v5126_v39 }
 0x1b4   :  { %962 = vmatprep.subr.bf16.mxu1 %v5131_v40 }
 0x1b7   :  { %963 = vmatpush1.bf16.msra.mxu1 %v5129_v41 }
 0x1b8   :  { %964 = vmatprep.subr.bf16.mxu1 %v5134_v42 }
 0x1bb   :  { %965 = vmatpush1.bf16.msra.mxu1 %v5132_v43 }
 0x1bc   :  { %966 = vmatprep.subr.bf16.mxu1 %v5137_v44 }
 0x1bf   :  { %967 = vmatpush1.bf16.msra.mxu1 %v5135_v45 }
 0x1c0   :  { %968 = vmatprep.subr.bf16.mxu1 %v5140_v46 }
 0x1c3   :  { %969 = vmatpush1.bf16.msra.mxu1 %v5138_v47 }
 0x1c4   :  { %970 = vmatprep.subr.bf16.mxu1 %v5143_v48 }
 0x1c7   :  { %971 = vmatpush1.bf16.msra.mxu1 %v5141_v49 }
 0x1c8   :  { %972 = vmatprep.subr.bf16.mxu1 %v5146_v50 }
 0x1cb   :  { %973 = vmatpush1.bf16.msra.mxu1 %v5144_v51 }
 0x1cc   :  { %974 = vmatprep.subr.bf16.mxu1 %v5149_v52 }
 0x1cf   :  { %975 = vmatpush1.bf16.msra.mxu1 %v5147_v53 }
 0x1d0   :  { %976 = vmatprep.subr.bf16.mxu1 %v5152_v54  ;;  %v5695_v54 = vmov 1966171168  }
 0x1d3   :  { %977 = vmatpush1.bf16.msra.mxu1 %v5150_v55  ;;  %v481_v55 = vunpack.c.l.s4 %v5695_v54  ;;  %v5218_v54 = vld [vmem:[#allocation13 + $0x1ec] ss:$16 sps:$4 sm:$0xff]  }
 0x1d4   :  { %978 = vmatprep.subr.bf16.mxu1 %v5155_v56 }
 0x1d5   :  { %v482_v56 = vunpack.c.0.s8 %v481_v55  ;;  %v5216_v55 = vld [vmem:[#allocation13 + $0x1e8] ss:$16 sps:$4 sm:$0xff]  }
 0x1d7   :  { %979 = vmatpush1.bf16.msra.mxu1 %v5153_v57 }
 0x1d8   :  { %980 = vmatprep.subr.bf16.mxu1 %v5158_v58  ;;  %v5929_v58 = vsub.s32 %v482_v56, %v5918_v6  ;;  %v1248_v56 = vld [vmem:[#allocation14] sm:$0xff] }
 0x1db   :  { %981 = vmatpush1.bf16.msra.mxu1 %v5156_v59 }
 0x1dc   :  { %982 = vmatprep.subr.bf16.mxu1 %v5161_v60 }
 0x1df   :  { %983 = vmatpush1.bf16.msra.mxu1 %v5159_v61 }
 0x1e0   :  { %984 = vmatprep.subr.bf16.mxu1 %v5164_v63 }
 0x1e3   :  { %985 = vmatpush1.bf16.msra.mxu1 %v5162_v62  ;;  %v472_v62 = vld [vmem:[#allocation10] sm:$0x3] }
 0x1e4   :  { %986 = vmatprep.subr.bf16.mxu1 %v5167_v0 }
 0x1e7   :  { %987 = vmatpush1.bf16.msra.mxu1 %v5165_v1 }
 0x1e8   :  { %988 = vmatprep.subr.bf16.mxu1 %v5170_v2 }
 0x1eb   :  { %989 = vmatpush1.bf16.msra.mxu1 %v5168_v3 }
 0x1ec   :  { %999 = vmatprep.subr.bf16.mxu1 %v5173_v4 }
 0x281   :  { %v430_v12 = vpop.f32.mrb[0].mxu1 }
 0x282   :  { %v431_v13 = vadd.f32 %v430_v12, %v309_v10  ;;  %v432_v14 = vpop.f32.mrb[1].mxu1  ;;  %v496_v12 = vld [vmem:[#allocation11] sm:$0x3] }
 0x283   :  { %v433_v15 = vadd.f32 %v432_v14, %v313_v11  ;;  %v434_v16 = vpop.f32.mrb[2].mxu1 }
 0x284   :  { %v437_v17 = vrot.slane %v431_v13, 4  ;;  %v452_v18 = vmul.f32 %v431_v13, %v431_v13  ;;  %v435_v19 = vpop.f32.mrb[3].mxu1 }
 0x285   :  { %v443_v20 = vrot.slane %v433_v15, 4  ;;  %v453_v21 = vmul.f32 %v433_v15, %v433_v15 }
 0x286   :  { %v438_v22 = vadd.f32 %v437_v17, %v431_v13  ;;  %v454_v23 = vrot.slane %v452_v18, 4 }
 0x287   :  { %v444_v24 = vadd.f32 %v443_v20, %v433_v15  ;;  %v460_v25 = vrot.slane %v453_v21, 4 }
 0x288   :  { %v439_v26 = vrot.slane %v438_v22, 2  ;;  %v455_v27 = vadd.f32 %v454_v23, %v452_v18 }
 0x289   :  { %v445_v28 = vrot.slane %v444_v24, 2  ;;  %v461_v29 = vadd.f32 %v460_v25, %v453_v21 }
 0x28a   :  { %v440_v30 = vadd.f32 %v439_v26, %v438_v22  ;;  %v456_v31 = vrot.slane %v455_v27, 2  ;;  %v5176_v26 = vld [vmem:[#allocation13 + $0x2c] ss:$16 sps:$4 sm:$0xff]  }
 0x28b   :  { %v446_v32 = vadd.f32 %v445_v28, %v444_v24  ;;  %v462_v33 = vrot.slane %v461_v29, 2  ;;  %v5171_v24 = vld [vmem:[#allocation13 + $0x8] ss:$16 sps:$4 sm:$0xff]   ;;  %v5179_v28 = vld [vmem:[#allocation13 + $0x4c] ss:$16 sps:$4 sm:$0xff]  }
 0x28c   :  { %v441_v34 = vrot.slane %v440_v30, 1  ;;  %v457_v35 = vadd.f32 %v456_v31, %v455_v27  ;;  %v5174_v27 = vld [vmem:[#allocation13 + $0x28] ss:$16 sps:$4 sm:$0xff]  }
 0x28d   :  { %v447_v36 = vrot.slane %v446_v32, 1  ;;  %v463_v37 = vadd.f32 %v462_v33, %v461_v29  ;;  %v5177_v29 = vld [vmem:[#allocation13 + $0x48] ss:$16 sps:$4 sm:$0xff]  }
 0x28e   :  { %v442_v38 = vadd.f32 %v441_v34, %v440_v30  ;;  %v458_v39 = vrot.slane %v457_v35, 1  ;;  %v5182_v30 = vld [vmem:[#allocation13 + $0x6c] ss:$16 sps:$4 sm:$0xff]   ;;  %v5180_v31 = vld [vmem:[#allocation13 + $0x68] ss:$16 sps:$4 sm:$0xff]  }
 0x28f   :  { %v448_v40 = vadd.f32 %v447_v36, %v446_v32  ;;  %v464_v41 = vrot.slane %v463_v37, 1  ;;  %v5185_v32 = vld [vmem:[#allocation13 + $0x8c] ss:$16 sps:$4 sm:$0xff]   ;;  %v5183_v33 = vld [vmem:[#allocation13 + $0x88] ss:$16 sps:$4 sm:$0xff]  }
 0x290   :  { %v450_v42 = vmul.f32 0.125, %v442_v38  ;;  %v459_v43 = vadd.f32 %v458_v39, %v457_v35  ;;  %v5188_v34 = vld [vmem:[#allocation13 + $0xac] ss:$16 sps:$4 sm:$0xff]   ;;  %v5186_v35 = vld [vmem:[#allocation13 + $0xa8] ss:$16 sps:$4 sm:$0xff]  }
 0x291   :  { %v451_v44 = vmul.f32 0.125, %v448_v40  ;;  %v465_v45 = vadd.f32 %v464_v41, %v463_v37  ;;  %v5191_v36 = vld [vmem:[#allocation13 + $0xcc] ss:$16 sps:$4 sm:$0xff]   ;;  %v5189_v37 = vld [vmem:[#allocation13 + $0xc8] ss:$16 sps:$4 sm:$0xff]  }
 0x292   :  { %v466_v46 = vmul.f32 0.125, %v459_v43  ;;  %v468_v47 = vmul.f32 %v450_v42, %v450_v42  ;;  %v5194_v38 = vld [vmem:[#allocation13 + $0xec] ss:$16 sps:$4 sm:$0xff]   ;;  %v5192_v39 = vld [vmem:[#allocation13 + $0xe8] ss:$16 sps:$4 sm:$0xff]  }
 0x293   :  { %v467_v48 = vmul.f32 0.125, %v465_v45  ;;  %v469_v49 = vmul.f32 %v451_v44, %v451_v44  ;;  %v5197_v40 = vld [vmem:[#allocation13 + $0x10c] ss:$16 sps:$4 sm:$0xff]   ;;  %v5195_v41 = vld [vmem:[#allocation13 + $0x108] ss:$16 sps:$4 sm:$0xff]  }
 0x294   :  { %v470_v50 = vsub.f32 %v466_v46, %v468_v47  ;;  %v5198_v43 = vld [vmem:[#allocation13 + $0x128] ss:$16 sps:$4 sm:$0xff]   ;;  %v5206_v46 = vld [vmem:[#allocation13 + $0x16c] ss:$16 sps:$4 sm:$0xff]  }
 0x295   :  { %v471_v51 = vsub.f32 %v467_v48, %v469_v49  ;;  %v5201_v45 = vld [vmem:[#allocation13 + $0x148] ss:$16 sps:$4 sm:$0xff]   ;;  %v5209_v48 = vld [vmem:[#allocation13 + $0x18c] ss:$16 sps:$4 sm:$0xff]  }
 0x296   :  { %v473_v52 = vadd.f32 0.8, %v470_v50  ;;  %v5204_v47 = vld [vmem:[#allocation13 + $0x168] ss:$16 sps:$4 sm:$0xff]   ;;  %v5212_v50 = vld [vmem:[#allocation13 + $0x1ac] ss:$16 sps:$4 sm:$0xff]  }
 0x297   :  { %v474_v53 = vadd.f32 0.8, %v471_v51  ;;  %v5207_v49 = vld [vmem:[#allocation13 + $0x188] ss:$16 sps:$4 sm:$0xff]  }
 0x298   :  { %5411 = vrsqrt.f32 %v473_v52  ;;  %v5210_v51 = vld [vmem:[#allocation13 + $0x1a8] ss:$16 sps:$4 sm:$0xff]   ;;  %v5215_v52 = vld [vmem:[#allocation13 + $0x1cc] ss:$16 sps:$4 sm:$0xff]  }
 0x299   :  { %5413 = vrsqrt.f32 %v474_v53  ;;  %v5213_v53 = vld [vmem:[#allocation13 + $0x1c8] ss:$16 sps:$4 sm:$0xff]  }
 0x2a2   :  { %v5412_v57 = vpop.eup %5411 }
 0x2a3   :  { %v5414_v59 = vpop.eup %5413 }
 0x2a4   :  { %v479_v60 = vcombine.low %v5412_v57, %v5414_v59  ;;  %v1252_v57 = vld [vmem:[#allocation14 + $0x20] sm:$0xff] }
 0x2a5   :  { %v1376_v59 = vld [vmem:[#allocation14 + $0x400] sm:$0xff] }
 0x2a6   :  { %v486_v61 = vrot.slane %v479_v60, %v5929_v58  ;;  %v4621_v60 = vcombine.high %v1248_v56, %v1252_v57 }
 0x2a8   :  { %v493_v63 = vrot.slane %v486_v61, %v5929_v58  ;;  %v1380_v61 = vld [vmem:[#allocation14 + $0x420] sm:$0xff] }
 0x2aa   :  { %v495_v0 = vmul.f32 %v493_v63, %v472_v62  ;;  %v4620_v62 = vcombine.low %v1248_v56, %v1252_v57  ;;  %v4748_v63 = vcombine.low %v1376_v59, %v1380_v61  ;;  %v1436_v56 = vld [vmem:[#allocation14 + $0x5e0] sm:$0xff] }
 0x2ac   :  { %v501_v1 = vrot.slane %v495_v0, %v5921_v7  ;;  %v505_v2 = vrot.slane %v495_v0, %v5924_v9  ;;  %v4749_v0 = vcombine.high %v1376_v59, %v1380_v61  ;;  %v1312_v61 = vld [vmem:[#allocation14 + $0x200] sm:$0xff] }
 0x2ae   :  { %v508_v3 = vmul.f32 %v501_v1, %v450_v42  ;;  %v509_v4 = vmul.f32 %v505_v2, %v451_v44  ;;  %v530_v5 = vmul.f32 %v505_v2, %v433_v15  ;;  %v529_v8 = vmul.f32 %v501_v1, %v431_v13  ;;  %v5200_v42 = vld [vmem:[#allocation13 + $0x12c] ss:$16 sps:$4 sm:$0xff]   ;;  %2867 = vmatprep.subr.bf16.mxu0 %v4749_v0  ;;  %v1256_v1 = vld [vmem:[#allocation14 + $0x40] sm:$0xff] }
 0x2af   :  { %v5203_v44 = vld [vmem:[#allocation13 + $0x14c] ss:$16 sps:$4 sm:$0xff]   ;;  %v1260_v2 = vld [vmem:[#allocation14 + $0x60] sm:$0xff]  ;;  %2868 = vmatpush1.bf16.msra.mxu0 %v4748_v63 }
 0x2b0   :  { %v512_v10 = vcombine.low %v508_v3, %v509_v4  ;;  %v1384_v3 = vld [vmem:[#allocation14 + $0x440] sm:$0xff]  ;;  %v4629_v4 = vcombine.high %v1256_v1, %v1260_v2 }
 0x2b1   :  { %v1440_v63 = vld [vmem:[#allocation14 + $0x600] sm:$0xff] }
 0x2b2   :  { %v519_v11 = vrot.slane %v512_v10, %v5929_v58 }
 0x2b4   :  { %v526_v14 = vrot.slane %v519_v11, %v5929_v58 }
 0x2b6   :  { %v528_v16 = vsub.f32 %v496_v12, %v526_v14  ;;  %v1264_v12 = vld [vmem:[#allocation14 + $0x80] sm:$0xff] }
 0x2b7   :  { %v1268_v14 = vld [vmem:[#allocation14 + $0xa0] sm:$0xff] }
 0x2b8   :  { %v539_v17 = vrot.slane %v528_v16, %v5924_v9  ;;  %v535_v18 = vrot.slane %v528_v16, %v5921_v7  ;;  %v1392_v16 = vld [vmem:[#allocation14 + $0x480] sm:$0xff] }
 0x2ba   :  { %v543_v19 = vadd.f32 %v539_v17, %v530_v5  ;;  %v542_v20 = vadd.f32 %v535_v18, %v529_v8  ;;  %v1388_v5 = vld [vmem:[#allocation14 + $0x460] sm:$0xff]  ;;  %v4628_v8 = vcombine.low %v1256_v1, %v1260_v2  ;;  %v4637_v17 = vcombine.high %v1264_v12, %v1268_v14 }
 0x2bb   :  { %v4756_v10 = vcombine.low %v1384_v3, %v1388_v5  ;;  %v4757_v11 = vcombine.high %v1384_v3, %v1388_v5  ;;  %v1396_v18 = vld [vmem:[#allocation14 + $0x4a0] sm:$0xff] }
 0x2bc   :  { %vm545_vm2 = vcmp.ge.f32.partialorder %v543_v19, 0.0  ;;  %v547_v21 = vmul.f32 0.2, %v543_v19  ;;  %vm544_vm3 = vcmp.ge.f32.partialorder %v542_v20, 0.0  ;;  %v546_v22 = vmul.f32 0.2, %v542_v20 }
 0x2bd   :  { %2869 = vmatprep.subr.bf16.mxu0 %v4757_v11  ;;  %v1444_v1 = vld [vmem:[#allocation14 + $0x620] sm:$0xff] }
 0x2be   :  { %v549_v23 = vsel %vm545_vm2, %v543_v19, %v547_v21  ;;  %v548_v15 = vsel %vm544_vm3, %v542_v20, %v546_v22  ;;  %2870 = vmatpush1.bf16.msra.mxu0 %v4756_v10  ;;  %v4636_v19 = vcombine.low %v1264_v12, %v1268_v14  ;;  %v4764_v20 = vcombine.low %v1392_v16, %v1396_v18  ;;  %v1272_v22 = vld [vmem:[#allocation14 + $0xc0] sm:$0xff] }
 0x2bf   :  { %v551_v13 = vpack.c.bf16 %v549_v23, %v549_v23  ;;  %v5939_v25 = vpack.c.bf16 %v548_v15, %v548_v15  ;;  %v4765_v21 = vcombine.high %v1392_v16, %v1396_v18  ;;  %v1276_v23 = vld [vmem:[#allocation14 + $0xe0] sm:$0xff]  ;;  %v4812_v3 = vcombine.low %v1440_v63, %v1444_v1 }
 0x2c0   :  { %v1400_v15 = vld [vmem:[#allocation14 + $0x4c0] sm:$0xff] }
 0x2c1   :  { %990 = vmatprep.mubr.bf16.mxu1 %v551_v13  ;;  %2871 = vmatprep.subr.bf16.mxu0 %v4765_v21  ;;  %v1320_v5 = vld [vmem:[#allocation14 + $0x240] sm:$0xff] }
 0x2c2   :  { %991 = vmatmul.mubr.bf16.vlgmr.msra.gmra.mrb[4].mxu1 %v5939_v25  ;;  %2872 = vmatpush1.bf16.msra.mxu0 %v4764_v20  ;;  %v1448_v10 = vld [vmem:[#allocation14 + $0x640] sm:$0xff] }
 0x2c3   :  { %1000 = vmatpush1.bf16.msra.mxu1 %v5171_v24  ;;  %1031 = vmatprep.mubr.bf16.mxu1 %v551_v13  ;;  %v4645_v13 = vcombine.high %v1272_v22, %v1276_v23  ;;  %v1404_v24 = vld [vmem:[#allocation14 + $0x4e0] sm:$0xff] }
 0x2c4   :  { %1001 = vmatprep.subr.bf16.mxu1 %v5176_v26  ;;  %v4772_v26 = vcombine.low %v1400_v15, %v1404_v24  ;;  %v1452_v12 = vld [vmem:[#allocation14 + $0x660] sm:$0xff] }
 0x2c5   :  { %v4820_v16 = vcombine.low %v1448_v10, %v1452_v12  ;;  %v1328_v18 = vld [vmem:[#allocation14 + $0x280] sm:$0xff] }
 0x2c6   :  { %v1456_v20 = vld [vmem:[#allocation14 + $0x680] sm:$0xff] }
 0x2c7   :  { %1002 = vmatpush1.bf16.msra.mxu1 %v5174_v27  ;;  %v4773_v27 = vcombine.high %v1400_v15, %v1404_v24  ;;  %v1336_v24 = vld [vmem:[#allocation14 + $0x2c0] sm:$0xff] }
 0x2c8   :  { %1003 = vmatprep.subr.bf16.mxu1 %v5179_v28  ;;  %v1280_v28 = vld [vmem:[#allocation14 + $0x100] sm:$0xff] }
 0x2c9   :  { %2873 = vmatprep.subr.bf16.mxu0 %v4773_v27 }
 0x2ca   :  { %2874 = vmatpush1.bf16.msra.mxu0 %v4772_v26  ;;  %v1464_v26 = vld [vmem:[#allocation14 + $0x6c0] sm:$0xff] }
 0x2cb   :  { %1004 = vmatpush1.bf16.msra.mxu1 %v5177_v29  ;;  %v1284_v29 = vld [vmem:[#allocation14 + $0x120] sm:$0xff] }
 0x2cc   :  { %1005 = vmatprep.subr.bf16.mxu1 %v5182_v30  ;;  %v1408_v30 = vld [vmem:[#allocation14 + $0x500] sm:$0xff] }
 0x2cf   :  { %1006 = vmatpush1.bf16.msra.mxu1 %v5180_v31  ;;  %v4653_v31 = vcombine.high %v1280_v28, %v1284_v29 }
 0x2d0   :  { %1007 = vmatprep.subr.bf16.mxu1 %v5185_v32  ;;  %v1412_v32 = vld [vmem:[#allocation14 + $0x520] sm:$0xff] }
 0x2d3   :  { %1008 = vmatpush1.bf16.msra.mxu1 %v5183_v33  ;;  %v4652_v33 = vcombine.low %v1280_v28, %v1284_v29  ;;  %v1468_v28 = vld [vmem:[#allocation14 + $0x6e0] sm:$0xff] }
 0x2d4   :  { %1009 = vmatprep.subr.bf16.mxu1 %v5188_v34  ;;  %v4780_v34 = vcombine.low %v1408_v30, %v1412_v32 }
 0x2d7   :  { %1010 = vmatpush1.bf16.msra.mxu1 %v5186_v35  ;;  %v4781_v35 = vcombine.high %v1408_v30, %v1412_v32  ;;  %v4836_v30 = vcombine.low %v1464_v26, %v1468_v28  ;;  %v1344_v32 = vld [vmem:[#allocation14 + $0x300] sm:$0xff] }
 0x2d8   :  { %1011 = vmatprep.subr.bf16.mxu1 %v5191_v36  ;;  %v1288_v36 = vld [vmem:[#allocation14 + $0x140] sm:$0xff] }
 0x2d9   :  { %2875 = vmatprep.subr.bf16.mxu0 %v4781_v35 }
 0x2da   :  { %2876 = vmatpush1.bf16.msra.mxu0 %v4780_v34  ;;  %v1472_v34 = vld [vmem:[#allocation14 + $0x700] sm:$0xff] }
 0x2db   :  { %1012 = vmatpush1.bf16.msra.mxu1 %v5189_v37  ;;  %v1292_v37 = vld [vmem:[#allocation14 + $0x160] sm:$0xff] }
 0x2dc   :  { %1013 = vmatprep.subr.bf16.mxu1 %v5194_v38  ;;  %v1416_v38 = vld [vmem:[#allocation14 + $0x540] sm:$0xff] }
 0x2df   :  { %1014 = vmatpush1.bf16.msra.mxu1 %v5192_v39  ;;  %v4661_v39 = vcombine.high %v1288_v36, %v1292_v37 }
 0x2e0   :  { %1015 = vmatprep.subr.bf16.mxu1 %v5197_v40  ;;  %v1420_v40 = vld [vmem:[#allocation14 + $0x560] sm:$0xff] }
 0x2e3   :  { %1016 = vmatpush1.bf16.msra.mxu1 %v5195_v41  ;;  %v4660_v41 = vcombine.low %v1288_v36, %v1292_v37  ;;  %v1476_v36 = vld [vmem:[#allocation14 + $0x720] sm:$0xff] }
 0x2e4   :  { %1017 = vmatprep.subr.bf16.mxu1 %v5200_v42  ;;  %v4788_v42 = vcombine.low %v1416_v38, %v1420_v40 }
 0x2e7   :  { %1018 = vmatpush1.bf16.msra.mxu1 %v5198_v43  ;;  %v4789_v43 = vcombine.high %v1416_v38, %v1420_v40  ;;  %v4844_v38 = vcombine.low %v1472_v34, %v1476_v36  ;;  %v1352_v40 = vld [vmem:[#allocation14 + $0x340] sm:$0xff] }
 0x2e8   :  { %1019 = vmatprep.subr.bf16.mxu1 %v5203_v44  ;;  %v1296_v44 = vld [vmem:[#allocation14 + $0x180] sm:$0xff] }
 0x2e9   :  { %2877 = vmatprep.subr.bf16.mxu0 %v4789_v43 }
 0x2ea   :  { %2878 = vmatpush1.bf16.msra.mxu0 %v4788_v42  ;;  %v1480_v42 = vld [vmem:[#allocation14 + $0x740] sm:$0xff] }
 0x2eb   :  { %1020 = vmatpush1.bf16.msra.mxu1 %v5201_v45  ;;  %v1300_v45 = vld [vmem:[#allocation14 + $0x1a0] sm:$0xff] }
 0x2ec   :  { %1021 = vmatprep.subr.bf16.mxu1 %v5206_v46  ;;  %v1424_v46 = vld [vmem:[#allocation14 + $0x580] sm:$0xff] }
 0x2ef   :  { %1022 = vmatpush1.bf16.msra.mxu1 %v5204_v47  ;;  %v4669_v47 = vcombine.high %v1296_v44, %v1300_v45 }
 0x2f0   :  { %1023 = vmatprep.subr.bf16.mxu1 %v5209_v48  ;;  %v1428_v48 = vld [vmem:[#allocation14 + $0x5a0] sm:$0xff] }
 0x2f3   :  { %1024 = vmatpush1.bf16.msra.mxu1 %v5207_v49  ;;  %v4668_v49 = vcombine.low %v1296_v44, %v1300_v45  ;;  %v1484_v44 = vld [vmem:[#allocation14 + $0x760] sm:$0xff] }
 0x2f4   :  { %1025 = vmatprep.subr.bf16.mxu1 %v5212_v50  ;;  %v4796_v50 = vcombine.low %v1424_v46, %v1428_v48 }
 0x2f7   :  { %1026 = vmatpush1.bf16.msra.mxu1 %v5210_v51  ;;  %v4797_v51 = vcombine.high %v1424_v46, %v1428_v48  ;;  %v4852_v46 = vcombine.low %v1480_v42, %v1484_v44  ;;  %v5946_v48 = vld [vmem:[%s6286_s8] sm:$0xf] }
 0x2f8   :  { %1027 = vmatprep.subr.bf16.mxu1 %v5215_v52  ;;  %v1304_v52 = vld [vmem:[#allocation14 + $0x1c0] sm:$0xff] }
 0x2f9   :  { %2879 = vmatprep.subr.bf16.mxu0 %v4797_v51  ;;  %v1488_v51 = vld [vmem:[#allocation14 + $0x780] sm:$0xff] }
 0x2fa   :  { %2880 = vmatpush1.bf16.msra.mxu0 %v4796_v50  ;;  %v1364_v50 = vld [vmem:[#allocation14 + $0x3a0] sm:$0xff] }
 0x2fb   :  { %1028 = vmatpush1.bf16.msra.mxu1 %v5213_v53  ;;  %v1308_v53 = vld [vmem:[#allocation14 + $0x1e0] sm:$0xff] }
 0x2fc   :  { %1029 = vmatprep.subr.bf16.mxu1 %v5218_v54  ;;  %v1432_v54 = vld [vmem:[#allocation14 + $0x5c0] sm:$0xff]  ;;  %v4676_v57 = vcombine.low %v1304_v52, %v1308_v53 }
 0x2fd   :  { %v4804_v59 = vcombine.low %v1432_v54, %v1436_v56 }
 0x2ff   :  { %1030 = vmatpush1.bf16.msra.mxu1 %v5216_v55  ;;  %v4677_v55 = vcombine.high %v1304_v52, %v1308_v53  ;;  %v1492_v53 = vld [vmem:[#allocation14 + $0x7a0] sm:$0xff] }
 0x300   :  { %2826 = vmatprep.subr.bf16.mxu1 %v4621_v60  ;;  %v4805_v60 = vcombine.high %v1432_v54, %v1436_v56  ;;  %v4861_v56 = vcombine.high %v1488_v51, %v1492_v53 }
 0x302   :  { %1032 = vmatmul.mubr.bf16.vlgmr.msra.gmra.mrb[8].mxu1 %v5939_v25  ;;  %v4644_v25 = vcombine.low %v1272_v22, %v1276_v23  ;;  %2881 = vmatprep.subr.bf16.mxu0 %v4805_v60  ;;  %v1460_v22 = vld [vmem:[#allocation14 + $0x6a0] sm:$0xff] }
 0x303   :  { %2827 = vmatpush1.bf16.msra.mxu1 %v4620_v62  ;;  %v1316_v62 = vld [vmem:[#allocation14 + $0x220] sm:$0xff]  ;;  %2882 = vmatpush1.bf16.msra.mxu0 %v4804_v59  ;;  %v4828_v15 = vcombine.low %v1456_v20, %v1460_v22 }
 0x304   :  { %2828 = vmatprep.subr.bf16.mxu1 %v4629_v4  ;;  %v4685_v0 = vcombine.high %v1312_v61, %v1316_v62  ;;  %v4684_v2 = vcombine.low %v1312_v61, %v1316_v62  ;;  %v4813_v4 = vcombine.high %v1440_v63, %v1444_v1  ;;  %v1368_v59 = vld [vmem:[#allocation14 + $0x3c0] sm:$0xff]  ;;  %v625_v62 = vrot.slane %v5946_v48, %v5924_v9 }
 0x305   :  { %v1372_v60 = vld [vmem:[#allocation14 + $0x3e0] sm:$0xff] }
 0x306   :  { %2883 = vmatprep.subr.bf16.mxu0 %v4813_v4  ;;  %v1496_v61 = vld [vmem:[#allocation14 + $0x7c0] sm:$0xff]  ;;  %v4740_v63 = vcombine.low %v1368_v59, %v1372_v60 }
 0x307   :  { %2829 = vmatpush1.bf16.msra.mxu1 %v4628_v8  ;;  %v1324_v8 = vld [vmem:[#allocation14 + $0x260] sm:$0xff]  ;;  %2884 = vmatpush1.bf16.msra.mxu0 %v4812_v3 }
 0x308   :  { %2830 = vmatprep.subr.bf16.mxu1 %v4637_v17  ;;  %v4693_v11 = vcombine.high %v1320_v5, %v1324_v8  ;;  %v4692_v14 = vcombine.low %v1320_v5, %v1324_v8  ;;  %v4821_v17 = vcombine.high %v1448_v10, %v1452_v12  ;;  %v1500_v1 = vld [vmem:[#allocation14 + $0x7e0] sm:$0xff]  ;;  %v5956_v12 = vld [vmem:[#allocation14 + $0x8] sm:$0xff] }
 0x309   :  { %v4869_v3 = vcombine.high %v1496_v61, %v1500_v1 }
 0x30a   :  { %2885 = vmatprep.subr.bf16.mxu0 %v4821_v17 }
 0x30b   :  { %2831 = vmatpush1.bf16.msra.mxu1 %v4636_v19  ;;  %v1332_v19 = vld [vmem:[#allocation14 + $0x2a0] sm:$0xff]  ;;  %2886 = vmatpush1.bf16.msra.mxu0 %v4820_v16  ;;  %v5960_v16 = vld [vmem:[#allocation14 + $0x10] sm:$0xff] }
 0x30c   :  { %2832 = vmatprep.subr.bf16.mxu1 %v4645_v13  ;;  %v4701_v21 = vcombine.high %v1328_v18, %v1332_v19  ;;  %v4700_v23 = vcombine.low %v1328_v18, %v1332_v19  ;;  %v4829_v13 = vcombine.high %v1456_v20, %v1460_v22 }
 0x30e   :  { %2887 = vmatprep.subr.bf16.mxu0 %v4829_v13 }
 0x30f   :  { %2833 = vmatpush1.bf16.msra.mxu1 %v4644_v25  ;;  %v1340_v25 = vld [vmem:[#allocation14 + $0x2e0] sm:$0xff]  ;;  %2888 = vmatpush1.bf16.msra.mxu0 %v4828_v15 }
 0x310   :  { %2834 = vmatprep.subr.bf16.mxu1 %v4653_v31  ;;  %v4709_v27 = vcombine.high %v1336_v24, %v1340_v25  ;;  %v4708_v29 = vcombine.low %v1336_v24, %v1340_v25  ;;  %v4837_v31 = vcombine.high %v1464_v26, %v1468_v28 }
 0x312   :  { %2889 = vmatprep.subr.bf16.mxu0 %v4837_v31 }
 0x313   :  { %2835 = vmatpush1.bf16.msra.mxu1 %v4652_v33  ;;  %v1348_v33 = vld [vmem:[#allocation14 + $0x320] sm:$0xff]  ;;  %2890 = vmatpush1.bf16.msra.mxu0 %v4836_v30 }
 0x314   :  { %2836 = vmatprep.subr.bf16.mxu1 %v4661_v39  ;;  %v4717_v35 = vcombine.high %v1344_v32, %v1348_v33  ;;  %v4716_v37 = vcombine.low %v1344_v32, %v1348_v33  ;;  %v4845_v39 = vcombine.high %v1472_v34, %v1476_v36 }
 0x316   :  { %2891 = vmatprep.subr.bf16.mxu0 %v4845_v39 }
 0x317   :  { %2837 = vmatpush1.bf16.msra.mxu1 %v4660_v41  ;;  %v1356_v41 = vld [vmem:[#allocation14 + $0x360] sm:$0xff]  ;;  %2892 = vmatpush1.bf16.msra.mxu0 %v4844_v38 }
 0x318   :  { %2838 = vmatprep.subr.bf16.mxu1 %v4669_v47  ;;  %v4725_v43 = vcombine.high %v1352_v40, %v1356_v41  ;;  %v4724_v45 = vcombine.low %v1352_v40, %v1356_v41  ;;  %v4853_v47 = vcombine.high %v1480_v42, %v1484_v44 }
 0x31a   :  { %2893 = vmatprep.subr.bf16.mxu0 %v4853_v47 }
 0x31b   :  { %2839 = vmatpush1.bf16.msra.mxu1 %v4668_v49  ;;  %v1360_v49 = vld [vmem:[#allocation14 + $0x380] sm:$0xff]  ;;  %2894 = vmatpush1.bf16.msra.mxu0 %v4852_v46 }
 0x31c   :  { %2840 = vmatprep.subr.bf16.mxu1 %v4677_v55  ;;  %v4733_v52 = vcombine.high %v1360_v49, %v1364_v50  ;;  %v4732_v54 = vcombine.low %v1360_v49, %v1364_v50  ;;  %v4860_v55 = vcombine.low %v1488_v51, %v1492_v53  ;;  %2895 = vmatprep.subr.bf16.mxu0 %v4861_v56 }
 0x31f   :  { %2841 = vmatpush1.bf16.msra.mxu1 %v4676_v57  ;;  %v621_v57 = vrot.slane %v5946_v48, %v5921_v7  ;;  %2896 = vmatpush1.bf16.msra.mxu0 %v4860_v55 }
 0x320   :  { %2842 = vmatprep.subr.bf16.mxu1 %v4685_v0  ;;  %v4741_v0 = vcombine.high %v1368_v59, %v1372_v60  ;;  %2897 = vmatprep.subr.bf16.mxu0 %v4869_v3 }
 0x323   :  { %2843 = vmatpush1.bf16.msra.mxu1 %v4684_v2  ;;  %v4868_v2 = vcombine.low %v1496_v61, %v1500_v1 }
 0x324   :  { %2844 = vmatprep.subr.bf16.mxu1 %v4693_v11 }
 0x325   :  { %2898 = vmatpush1.bf16.msra.mxu0 %v4868_v2 }
 0x327   :  { %2845 = vmatpush1.bf16.msra.mxu1 %v4692_v14  ;;  %v5958_v14 = vld [vmem:[#allocation14 + $0x28] sm:$0xff] }
 0x328   :  { %2846 = vmatprep.subr.bf16.mxu1 %v4701_v21  ;;  %v4623_v20 = vcombine.high %v5956_v12, %v5958_v14  ;;  %v5967_v21 = vld [vmem:[#allocation14 + $0x30] sm:$0xff]  ;;  %v4622_v15 = vcombine.low %v5956_v12, %v5958_v14 }
 0x329   :  { %v4624_v13 = vcombine.low %v5960_v16, %v5967_v21  ;;  %v4625_v26 = vcombine.high %v5960_v16, %v5967_v21 }
 0x32b   :  { %2847 = vmatpush1.bf16.msra.mxu1 %v4700_v23  ;;  %2990 = vmatprep.subr.bf16.mxu0 %v4625_v26 }
 0x32c   :  { %2848 = vmatprep.subr.bf16.mxu1 %v4709_v27 }
 0x32f   :  { %2849 = vmatpush1.bf16.msra.mxu1 %v4708_v29 }
 0x330   :  { %2850 = vmatprep.subr.bf16.mxu1 %v4717_v35 }
 0x333   :  { %2851 = vmatpush1.bf16.msra.mxu1 %v4716_v37 }
 0x334   :  { %2852 = vmatprep.subr.bf16.mxu1 %v4725_v43 }
 0x337   :  { %2853 = vmatpush1.bf16.msra.mxu1 %v4724_v45 }
 0x338   :  { %2854 = vmatprep.subr.bf16.mxu1 %v4733_v52 }
 0x33b   :  { %2855 = vmatpush1.bf16.msra.mxu1 %v4732_v54 }
 0x33c   :  { %2856 = vmatprep.subr.bf16.mxu1 %v4741_v0 }
 0x33f   :  { %2857 = vmatpush1.bf16.msra.mxu1 %v4740_v63  ;;  %v5992_v63 = vsub.s32 3, %v5918_v6 }
 0x340   :  { %2908 = vmatprep.subr.bf16.mxu1 %v4623_v20 }
 0x341   :  { %v633_v1 = vrot.slane %v5946_v48, %v5992_v63 }
 0x395   :  { %v992_v4 = vpop.f32.mrb[4].mxu1 }
 0x396   :  { %v5952_v5 = vadd.f32 %v992_v4, %v621_v57  ;;  %v994_v8 = vpop.f32.mrb[5].mxu1 }
 0x397   :  { %v5954_v10 = vadd.f32 %v994_v8, %v625_v62  ;;  %v996_v11 = vpop.f32.mrb[6].mxu1  ;;  %v5989_v62 = vsub.s32 2, %v5918_v6 }
 0x398   :  { %v1040_v17 = vrot.slane %v5952_v5, 4  ;;  %v1068_v18 = vmul.f32 %v5952_v5, %v5952_v5  ;;  %v997_v19 = vpop.f32.mrb[7].mxu1 }
 0x399   :  { %v1046_v22 = vrot.slane %v5954_v10, 4  ;;  %v1069_v23 = vmul.f32 %v5954_v10, %v5954_v10  ;;  %v629_v0 = vrot.slane %v5946_v48, %v5989_v62 }
 0x39a   :  { %v1041_v24 = vadd.f32 %v1040_v17, %v5952_v5  ;;  %v1072_v25 = vrot.slane %v1068_v18, 4 }
 0x39b   :  { %v1047_v27 = vadd.f32 %v1046_v22, %v5954_v10  ;;  %v1078_v28 = vrot.slane %v1069_v23, 4 }
 0x39c   :  { %v1042_v29 = vrot.slane %v1041_v24, 2  ;;  %v1073_v30 = vadd.f32 %v1072_v25, %v1068_v18 }
 0x39d   :  { %v1048_v31 = vrot.slane %v1047_v27, 2  ;;  %v1079_v32 = vadd.f32 %v1078_v28, %v1069_v23 }
 0x39e   :  { %v1043_v33 = vadd.f32 %v1042_v29, %v1041_v24  ;;  %v1074_v34 = vrot.slane %v1073_v30, 2 }
 0x39f   :  { %v1049_v35 = vadd.f32 %v1048_v31, %v1047_v27  ;;  %v1080_v36 = vrot.slane %v1079_v32, 2 }
 0x3a0   :  { %v1044_v37 = vrot.slane %v1043_v33, 1  ;;  %v1075_v38 = vadd.f32 %v1074_v34, %v1073_v30 }
 0x3a1   :  { %v1050_v39 = vrot.slane %v1049_v35, 1  ;;  %v1081_v40 = vadd.f32 %v1080_v36, %v1079_v32 }
 0x3a2   :  { %v1045_v41 = vadd.f32 %v1044_v37, %v1043_v33  ;;  %v1076_v42 = vrot.slane %v1075_v38, 1 }
 0x3a3   :  { %v1051_v43 = vadd.f32 %v1050_v39, %v1049_v35  ;;  %v1082_v44 = vrot.slane %v1081_v40, 1 }
 0x3a4   :  { %v5980_v45 = vmul.f32 0.125, %v1045_v41  ;;  %v1077_v46 = vadd.f32 %v1076_v42, %v1075_v38 }
 0x3a5   :  { %v5982_v47 = vmul.f32 0.125, %v1051_v43  ;;  %v1083_v49 = vadd.f32 %v1082_v44, %v1081_v40 }
 0x3a6   :  { %v1096_v50 = vmul.f32 0.125, %v1077_v46  ;;  %v1100_v51 = vmul.f32 %v5980_v45, %v5980_v45 }
 0x3a7   :  { %v1097_v52 = vmul.f32 0.125, %v1083_v49  ;;  %v1101_v53 = vmul.f32 %v5982_v47, %v5982_v47 }
 0x3a8   :  { %v1104_v54 = vsub.f32 %v1096_v50, %v1100_v51 }
 0x3a9   :  { %v1105_v55 = vsub.f32 %v1097_v52, %v1101_v53 }
 0x3aa   :  { %v1109_v56 = vadd.f32 0.8, %v1104_v54 }
 0x3ab   :  { %v1110_v57 = vadd.f32 0.8, %v1105_v55 }
 0x3ac   :  { %5415 = vrsqrt.f32 %v1109_v56 }
 0x3ad   :  { %5417 = vrsqrt.f32 %v1110_v57 }
 0x3b6   :  { %v5416_v59 = vpop.eup %5415 }
 0x3b7   :  { %v5418_v60 = vpop.eup %5417 }
 0x3b8   :  { %v1121_v61 = vcombine.low %v5416_v59, %v5418_v60 }
 0x3d5   :  { %v1033_v2 = vpop.f32.mrb[8].mxu1 }
 0x3d6   :  { %v5998_v3 = vadd.f32 %v1033_v2, %v629_v0  ;;  %v1035_v4 = vpop.f32.mrb[9].mxu1  ;;  %v1129_v0 = vrot.slane %v1121_v61, %v5929_v58 }
 0x3d7   :  { %v1036_v8 = vadd.f32 %v1035_v4, %v633_v1  ;;  %v1037_v11 = vpop.f32.mrb[10].mxu1  ;;  %v1108_v4 = vld [vmem:[%s6287_s9] sm:$0xf] }
 0x3d8   :  { %v1052_v17 = vrot.slane %v5998_v3, 4  ;;  %v1070_v18 = vmul.f32 %v5998_v3, %v5998_v3  ;;  %v1038_v19 = vpop.f32.mrb[11].mxu1 }
 0x3d9   :  { %v1058_v20 = vrot.slane %v1036_v8, 4  ;;  %v1071_v22 = vmul.f32 %v1036_v8, %v1036_v8 }
 0x3da   :  { %v1053_v23 = vadd.f32 %v1052_v17, %v5998_v3  ;;  %v1084_v24 = vrot.slane %v1070_v18, 4 }
 0x3db   :  { %v1059_v25 = vadd.f32 %v1058_v20, %v1036_v8  ;;  %v1090_v26 = vrot.slane %v1071_v22, 4 }
 0x3dc   :  { %v1054_v48 = vrot.slane %v1053_v23, 2  ;;  %v1085_v27 = vadd.f32 %v1084_v24, %v1070_v18 }
 0x3dd   :  { %v1060_v28 = vrot.slane %v1059_v25, 2  ;;  %v1091_v29 = vadd.f32 %v1090_v26, %v1071_v22 }
 0x3de   :  { %v1055_v30 = vadd.f32 %v1054_v48, %v1053_v23  ;;  %v1086_v31 = vrot.slane %v1085_v27, 2 }
 0x3df   :  { %v1061_v32 = vadd.f32 %v1060_v28, %v1059_v25  ;;  %v1092_v33 = vrot.slane %v1091_v29, 2 }
 0x3e0   :  { %v1056_v34 = vrot.slane %v1055_v30, 1  ;;  %v1087_v35 = vadd.f32 %v1086_v31, %v1085_v27 }
 0x3e1   :  { %v1062_v36 = vrot.slane %v1061_v32, 1  ;;  %v1093_v37 = vadd.f32 %v1092_v33, %v1091_v29 }
 0x3e2   :  { %v1057_v38 = vadd.f32 %v1056_v34, %v1055_v30  ;;  %v1088_v39 = vrot.slane %v1087_v35, 1 }
 0x3e3   :  { %v1063_v40 = vadd.f32 %v1062_v36, %v1061_v32  ;;  %v1094_v41 = vrot.slane %v1093_v37, 1 }
 0x3e4   :  { %v1066_v42 = vmul.f32 0.125, %v1057_v38  ;;  %v1089_v43 = vadd.f32 %v1088_v39, %v1087_v35 }
 0x3e5   :  { %v1067_v44 = vmul.f32 0.125, %v1063_v40  ;;  %v1095_v46 = vadd.f32 %v1094_v41, %v1093_v37  ;;  %v1257_v41 = vld [vmem:[#allocation14 + $0x48] sm:$0xff] }
 0x3e6   :  { %v1098_v49 = vmul.f32 0.125, %v1089_v43  ;;  %v1102_v50 = vmul.f32 %v1066_v42, %v1066_v42 }
 0x3e7   :  { %v1099_v51 = vmul.f32 0.125, %v1095_v46  ;;  %v1103_v52 = vmul.f32 %v1067_v44, %v1067_v44 }
 0x3e8   :  { %v1106_v53 = vsub.f32 %v1098_v49, %v1102_v50  ;;  %v1261_v49 = vld [vmem:[#allocation14 + $0x68] sm:$0xff]  ;;  %v1258_v50 = vld [vmem:[#allocation14 + $0x50] sm:$0xff] }
 0x3e9   :  { %v1107_v54 = vsub.f32 %v1099_v51, %v1103_v52  ;;  %v1262_v51 = vld [vmem:[#allocation14 + $0x70] sm:$0xff] }
 0x3ea   :  { %v1111_v55 = vadd.f32 0.8, %v1106_v53 }
 0x3eb   :  { %v1112_v56 = vadd.f32 0.8, %v1107_v54 }
 0x3ec   :  { %5419 = vrsqrt.f32 %v1111_v55 }
 0x3ed   :  { %5421 = vrsqrt.f32 %v1112_v56 }
 0x3f6   :  { %v5420_v57 = vpop.eup %5419 }
 0x3f7   :  { %v5422_v59 = vpop.eup %5421 }
 0x3f8   :  { %v1122_v60 = vcombine.low %v5420_v57, %v5422_v59  ;;  %v1265_v59 = vld [vmem:[#allocation14 + $0x88] sm:$0xff] }
 0x3fa   :  { %v1136_v1 = vrot.slane %v1122_v60, %v5929_v58  ;;  %v4631_v60 = vcombine.high %v1257_v41, %v1261_v49 }
 0x3fc   :  { %v1137_v2 = vcombine.low %v1129_v0, %v1136_v1  ;;  %v4633_v0 = vcombine.high %v1258_v50, %v1262_v51  ;;  %v1269_v1 = vld [vmem:[#allocation14 + $0xa8] sm:$0xff] }
 0x3fd   :  { %v4638_v12 = vcombine.low %v1265_v59, %v1269_v1 }
 0x3fe   :  { %v1144_v11 = vrot.slane %v1137_v2, %v5929_v58  ;;  %v1266_v2 = vld [vmem:[#allocation14 + $0x90] sm:$0xff] }
 0x400   :  { %v1146_v17 = vmul.f32 %v1144_v11, %v1108_v4  ;;  %v1270_v4 = vld [vmem:[#allocation14 + $0xb0] sm:$0xff]  ;;  %v4630_v11 = vcombine.low %v1257_v41, %v1261_v49 }
 0x401   :  { %v4640_v14 = vcombine.low %v1266_v2, %v1270_v4  ;;  %v1306_v41 = vld [vmem:[#allocation14 + $0x1d0] sm:$0xff] }
 0x402   :  { %v1152_v18 = vrot.slane %v1146_v17, %v5921_v7  ;;  %v1156_v19 = vrot.slane %v1146_v17, %v5924_v9  ;;  %v1160_v20 = vrot.slane %v1146_v17, %v5989_v62  ;;  %v1164_v22 = vrot.slane %v1146_v17, %v5992_v63 }
 0x403   :  { %v4632_v17 = vcombine.low %v1258_v50, %v1262_v51  ;;  %v1313_v50 = vld [vmem:[#allocation14 + $0x208] sm:$0xff] }
 0x404   :  { %v1169_v61 = vmul.f32 %v1152_v18, %v5980_v45  ;;  %v1170_v23 = vmul.f32 %v1156_v19, %v5982_v47  ;;  %v1171_v24 = vmul.f32 %v1160_v20, %v1066_v42  ;;  %v1172_v25 = vmul.f32 %v1164_v22, %v1067_v44  ;;  %v1147_v45 = vld [vmem:[%s6288_s10] sm:$0xf]  ;;  %v1317_v51 = vld [vmem:[#allocation14 + $0x228] sm:$0xff] }
 0x405   :  { %v1206_v26 = vmul.f32 %v1164_v22, %v1036_v8  ;;  %v1204_v48 = vmul.f32 %v1156_v19, %v5954_v10  ;;  %v1203_v27 = vmul.f32 %v1152_v18, %v5952_v5  ;;  %v1205_v28 = vmul.f32 %v1160_v20, %v5998_v3  ;;  %v1273_v20 = vld [vmem:[#allocation14 + $0xc8] sm:$0xff] }
 0x406   :  { %v1177_v29 = vcombine.low %v1169_v61, %v1170_v23  ;;  %v1178_v30 = vcombine.low %v1171_v24, %v1172_v25  ;;  %v4639_v18 = vcombine.high %v1265_v59, %v1269_v1  ;;  %v4641_v19 = vcombine.high %v1266_v2, %v1270_v4  ;;  %v1277_v22 = vld [vmem:[#allocation14 + $0xe8] sm:$0xff]  ;;  %v1274_v61 = vld [vmem:[#allocation14 + $0xd0] sm:$0xff] }
 0x407   :  { %v1278_v23 = vld [vmem:[#allocation14 + $0xf0] sm:$0xff]  ;;  %v4647_v16 = vcombine.high %v1273_v20, %v1277_v22  ;;  %v1321_v2 = vld [vmem:[#allocation14 + $0x248] sm:$0xff] }
 0x408   :  { %v1185_v31 = vrot.slane %v1177_v29, %v5929_v58  ;;  %v1192_v32 = vrot.slane %v1178_v30, %v5929_v58  ;;  %v4649_v21 = vcombine.high %v1274_v61, %v1278_v23  ;;  %v1282_v24 = vld [vmem:[#allocation14 + $0x110] sm:$0xff]  ;;  %v1289_v29 = vld [vmem:[#allocation14 + $0x148] sm:$0xff] }
 0x409   :  { %v1286_v25 = vld [vmem:[#allocation14 + $0x130] sm:$0xff]  ;;  %v1293_v30 = vld [vmem:[#allocation14 + $0x168] sm:$0xff] }
 0x40a   :  { %v1193_v33 = vcombine.low %v1185_v31, %v1192_v32  ;;  %v1290_v31 = vld [vmem:[#allocation14 + $0x150] sm:$0xff]  ;;  %v1325_v4 = vld [vmem:[#allocation14 + $0x268] sm:$0xff] }
 0x40b   :  { %v1294_v32 = vld [vmem:[#allocation14 + $0x170] sm:$0xff] }
 0x40c   :  { %v1200_v47 = vrot.slane %v1193_v33, %v5929_v58 }
 0x40e   :  { %v1202_v8 = vsub.f32 %v1147_v45, %v1200_v47  ;;  %v4656_v45 = vcombine.low %v1282_v24, %v1286_v25  ;;  %v4663_v47 = vcombine.high %v1289_v29, %v1293_v30 }
 0x410   :  { %v1223_v10 = vrot.slane %v1202_v8, %v5992_v63  ;;  %v1215_v5 = vrot.slane %v1202_v8, %v5924_v9  ;;  %v1211_v3 = vrot.slane %v1202_v8, %v5921_v7  ;;  %v1219_v34 = vrot.slane %v1202_v8, %v5989_v62 }
 0x411   :  { %v4665_v8 = vcombine.high %v1290_v31, %v1294_v32 }
 0x412   :  { %v1231_v35 = vadd.f32 %v1223_v10, %v1206_v26  ;;  %v1229_v36 = vadd.f32 %v1215_v5, %v1204_v48  ;;  %v1228_v37 = vadd.f32 %v1211_v3, %v1203_v27  ;;  %v1230_v38 = vadd.f32 %v1219_v34, %v1205_v28  ;;  %v1297_v10 = vld [vmem:[#allocation14 + $0x188] sm:$0xff]  ;;  %v1298_v3 = vld [vmem:[#allocation14 + $0x190] sm:$0xff] }
 0x413   :  { %v4646_v26 = vcombine.low %v1273_v20, %v1277_v22  ;;  %v4648_v48 = vcombine.low %v1274_v61, %v1278_v23  ;;  %v4657_v28 = vcombine.high %v1282_v24, %v1286_v25  ;;  %v1301_v5 = vld [vmem:[#allocation14 + $0x1a8] sm:$0xff]  ;;  %v1302_v34 = vld [vmem:[#allocation14 + $0x1b0] sm:$0xff]  ;;  %v4695_v20 = vcombine.high %v1321_v2, %v1325_v4 }
 0x414   :  { %vm1233_vm4 = vcmp.ge.f32.partialorder %v1229_v36, 0.0  ;;  %v1237_v39 = vmul.f32 0.2, %v1229_v36  ;;  %vm1235_vm5 = vcmp.ge.f32.partialorder %v1231_v35, 0.0  ;;  %v1239_v40 = vmul.f32 0.2, %v1231_v35 }
 0x415   :  { %vm1232_vm6 = vcmp.ge.f32.partialorder %v1228_v37, 0.0  ;;  %v1236_v42 = vmul.f32 0.2, %v1228_v37  ;;  %vm1234_vm7 = vcmp.ge.f32.partialorder %v1230_v38, 0.0  ;;  %v1238_v43 = vmul.f32 0.2, %v1230_v38 }
 0x416   :  { %v1241_v44 = vsel %vm1233_vm4, %v1229_v36, %v1237_v39  ;;  %v1243_v46 = vsel %vm1235_vm5, %v1231_v35, %v1239_v40  ;;  %v4662_v35 = vcombine.low %v1289_v29, %v1293_v30  ;;  %v4664_v36 = vcombine.low %v1290_v31, %v1294_v32  ;;  %v1305_v39 = vld [vmem:[#allocation14 + $0x1c8] sm:$0xff] }
 0x417   :  { %v6029_v52 = vpack.c.bf16 %v1241_v44, %v1241_v44  ;;  %v6031_v53 = vpack.c.bf16 %v1243_v46, %v1243_v46  ;;  %v1240_v54 = vsel %vm1232_vm6, %v1228_v37, %v1236_v42  ;;  %v1242_v55 = vsel %vm1234_vm7, %v1230_v38, %v1238_v43  ;;  %v1309_v40 = vld [vmem:[#allocation14 + $0x1e8] sm:$0xff]  ;;  %v1310_v42 = vld [vmem:[#allocation14 + $0x1f0] sm:$0xff] }
 0x418   :  { %v6033_v56 = vpack.c.bf16 %v1240_v54, %v1240_v54  ;;  %v6035_v57 = vpack.c.bf16 %v1242_v55, %v1242_v55  ;;  %v4671_v37 = vcombine.high %v1297_v10, %v1301_v5  ;;  %v4673_v38 = vcombine.high %v1298_v3, %v1302_v34  ;;  %v1314_v54 = vld [vmem:[#allocation14 + $0x210] sm:$0xff]  ;;  %v1329_v61 = vld [vmem:[#allocation14 + $0x288] sm:$0xff] }
 0x419   :  { %2858 = vmatprep.mubr.bf16.mxu1 %v6029_v52  ;;  %2899 = vmatprep.mubr.bf16.mxu0 %v6031_v53  ;;  %v4670_v43 = vcombine.low %v1297_v10, %v1301_v5  ;;  %v4672_v44 = vcombine.low %v1298_v3, %v1302_v34  ;;  %v4679_v46 = vcombine.high %v1305_v39, %v1309_v40  ;;  %v1318_v55 = vld [vmem:[#allocation14 + $0x230] sm:$0xff]  ;;  %v1333_v23 = vld [vmem:[#allocation14 + $0x2a8] sm:$0xff] }
 0x41a   :  { %2859 = vmatmul.mubr.bf16.vlgmr.msra.gmra.mrb[12].mxu1 %v6033_v56  ;;  %2900 = vmatmul.mubr.bf16.vlgmr.msra.gmra.mrb[4].mxu0 %v6035_v57  ;;  %v4681_v49 = vcombine.high %v1306_v41, %v1310_v42  ;;  %v4678_v59 = vcombine.low %v1305_v39, %v1309_v40  ;;  %v4689_v1 = vcombine.high %v1314_v54, %v1318_v55  ;;  %v1337_v24 = vld [vmem:[#allocation14 + $0x2c8] sm:$0xff] }
 0x41b   :  { %2909 = vmatpush1.bf16.msra.mxu1 %v4622_v15  ;;  %2991 = vmatpush1.bf16.msra.mxu0 %v4624_v13  ;;  %v1281_v15 = vld [vmem:[#allocation14 + $0x108] sm:$0xff] }
 0x41c   :  { %2940 = vmatprep.mubr.bf16.mxu1 %v6029_v52  ;;  %3022 = vmatprep.mubr.bf16.mxu0 %v6029_v52  ;;  %v1285_v13 = vld [vmem:[#allocation14 + $0x128] sm:$0xff] }
 0x41d   :  { %2910 = vmatprep.subr.bf16.mxu1 %v4631_v60  ;;  %2992 = vmatprep.subr.bf16.mxu0 %v4633_v0  ;;  %v4655_v27 = vcombine.high %v1281_v15, %v1285_v13  ;;  %v4654_v33 = vcombine.low %v1281_v15, %v1285_v13  ;;  %v4680_v60 = vcombine.low %v1306_v41, %v1310_v42  ;;  %v1341_v25 = vld [vmem:[#allocation14 + $0x2e8] sm:$0xff] }
 0x41e   :  { %v4687_v0 = vcombine.high %v1313_v50, %v1317_v51  ;;  %v4703_v15 = vcombine.high %v1329_v61, %v1333_v23  ;;  %v4711_v29 = vcombine.high %v1337_v24, %v1341_v25  ;;  %v1345_v31 = vld [vmem:[#allocation14 + $0x308] sm:$0xff] }
 0x41f   :  { %2911 = vmatpush1.bf16.msra.mxu1 %v4630_v11  ;;  %2993 = vmatpush1.bf16.msra.mxu0 %v4632_v17  ;;  %v1322_v11 = vld [vmem:[#allocation14 + $0x250] sm:$0xff]  ;;  %v1349_v32 = vld [vmem:[#allocation14 + $0x328] sm:$0xff] }
 0x420   :  { %2912 = vmatprep.subr.bf16.mxu1 %v4639_v18  ;;  %2994 = vmatprep.subr.bf16.mxu0 %v4641_v19  ;;  %v1326_v17 = vld [vmem:[#allocation14 + $0x270] sm:$0xff]  ;;  %v4686_v18 = vcombine.low %v1313_v50, %v1317_v51  ;;  %v4688_v19 = vcombine.low %v1314_v54, %v1318_v55  ;;  %v4719_v10 = vcombine.high %v1345_v31, %v1349_v32  ;;  %v1353_v3 = vld [vmem:[#allocation14 + $0x348] sm:$0xff] }
 0x421   :  { %v4697_v22 = vcombine.high %v1322_v11, %v1326_v17  ;;  %v1357_v34 = vld [vmem:[#allocation14 + $0x368] sm:$0xff] }
 0x422   :  { %v4727_v39 = vcombine.high %v1353_v3, %v1357_v34  ;;  %v1361_v41 = vld [vmem:[#allocation14 + $0x388] sm:$0xff] }
 0x423   :  { %2913 = vmatpush1.bf16.msra.mxu1 %v4638_v12  ;;  %2995 = vmatpush1.bf16.msra.mxu0 %v4640_v14  ;;  %v1330_v12 = vld [vmem:[#allocation14 + $0x290] sm:$0xff]  ;;  %v1365_v42 = vld [vmem:[#allocation14 + $0x3a8] sm:$0xff] }
 0x424   :  { %2914 = vmatprep.subr.bf16.mxu1 %v4647_v16  ;;  %2996 = vmatprep.subr.bf16.mxu0 %v4649_v21  ;;  %v1334_v14 = vld [vmem:[#allocation14 + $0x2b0] sm:$0xff]  ;;  %v4694_v16 = vcombine.low %v1321_v2, %v1325_v4  ;;  %v4696_v21 = vcombine.low %v1322_v11, %v1326_v17  ;;  %v4735_v50 = vcombine.high %v1361_v41, %v1365_v42  ;;  %v1369_v54 = vld [vmem:[#allocation14 + $0x3c8] sm:$0xff] }
 0x425   :  { %v4705_v13 = vcombine.high %v1330_v12, %v1334_v14  ;;  %v1373_v55 = vld [vmem:[#allocation14 + $0x3e8] sm:$0xff] }
 0x426   :  { %v4743_v2 = vcombine.high %v1369_v54, %v1373_v55  ;;  %v1377_v11 = vld [vmem:[#allocation14 + $0x408] sm:$0xff] }
 0x427   :  { %2915 = vmatpush1.bf16.msra.mxu1 %v4646_v26  ;;  %2997 = vmatpush1.bf16.msra.mxu0 %v4648_v48  ;;  %v1338_v26 = vld [vmem:[#allocation14 + $0x2d0] sm:$0xff]  ;;  %v1381_v17 = vld [vmem:[#allocation14 + $0x428] sm:$0xff] }
 0x428   :  { %2916 = vmatprep.subr.bf16.mxu1 %v4655_v27  ;;  %2998 = vmatprep.subr.bf16.mxu0 %v4657_v28  ;;  %v1342_v48 = vld [vmem:[#allocation14 + $0x2f0] sm:$0xff]  ;;  %v4702_v27 = vcombine.low %v1329_v61, %v1333_v23  ;;  %v4704_v28 = vcombine.low %v1330_v12, %v1334_v14  ;;  %v4751_v61 = vcombine.high %v1377_v11, %v1381_v17  ;;  %v1385_v12 = vld [vmem:[#allocation14 + $0x448] sm:$0xff] }
 0x429   :  { %v4713_v30 = vcombine.high %v1338_v26, %v1342_v48  ;;  %v1389_v14 = vld [vmem:[#allocation14 + $0x468] sm:$0xff] }
 0x42b   :  { %2917 = vmatpush1.bf16.msra.mxu1 %v4654_v33  ;;  %2999 = vmatpush1.bf16.msra.mxu0 %v4656_v45  ;;  %v1346_v33 = vld [vmem:[#allocation14 + $0x310] sm:$0xff] }
 0x42c   :  { %2918 = vmatprep.subr.bf16.mxu1 %v4663_v47  ;;  %3000 = vmatprep.subr.bf16.mxu0 %v4665_v8  ;;  %v1350_v45 = vld [vmem:[#allocation14 + $0x330] sm:$0xff]  ;;  %v4710_v47 = vcombine.low %v1337_v24, %v1341_v25  ;;  %v4712_v8 = vcombine.low %v1338_v26, %v1342_v48  ;;  %v4759_v24 = vcombine.high %v1385_v12, %v1389_v14  ;;  %v1393_v26 = vld [vmem:[#allocation14 + $0x488] sm:$0xff] }
 0x42d   :  { %v4721_v5 = vcombine.high %v1346_v33, %v1350_v45  ;;  %v1397_v48 = vld [vmem:[#allocation14 + $0x4a8] sm:$0xff] }
 0x42f   :  { %2919 = vmatpush1.bf16.msra.mxu1 %v4662_v35  ;;  %3001 = vmatpush1.bf16.msra.mxu0 %v4664_v36  ;;  %v1354_v35 = vld [vmem:[#allocation14 + $0x350] sm:$0xff] }
 0x430   :  { %2920 = vmatprep.subr.bf16.mxu1 %v4671_v37  ;;  %3002 = vmatprep.subr.bf16.mxu0 %v4673_v38  ;;  %v1358_v36 = vld [vmem:[#allocation14 + $0x370] sm:$0xff]  ;;  %v4718_v37 = vcombine.low %v1345_v31, %v1349_v32  ;;  %v4720_v38 = vcombine.low %v1346_v33, %v1350_v45  ;;  %v4767_v31 = vcombine.high %v1393_v26, %v1397_v48  ;;  %v1401_v33 = vld [vmem:[#allocation14 + $0x4c8] sm:$0xff] }
 0x431   :  { %v4729_v40 = vcombine.high %v1354_v35, %v1358_v36  ;;  %v1405_v45 = vld [vmem:[#allocation14 + $0x4e8] sm:$0xff] }
 0x433   :  { %2921 = vmatpush1.bf16.msra.mxu1 %v4670_v43  ;;  %3003 = vmatpush1.bf16.msra.mxu0 %v4672_v44  ;;  %v1362_v43 = vld [vmem:[#allocation14 + $0x390] sm:$0xff] }
 0x434   :  { %2922 = vmatprep.subr.bf16.mxu1 %v4679_v46  ;;  %3004 = vmatprep.subr.bf16.mxu0 %v4681_v49  ;;  %v1366_v44 = vld [vmem:[#allocation14 + $0x3b0] sm:$0xff]  ;;  %v4726_v46 = vcombine.low %v1353_v3, %v1357_v34  ;;  %v4728_v49 = vcombine.low %v1354_v35, %v1358_v36  ;;  %v4775_v3 = vcombine.high %v1401_v33, %v1405_v45  ;;  %v1409_v35 = vld [vmem:[#allocation14 + $0x508] sm:$0xff] }
 0x435   :  { %v4737_v51 = vcombine.high %v1362_v43, %v1366_v44  ;;  %v1413_v36 = vld [vmem:[#allocation14 + $0x528] sm:$0xff] }
 0x437   :  { %2923 = vmatpush1.bf16.msra.mxu1 %v4678_v59  ;;  %3005 = vmatpush1.bf16.msra.mxu0 %v4680_v60  ;;  %v1370_v59 = vld [vmem:[#allocation14 + $0x3d0] sm:$0xff] }
 0x438   :  { %2924 = vmatprep.subr.bf16.mxu1 %v4687_v0  ;;  %3006 = vmatprep.subr.bf16.mxu0 %v4689_v1  ;;  %v1374_v60 = vld [vmem:[#allocation14 + $0x3f0] sm:$0xff]  ;;  %v4734_v0 = vcombine.low %v1361_v41, %v1365_v42  ;;  %v4736_v1 = vcombine.low %v1362_v43, %v1366_v44  ;;  %v4783_v41 = vcombine.high %v1409_v35, %v1413_v36  ;;  %v1417_v43 = vld [vmem:[#allocation14 + $0x548] sm:$0xff] }
 0x439   :  { %v4745_v4 = vcombine.high %v1370_v59, %v1374_v60  ;;  %v1421_v44 = vld [vmem:[#allocation14 + $0x568] sm:$0xff] }
 0x43b   :  { %2925 = vmatpush1.bf16.msra.mxu1 %v4686_v18  ;;  %3007 = vmatpush1.bf16.msra.mxu0 %v4688_v19  ;;  %v1378_v18 = vld [vmem:[#allocation14 + $0x410] sm:$0xff] }
 0x43c   :  { %2926 = vmatprep.subr.bf16.mxu1 %v4695_v20  ;;  %3008 = vmatprep.subr.bf16.mxu0 %v4697_v22  ;;  %v1382_v19 = vld [vmem:[#allocation14 + $0x430] sm:$0xff]  ;;  %v4742_v20 = vcombine.low %v1369_v54, %v1373_v55  ;;  %v4744_v22 = vcombine.low %v1370_v59, %v1374_v60  ;;  %v4791_v54 = vcombine.high %v1417_v43, %v1421_v44  ;;  %v1425_v59 = vld [vmem:[#allocation14 + $0x588] sm:$0xff] }
 0x43d   :  { %v4753_v23 = vcombine.high %v1378_v18, %v1382_v19  ;;  %v1429_v60 = vld [vmem:[#allocation14 + $0x5a8] sm:$0xff] }
 0x43f   :  { %2927 = vmatpush1.bf16.msra.mxu1 %v4694_v16  ;;  %3009 = vmatpush1.bf16.msra.mxu0 %v4696_v21  ;;  %v1386_v16 = vld [vmem:[#allocation14 + $0x450] sm:$0xff] }
 0x440   :  { %2928 = vmatprep.subr.bf16.mxu1 %v4703_v15  ;;  %3010 = vmatprep.subr.bf16.mxu0 %v4705_v13  ;;  %v1390_v21 = vld [vmem:[#allocation14 + $0x470] sm:$0xff]  ;;  %v4750_v15 = vcombine.low %v1377_v11, %v1381_v17  ;;  %v4752_v13 = vcombine.low %v1378_v18, %v1382_v19  ;;  %v4799_v11 = vcombine.high %v1425_v59, %v1429_v60  ;;  %v1433_v18 = vld [vmem:[#allocation14 + $0x5c8] sm:$0xff] }
 0x441   :  { %v4761_v25 = vcombine.high %v1386_v16, %v1390_v21  ;;  %v1437_v19 = vld [vmem:[#allocation14 + $0x5e8] sm:$0xff] }
 0x443   :  { %2929 = vmatpush1.bf16.msra.mxu1 %v4702_v27  ;;  %3011 = vmatpush1.bf16.msra.mxu0 %v4704_v28  ;;  %v1394_v27 = vld [vmem:[#allocation14 + $0x490] sm:$0xff] }
 0x444   :  { %2930 = vmatprep.subr.bf16.mxu1 %v4711_v29  ;;  %3012 = vmatprep.subr.bf16.mxu0 %v4713_v30  ;;  %v1398_v28 = vld [vmem:[#allocation14 + $0x4b0] sm:$0xff]  ;;  %v4758_v29 = vcombine.low %v1385_v12, %v1389_v14  ;;  %v4760_v30 = vcombine.low %v1386_v16, %v1390_v21  ;;  %v4807_v12 = vcombine.high %v1433_v18, %v1437_v19  ;;  %v1441_v16 = vld [vmem:[#allocation14 + $0x608] sm:$0xff] }
 0x445   :  { %v4769_v32 = vcombine.high %v1394_v27, %v1398_v28  ;;  %v1445_v21 = vld [vmem:[#allocation14 + $0x628] sm:$0xff] }
 0x447   :  { %2931 = vmatpush1.bf16.msra.mxu1 %v4710_v47  ;;  %3013 = vmatpush1.bf16.msra.mxu0 %v4712_v8  ;;  %v1402_v47 = vld [vmem:[#allocation14 + $0x4d0] sm:$0xff] }
 0x448   :  { %2932 = vmatprep.subr.bf16.mxu1 %v4719_v10  ;;  %3014 = vmatprep.subr.bf16.mxu0 %v4721_v5  ;;  %v1406_v8 = vld [vmem:[#allocation14 + $0x4f0] sm:$0xff]  ;;  %v4766_v10 = vcombine.low %v1393_v26, %v1397_v48  ;;  %v4768_v5 = vcombine.low %v1394_v27, %v1398_v28  ;;  %v4815_v26 = vcombine.high %v1441_v16, %v1445_v21  ;;  %v1449_v27 = vld [vmem:[#allocation14 + $0x648] sm:$0xff] }
 0x449   :  { %v4777_v34 = vcombine.high %v1402_v47, %v1406_v8  ;;  %v1453_v28 = vld [vmem:[#allocation14 + $0x668] sm:$0xff] }
 0x44b   :  { %2933 = vmatpush1.bf16.msra.mxu1 %v4718_v37  ;;  %3015 = vmatpush1.bf16.msra.mxu0 %v4720_v38  ;;  %v1410_v37 = vld [vmem:[#allocation14 + $0x510] sm:$0xff] }
 0x44c   :  { %2934 = vmatprep.subr.bf16.mxu1 %v4727_v39  ;;  %3016 = vmatprep.subr.bf16.mxu0 %v4729_v40  ;;  %v1414_v38 = vld [vmem:[#allocation14 + $0x530] sm:$0xff]  ;;  %v4774_v39 = vcombine.low %v1401_v33, %v1405_v45  ;;  %v4776_v40 = vcombine.low %v1402_v47, %v1406_v8  ;;  %v4823_v33 = vcombine.high %v1449_v27, %v1453_v28  ;;  %v1457_v47 = vld [vmem:[#allocation14 + $0x688] sm:$0xff] }
 0x44d   :  { %v4785_v42 = vcombine.high %v1410_v37, %v1414_v38  ;;  %v1461_v8 = vld [vmem:[#allocation14 + $0x6a8] sm:$0xff] }
 0x44f   :  { %2935 = vmatpush1.bf16.msra.mxu1 %v4726_v46  ;;  %3017 = vmatpush1.bf16.msra.mxu0 %v4728_v49  ;;  %v1418_v46 = vld [vmem:[#allocation14 + $0x550] sm:$0xff] }
 0x450   :  { %2936 = vmatprep.subr.bf16.mxu1 %v4735_v50  ;;  %3018 = vmatprep.subr.bf16.mxu0 %v4737_v51  ;;  %v1422_v49 = vld [vmem:[#allocation14 + $0x570] sm:$0xff]  ;;  %v4782_v50 = vcombine.low %v1409_v35, %v1413_v36  ;;  %v4784_v51 = vcombine.low %v1410_v37, %v1414_v38  ;;  %v4831_v35 = vcombine.high %v1457_v47, %v1461_v8  ;;  %v1465_v37 = vld [vmem:[#allocation14 + $0x6c8] sm:$0xff] }
 0x451   :  { %v4793_v55 = vcombine.high %v1418_v46, %v1422_v49  ;;  %v1469_v38 = vld [vmem:[#allocation14 + $0x6e8] sm:$0xff] }
 0x453   :  { %2937 = vmatpush1.bf16.msra.mxu1 %v4734_v0  ;;  %3019 = vmatpush1.bf16.msra.mxu0 %v4736_v1  ;;  %v1426_v0 = vld [vmem:[#allocation14 + $0x590] sm:$0xff] }
 0x454   :  { %2938 = vmatprep.subr.bf16.mxu1 %v4743_v2  ;;  %3020 = vmatprep.subr.bf16.mxu0 %v4745_v4  ;;  %v1430_v1 = vld [vmem:[#allocation14 + $0x5b0] sm:$0xff]  ;;  %v4790_v2 = vcombine.low %v1417_v43, %v1421_v44  ;;  %v4792_v4 = vcombine.low %v1418_v46, %v1422_v49  ;;  %v4839_v43 = vcombine.high %v1465_v37, %v1469_v38  ;;  %v1473_v46 = vld [vmem:[#allocation14 + $0x708] sm:$0xff] }
 0x455   :  { %v4801_v17 = vcombine.high %v1426_v0, %v1430_v1  ;;  %v1477_v49 = vld [vmem:[#allocation14 + $0x728] sm:$0xff] }
 0x457   :  { %2939 = vmatpush1.bf16.msra.mxu1 %v4742_v20  ;;  %3021 = vmatpush1.bf16.msra.mxu0 %v4744_v22  ;;  %v1434_v20 = vld [vmem:[#allocation14 + $0x5d0] sm:$0xff] }
 0x458   :  { %2949 = vmatprep.subr.bf16.mxu1 %v4751_v61  ;;  %3031 = vmatprep.subr.bf16.mxu0 %v4753_v23  ;;  %v1438_v22 = vld [vmem:[#allocation14 + $0x5f0] sm:$0xff]  ;;  %v4798_v61 = vcombine.low %v1425_v59, %v1429_v60  ;;  %v4800_v23 = vcombine.low %v1426_v0, %v1430_v1  ;;  %v4847_v59 = vcombine.high %v1473_v46, %v1477_v49  ;;  %v1481_v0 = vld [vmem:[#allocation14 + $0x748] sm:$0xff] }
 0x459   :  { %v4809_v14 = vcombine.high %v1434_v20, %v1438_v22  ;;  %v1485_v1 = vld [vmem:[#allocation14 + $0x768] sm:$0xff] }
 0x45a   :  { %2941 = vmatmul.mubr.bf16.vlgmr.msra.gmra.mrb[16].mxu1 %v6033_v56  ;;  %3023 = vmatmul.mubr.bf16.vlgmr.msra.gmra.mrb[8].mxu0 %v6033_v56 }
 0x45b   :  { %2950 = vmatpush1.bf16.msra.mxu1 %v4750_v15  ;;  %2981 = vmatprep.mubr.bf16.mxu1 %v6031_v53  ;;  %v1442_v15 = vld [vmem:[#allocation14 + $0x610] sm:$0xff] }
 0x45c   :  { %3032 = vmatpush1.bf16.msra.mxu0 %v4752_v13  ;;  %3063 = vmatprep.mubr.bf16.mxu0 %v6031_v53  ;;  %v1446_v13 = vld [vmem:[#allocation14 + $0x630] sm:$0xff] }
 0x45d   :  { %2951 = vmatprep.subr.bf16.mxu1 %v4759_v24  ;;  %3033 = vmatprep.subr.bf16.mxu0 %v4761_v25  ;;  %v4806_v24 = vcombine.low %v1433_v18, %v1437_v19  ;;  %v4808_v25 = vcombine.low %v1434_v20, %v1438_v22  ;;  %v4817_v48 = vcombine.high %v1442_v15, %v1446_v13  ;;  %v1489_v20 = vld [vmem:[#allocation14 + $0x788] sm:$0xff] }
 0x45e   :  { %v4855_v18 = vcombine.high %v1481_v0, %v1485_v1  ;;  %v1493_v22 = vld [vmem:[#allocation14 + $0x7a8] sm:$0xff] }
 0x45f   :  { %2952 = vmatpush1.bf16.msra.mxu1 %v4758_v29  ;;  %v1450_v29 = vld [vmem:[#allocation14 + $0x650] sm:$0xff] }
 0x460   :  { %3034 = vmatpush1.bf16.msra.mxu0 %v4760_v30  ;;  %2953 = vmatprep.subr.bf16.mxu1 %v4767_v31  ;;  %v1454_v30 = vld [vmem:[#allocation14 + $0x670] sm:$0xff]  ;;  %v4814_v31 = vcombine.low %v1441_v16, %v1445_v21  ;;  %v4863_v16 = vcombine.high %v1489_v20, %v1493_v22 }
 0x461   :  { %3035 = vmatprep.subr.bf16.mxu0 %v4769_v32  ;;  %v4816_v32 = vcombine.low %v1442_v15, %v1446_v13  ;;  %v4825_v45 = vcombine.high %v1450_v29, %v1454_v30  ;;  %v1497_v15 = vld [vmem:[#allocation14 + $0x7c8] sm:$0xff] }
 0x462   :  { %v1501_v13 = vld [vmem:[#allocation14 + $0x7e8] sm:$0xff] }
 0x463   :  { %2954 = vmatpush1.bf16.msra.mxu1 %v4766_v10  ;;  %v1458_v10 = vld [vmem:[#allocation14 + $0x690] sm:$0xff] }
 0x464   :  { %3036 = vmatpush1.bf16.msra.mxu0 %v4768_v5  ;;  %2955 = vmatprep.subr.bf16.mxu1 %v4775_v3  ;;  %v1462_v5 = vld [vmem:[#allocation14 + $0x6b0] sm:$0xff]  ;;  %v4822_v3 = vcombine.low %v1449_v27, %v1453_v28  ;;  %v4871_v27 = vcombine.high %v1497_v15, %v1501_v13 }
 0x465   :  { %3037 = vmatprep.subr.bf16.mxu0 %v4777_v34  ;;  %v4824_v34 = vcombine.low %v1450_v29, %v1454_v30  ;;  %v4833_v36 = vcombine.high %v1458_v10, %v1462_v5  ;;  %v1251_v29 = vld [vmem:[#allocation14 + $0x18] sm:$0xff] }
 0x466   :  { %v1255_v30 = vld [vmem:[#allocation14 + $0x38] sm:$0xff] }
 0x467   :  { %2956 = vmatpush1.bf16.msra.mxu1 %v4774_v39  ;;  %v1466_v39 = vld [vmem:[#allocation14 + $0x6d0] sm:$0xff] }
 0x468   :  { %3038 = vmatpush1.bf16.msra.mxu0 %v4776_v40  ;;  %2957 = vmatprep.subr.bf16.mxu1 %v4783_v41  ;;  %v1470_v40 = vld [vmem:[#allocation14 + $0x6f0] sm:$0xff]  ;;  %v4830_v41 = vcombine.low %v1457_v47, %v1461_v8  ;;  %v1263_v47 = vld [vmem:[#allocation14 + $0x78] sm:$0xff]  ;;  %v4626_v8 = vcombine.low %v1251_v29, %v1255_v30 }
 0x469   :  { %3039 = vmatprep.subr.bf16.mxu0 %v4785_v42  ;;  %v4832_v42 = vcombine.low %v1458_v10, %v1462_v5  ;;  %v4841_v44 = vcombine.high %v1466_v39, %v1470_v40  ;;  %v1267_v5 = vld [vmem:[#allocation14 + $0x98] sm:$0xff] }
 0x46b   :  { %2958 = vmatpush1.bf16.msra.mxu1 %v4782_v50  ;;  %v1474_v50 = vld [vmem:[#allocation14 + $0x710] sm:$0xff] }
 0x46c   :  { %3040 = vmatpush1.bf16.msra.mxu0 %v4784_v51  ;;  %2959 = vmatprep.subr.bf16.mxu1 %v4791_v54  ;;  %v1478_v51 = vld [vmem:[#allocation14 + $0x730] sm:$0xff]  ;;  %v4838_v54 = vcombine.low %v1465_v37, %v1469_v38  ;;  %v1279_v37 = vld [vmem:[#allocation14 + $0xf8] sm:$0xff] }
 0x46d   :  { %3041 = vmatprep.subr.bf16.mxu0 %v4793_v55  ;;  %v4840_v55 = vcombine.low %v1466_v39, %v1470_v40  ;;  %v4849_v60 = vcombine.high %v1474_v50, %v1478_v51  ;;  %v1283_v40 = vld [vmem:[#allocation14 + $0x118] sm:$0xff] }
 0x46f   :  { %2960 = vmatpush1.bf16.msra.mxu1 %v4790_v2  ;;  %v1482_v2 = vld [vmem:[#allocation14 + $0x750] sm:$0xff] }
 0x470   :  { %3042 = vmatpush1.bf16.msra.mxu0 %v4792_v4  ;;  %2961 = vmatprep.subr.bf16.mxu1 %v4799_v11  ;;  %v1486_v4 = vld [vmem:[#allocation14 + $0x770] sm:$0xff]  ;;  %v4846_v11 = vcombine.low %v1473_v46, %v1477_v49  ;;  %v1295_v46 = vld [vmem:[#allocation14 + $0x178] sm:$0xff] }
 0x471   :  { %3043 = vmatprep.subr.bf16.mxu0 %v4801_v17  ;;  %v4848_v17 = vcombine.low %v1474_v50, %v1478_v51  ;;  %v4857_v19 = vcombine.high %v1482_v2, %v1486_v4  ;;  %v1299_v50 = vld [vmem:[#allocation14 + $0x198] sm:$0xff] }
 0x472   :  { %v1303_v51 = vld [vmem:[#allocation14 + $0x1b8] sm:$0xff] }
 0x473   :  { %2962 = vmatpush1.bf16.msra.mxu1 %v4798_v61  ;;  %v1490_v61 = vld [vmem:[#allocation14 + $0x790] sm:$0xff] }
 0x474   :  { %3044 = vmatpush1.bf16.msra.mxu0 %v4800_v23  ;;  %2963 = vmatprep.subr.bf16.mxu1 %v4807_v12  ;;  %v1494_v23 = vld [vmem:[#allocation14 + $0x7b0] sm:$0xff]  ;;  %v4854_v12 = vcombine.low %v1481_v0, %v1485_v1  ;;  %v4674_v0 = vcombine.low %v1299_v50, %v1303_v51 }
 0x475   :  { %3045 = vmatprep.subr.bf16.mxu0 %v4809_v14  ;;  %v4856_v14 = vcombine.low %v1482_v2, %v1486_v4  ;;  %v4865_v21 = vcombine.high %v1490_v61, %v1494_v23  ;;  %v1315_v2 = vld [vmem:[#allocation14 + $0x218] sm:$0xff] }
 0x476   :  { %v1319_v4 = vld [vmem:[#allocation14 + $0x238] sm:$0xff] }
 0x477   :  { %2964 = vmatpush1.bf16.msra.mxu1 %v4806_v24  ;;  %v1498_v24 = vld [vmem:[#allocation14 + $0x7d0] sm:$0xff] }
 0x478   :  { %3046 = vmatpush1.bf16.msra.mxu0 %v4808_v25  ;;  %2965 = vmatprep.subr.bf16.mxu1 %v4815_v26  ;;  %v1502_v25 = vld [vmem:[#allocation14 + $0x7f0] sm:$0xff]  ;;  %v4862_v26 = vcombine.low %v1489_v20, %v1493_v22  ;;  %v4690_v20 = vcombine.low %v1315_v2, %v1319_v4 }
 0x479   :  { %3047 = vmatprep.subr.bf16.mxu0 %v4817_v48  ;;  %v4864_v48 = vcombine.low %v1490_v61, %v1494_v23  ;;  %v4873_v28 = vcombine.high %v1498_v24, %v1502_v25  ;;  %v1331_v61 = vld [vmem:[#allocation14 + $0x298] sm:$0xff] }
 0x47a   :  { %v1335_v23 = vld [vmem:[#allocation14 + $0x2b8] sm:$0xff] }
 0x47b   :  { %2966 = vmatpush1.bf16.msra.mxu1 %v4814_v31  ;;  %v4870_v31 = vcombine.low %v1497_v15, %v1501_v13  ;;  %v4706_v15 = vcombine.low %v1331_v61, %v1335_v23 }
 0x47c   :  { %3048 = vmatpush1.bf16.msra.mxu0 %v4816_v32  ;;  %2967 = vmatprep.subr.bf16.mxu1 %v4823_v33  ;;  %v4872_v32 = vcombine.low %v1498_v24, %v1502_v25  ;;  %v4627_v33 = vcombine.high %v1251_v29, %v1255_v30  ;;  %v1347_v24 = vld [vmem:[#allocation14 + $0x318] sm:$0xff] }
 0x47d   :  { %3049 = vmatprep.subr.bf16.mxu0 %v4825_v45  ;;  %v1259_v45 = vld [vmem:[#allocation14 + $0x58] sm:$0xff] }
 0x47e   :  { %v4635_v10 = vcombine.high %v1259_v45, %v1263_v47  ;;  %v1351_v25 = vld [vmem:[#allocation14 + $0x338] sm:$0xff] }
 0x47f   :  { %2968 = vmatpush1.bf16.msra.mxu1 %v4822_v3  ;;  %v1271_v3 = vld [vmem:[#allocation14 + $0xb8] sm:$0xff]  ;;  %v4722_v29 = vcombine.low %v1347_v24, %v1351_v25 }
 0x480   :  { %3050 = vmatpush1.bf16.msra.mxu0 %v4824_v34  ;;  %2969 = vmatprep.subr.bf16.mxu1 %v4831_v35  ;;  %v4634_v34 = vcombine.low %v1259_v45, %v1263_v47  ;;  %v4643_v35 = vcombine.high %v1267_v5, %v1271_v3  ;;  %v4642_v38 = vcombine.low %v1267_v5, %v1271_v3  ;;  %v1371_v47 = vld [vmem:[#allocation14 + $0x3d8] sm:$0xff] }
 0x481   :  { %3051 = vmatprep.subr.bf16.mxu0 %v4833_v36  ;;  %v1275_v36 = vld [vmem:[#allocation14 + $0xd8] sm:$0xff] }
 0x482   :  { %v4651_v39 = vcombine.high %v1275_v36, %v1279_v37  ;;  %v1379_v3 = vld [vmem:[#allocation14 + $0x418] sm:$0xff] }
 0x483   :  { %2970 = vmatpush1.bf16.msra.mxu1 %v4830_v41  ;;  %v1287_v41 = vld [vmem:[#allocation14 + $0x138] sm:$0xff] }
 0x484   :  { %3052 = vmatpush1.bf16.msra.mxu0 %v4832_v42  ;;  %2971 = vmatprep.subr.bf16.mxu1 %v4839_v43  ;;  %v4650_v42 = vcombine.low %v1275_v36, %v1279_v37  ;;  %v4659_v43 = vcombine.high %v1283_v40, %v1287_v41  ;;  %v4658_v49 = vcombine.low %v1283_v40, %v1287_v41  ;;  %v1387_v37 = vld [vmem:[#allocation14 + $0x458] sm:$0xff] }
 0x485   :  { %3053 = vmatprep.subr.bf16.mxu0 %v4841_v44  ;;  %v1291_v44 = vld [vmem:[#allocation14 + $0x158] sm:$0xff] }
 0x486   :  { %v1395_v41 = vld [vmem:[#allocation14 + $0x498] sm:$0xff] }
 0x487   :  { %2972 = vmatpush1.bf16.msra.mxu1 %v4838_v54  ;;  %v4666_v54 = vcombine.low %v1291_v44, %v1295_v46 }
 0x488   :  { %3054 = vmatpush1.bf16.msra.mxu0 %v4840_v55  ;;  %2973 = vmatprep.subr.bf16.mxu1 %v4847_v59  ;;  %v4675_v55 = vcombine.high %v1299_v50, %v1303_v51  ;;  %v1307_v59 = vld [vmem:[#allocation14 + $0x1d8] sm:$0xff] }
 0x489   :  { %3055 = vmatprep.subr.bf16.mxu0 %v4849_v60  ;;  %v1311_v60 = vld [vmem:[#allocation14 + $0x1f8] sm:$0xff] }
 0x48a   :  { %v4683_v1 = vcombine.high %v1307_v59, %v1311_v60  ;;  %v1411_v51 = vld [vmem:[#allocation14 + $0x518] sm:$0xff] }
 0x48b   :  { %2974 = vmatpush1.bf16.msra.mxu1 %v4846_v11  ;;  %v4682_v11 = vcombine.low %v1307_v59, %v1311_v60  ;;  %v1419_v60 = vld [vmem:[#allocation14 + $0x558] sm:$0xff] }
 0x48c   :  { %3056 = vmatpush1.bf16.msra.mxu0 %v4848_v17  ;;  %2975 = vmatprep.subr.bf16.mxu1 %v4855_v18  ;;  %v4691_v17 = vcombine.high %v1315_v2, %v1319_v4  ;;  %v1323_v18 = vld [vmem:[#allocation14 + $0x258] sm:$0xff] }
 0x48d   :  { %3057 = vmatprep.subr.bf16.mxu0 %v4857_v19  ;;  %v1327_v19 = vld [vmem:[#allocation14 + $0x278] sm:$0xff] }
 0x48e   :  { %v4699_v22 = vcombine.high %v1323_v18, %v1327_v19  ;;  %v1427_v2 = vld [vmem:[#allocation14 + $0x598] sm:$0xff] }
 0x48f   :  { %2976 = vmatpush1.bf16.msra.mxu1 %v4854_v12  ;;  %v4698_v12 = vcombine.low %v1323_v18, %v1327_v19  ;;  %v1431_v4 = vld [vmem:[#allocation14 + $0x5b8] sm:$0xff] }
 0x490   :  { %3058 = vmatpush1.bf16.msra.mxu0 %v4856_v14  ;;  %2977 = vmatprep.subr.bf16.mxu1 %v4863_v16  ;;  %v4707_v14 = vcombine.high %v1331_v61, %v1335_v23  ;;  %v1339_v16 = vld [vmem:[#allocation14 + $0x2d8] sm:$0xff]  ;;  %v4803_v19 = vcombine.high %v1427_v2, %v1431_v4 }
 0x491   :  { %3059 = vmatprep.subr.bf16.mxu0 %v4865_v21  ;;  %v1343_v21 = vld [vmem:[#allocation14 + $0x2f8] sm:$0xff] }
 0x492   :  { %v4715_v13 = vcombine.high %v1339_v16, %v1343_v21  ;;  %v1435_v61 = vld [vmem:[#allocation14 + $0x5d8] sm:$0xff] }
 0x493   :  { %2978 = vmatpush1.bf16.msra.mxu1 %v4862_v26  ;;  %v4714_v26 = vcombine.low %v1339_v16, %v1343_v21  ;;  %v1439_v23 = vld [vmem:[#allocation14 + $0x5f8] sm:$0xff] }
 0x494   :  { %3060 = vmatpush1.bf16.msra.mxu0 %v4864_v48  ;;  %2979 = vmatprep.subr.bf16.mxu1 %v4871_v27  ;;  %v4723_v48 = vcombine.high %v1347_v24, %v1351_v25  ;;  %v1355_v27 = vld [vmem:[#allocation14 + $0x358] sm:$0xff]  ;;  %v4802_v24 = vcombine.low %v1427_v2, %v1431_v4 }
 0x495   :  { %3061 = vmatprep.subr.bf16.mxu0 %v4873_v28  ;;  %v1359_v28 = vld [vmem:[#allocation14 + $0x378] sm:$0xff] }
 0x496   :  { %v4731_v30 = vcombine.high %v1355_v27, %v1359_v28 }
 0x497   :  { %2980 = vmatpush1.bf16.msra.mxu1 %v4870_v31  ;;  %v1363_v31 = vld [vmem:[#allocation14 + $0x398] sm:$0xff] }
 0x498   :  { %3062 = vmatpush1.bf16.msra.mxu0 %v4872_v32  ;;  %3072 = vmatprep.subr.bf16.mxu1 %v4627_v33  ;;  %v1367_v32 = vld [vmem:[#allocation14 + $0x3b8] sm:$0xff]  ;;  %v4730_v33 = vcombine.low %v1355_v27, %v1359_v28  ;;  %v4811_v27 = vcombine.high %v1435_v61, %v1439_v23 }
 0x499   :  { %v4739_v45 = vcombine.high %v1363_v31, %v1367_v32 }
 0x49a   :  { %2982 = vmatmul.mubr.bf16.vlgmr.msra.gmra.mrb[16].mxu1 %v6035_v57 }
 0x49b   :  { %3064 = vmatmul.mubr.bf16.vlgmr.msra.gmra.mrb[8].mxu0 %v6035_v57  ;;  %3073 = vmatpush1.bf16.msra.mxu1 %v4626_v8  ;;  %v1375_v8 = vld [vmem:[#allocation14 + $0x3f8] sm:$0xff] }
 0x49c   :  { %3104 = vmatprep.mubr.bf16.mxu1 %v6029_v52  ;;  %3074 = vmatprep.subr.bf16.mxu1 %v4635_v10  ;;  %v4667_v52 = vcombine.high %v1291_v44, %v1295_v46  ;;  %v4738_v10 = vcombine.low %v1363_v31, %v1367_v32  ;;  %v4747_v5 = vcombine.high %v1371_v47, %v1375_v8  ;;  %v1403_v46 = vld [vmem:[#allocation14 + $0x4d8] sm:$0xff] }
 0x49f   :  { %3075 = vmatpush1.bf16.msra.mxu1 %v4634_v34  ;;  %v1383_v34 = vld [vmem:[#allocation14 + $0x438] sm:$0xff] }
 0x4a0   :  { %3076 = vmatprep.subr.bf16.mxu1 %v4643_v35  ;;  %v4746_v35 = vcombine.low %v1371_v47, %v1375_v8  ;;  %v4755_v36 = vcombine.high %v1379_v3, %v1383_v34  ;;  %v4810_v47 = vcombine.low %v1435_v61, %v1439_v23 }
 0x4a3   :  { %3077 = vmatpush1.bf16.msra.mxu1 %v4642_v38  ;;  %v1391_v38 = vld [vmem:[#allocation14 + $0x478] sm:$0xff] }
 0x4a4   :  { %3078 = vmatprep.subr.bf16.mxu1 %v4651_v39  ;;  %v4754_v39 = vcombine.low %v1379_v3, %v1383_v34  ;;  %v4763_v40 = vcombine.high %v1387_v37, %v1391_v38 }
 0x4a7   :  { %3079 = vmatpush1.bf16.msra.mxu1 %v4650_v42  ;;  %v1399_v42 = vld [vmem:[#allocation14 + $0x4b8] sm:$0xff] }
 0x4a8   :  { %3080 = vmatprep.subr.bf16.mxu1 %v4659_v43  ;;  %v4762_v43 = vcombine.low %v1387_v37, %v1391_v38  ;;  %v4771_v44 = vcombine.high %v1395_v41, %v1399_v42 }
 0x4ab   :  { %3081 = vmatpush1.bf16.msra.mxu1 %v4658_v49  ;;  %v1407_v49 = vld [vmem:[#allocation14 + $0x4f8] sm:$0xff] }
 0x4ac   :  { %3082 = vmatprep.subr.bf16.mxu1 %v4667_v52  ;;  %v4770_v52 = vcombine.low %v1395_v41, %v1399_v42  ;;  %v4779_v50 = vcombine.high %v1403_v46, %v1407_v49 }
 0x4af   :  { %3083 = vmatpush1.bf16.msra.mxu1 %v4666_v54  ;;  %v1415_v54 = vld [vmem:[#allocation14 + $0x538] sm:$0xff] }
 0x4b0   :  { %3084 = vmatprep.subr.bf16.mxu1 %v4675_v55  ;;  %v4778_v55 = vcombine.low %v1403_v46, %v1407_v49  ;;  %v4787_v59 = vcombine.high %v1411_v51, %v1415_v54 }
 0x4b3   :  { %3085 = vmatpush1.bf16.msra.mxu1 %v4674_v0  ;;  %v4786_v0 = vcombine.low %v1411_v51, %v1415_v54 }
 0x4b4   :  { %3086 = vmatprep.subr.bf16.mxu1 %v4683_v1 }
 0x4b7   :  { %3087 = vmatpush1.bf16.msra.mxu1 %v4682_v11 }
 0x4b8   :  { %3088 = vmatprep.subr.bf16.mxu1 %v4691_v17 }
 0x4bb   :  { %3089 = vmatpush1.bf16.msra.mxu1 %v4690_v20 }
 0x4bc   :  { %3090 = vmatprep.subr.bf16.mxu1 %v4699_v22 }
 0x4bf   :  { %3091 = vmatpush1.bf16.msra.mxu1 %v4698_v12 }
 0x4c0   :  { %3092 = vmatprep.subr.bf16.mxu1 %v4707_v14 }
 0x4c3   :  { %3093 = vmatpush1.bf16.msra.mxu1 %v4706_v15 }
 0x4c4   :  { %3094 = vmatprep.subr.bf16.mxu1 %v4715_v13 }
 0x4c7   :  { %3095 = vmatpush1.bf16.msra.mxu1 %v4714_v26 }
 0x4c8   :  { %3096 = vmatprep.subr.bf16.mxu1 %v4723_v48 }
 0x4cb   :  { %3097 = vmatpush1.bf16.msra.mxu1 %v4722_v29  ;;  %v1443_v29 = vld [vmem:[#allocation14 + $0x618] sm:$0xff] }
 0x4cc   :  { %3098 = vmatprep.subr.bf16.mxu1 %v4731_v30  ;;  %v1447_v30 = vld [vmem:[#allocation14 + $0x638] sm:$0xff] }
 0x4cd   :  { %v4818_v41 = vcombine.low %v1443_v29, %v1447_v30 }
 0x4cf   :  { %3099 = vmatpush1.bf16.msra.mxu1 %v4730_v33 }
 0x4d0   :  { %3100 = vmatprep.subr.bf16.mxu1 %v4739_v45 }
 0x4d3   :  { %3101 = vmatpush1.bf16.msra.mxu1 %v4738_v10 }
 0x4d4   :  { %3102 = vmatprep.subr.bf16.mxu1 %v4747_v5  ;;  %v4819_v5 = vcombine.high %v1443_v29, %v1447_v30 }
 0x4d7   :  { %3103 = vmatpush1.bf16.msra.mxu1 %v4746_v35  ;;  %v1451_v35 = vld [vmem:[#allocation14 + $0x658] sm:$0xff] }
 0x4d8   :  { %3113 = vmatprep.subr.bf16.mxu1 %v4755_v36  ;;  %v1455_v36 = vld [vmem:[#allocation14 + $0x678] sm:$0xff] }
 0x4da   :  { %3105 = vmatmul.mubr.bf16.vlgmr.msra.gmra.mrb[20].mxu1 %v6033_v56  ;;  %v1423_v56 = vld [vmem:[#allocation14 + $0x578] sm:$0xff] }
 0x4db   :  { %3114 = vmatpush1.bf16.msra.mxu1 %v4754_v39  ;;  %3145 = vmatprep.mubr.bf16.mxu1 %v6031_v53  ;;  %v6061_v53 = vld [vmem:[%s6290_s12] sm:$0xff]  ;;  %v4795_v1 = vcombine.high %v1419_v60, %v1423_v56  ;;  %v4794_v17 = vcombine.low %v1419_v60, %v1423_v56  ;;  %v4826_v60 = vcombine.low %v1451_v35, %v1455_v36 }
 0x4dc   :  { %3115 = vmatprep.subr.bf16.mxu1 %v4763_v40  ;;  %v1509_v11 = vrot.slane %v6061_v53, %v5921_v7  ;;  %v1513_v18 = vrot.slane %v6061_v53, %v5924_v9 }
 0x4df   :  { %3116 = vmatpush1.bf16.msra.mxu1 %v4762_v43 }
 0x4e0   :  { %3117 = vmatprep.subr.bf16.mxu1 %v4771_v44  ;;  %v4827_v44 = vcombine.high %v1451_v35, %v1455_v36 }
 0x4e3   :  { %3118 = vmatpush1.bf16.msra.mxu1 %v4770_v52  ;;  %v1459_v52 = vld [vmem:[#allocation14 + $0x698] sm:$0xff] }
 0x4e4   :  { %3119 = vmatprep.subr.bf16.mxu1 %v4779_v50  ;;  %v1463_v50 = vld [vmem:[#allocation14 + $0x6b8] sm:$0xff] }
 0x4e5   :  { %v4834_v61 = vcombine.low %v1459_v52, %v1463_v50 }
 0x4e7   :  { %3120 = vmatpush1.bf16.msra.mxu1 %v4778_v55 }
 0x4e8   :  { %3121 = vmatprep.subr.bf16.mxu1 %v4787_v59 }
 0x4eb   :  { %3122 = vmatpush1.bf16.msra.mxu1 %v4786_v0 }
 0x4ec   :  { %3123 = vmatprep.subr.bf16.mxu1 %v4795_v1  ;;  %v4835_v1 = vcombine.high %v1459_v52, %v1463_v50 }
 0x4ed   :  { %v2860_v20 = vpop.f32.mrb[12].mxu1  ;;  %v2901_v22 = vpop.f32.mrb[4].mxu0 }
 0x4ee   :  { %v2861_v12 = vadd.f32 %v2860_v20, %v1509_v11  ;;  %v2862_v14 = vpop.f32.mrb[13].mxu1  ;;  %v2903_v16 = vpop.f32.mrb[5].mxu0  ;;  %v1467_v11 = vld [vmem:[#allocation14 + $0x6d8] sm:$0xff] }
 0x4ef   :  { %v2863_v21 = vadd.f32 %v2862_v14, %v1513_v18  ;;  %3124 = vmatpush1.bf16.msra.mxu1 %v4794_v17  ;;  %v2864_v15 = vpop.f32.mrb[14].mxu1  ;;  %v2905_v13 = vpop.f32.mrb[6].mxu0  ;;  %v1471_v17 = vld [vmem:[#allocation14 + $0x6f8] sm:$0xff] }
 0x4f0   :  { %v6067_v25 = vadd.f32 %v2901_v22, %v2861_v12  ;;  %v2865_v26 = vpop.f32.mrb[15].mxu1  ;;  %v2906_v48 = vpop.f32.mrb[7].mxu0  ;;  %3125 = vmatprep.subr.bf16.mxu1 %v4803_v19  ;;  %v4843_v14 = vcombine.high %v1467_v11, %v1471_v17  ;;  %v1475_v15 = vld [vmem:[#allocation14 + $0x718] sm:$0xff] }
 0x4f1   :  { %v6069_v28 = vadd.f32 %v2903_v16, %v2863_v21  ;;  %v1479_v13 = vld [vmem:[#allocation14 + $0x738] sm:$0xff]  ;;  %v4842_v48 = vcombine.low %v1467_v11, %v1471_v17 }
 0x4f2   :  { %v3154_v31 = vrot.slane %v6067_v25, 4  ;;  %v3210_v32 = vmul.f32 %v6067_v25, %v6067_v25  ;;  %v4851_v29 = vcombine.high %v1475_v15, %v1479_v13 }
 0x4f3   :  { %v3160_v33 = vrot.slane %v6069_v28, 4  ;;  %v3211_v45 = vmul.f32 %v6069_v28, %v6069_v28  ;;  %3126 = vmatpush1.bf16.msra.mxu1 %v4802_v24 }
 0x4f4   :  { %v3155_v8 = vadd.f32 %v3154_v31, %v6067_v25  ;;  %v3218_v10 = vrot.slane %v3210_v32, 4  ;;  %3127 = vmatprep.subr.bf16.mxu1 %v4811_v27  ;;  %v1483_v31 = vld [vmem:[#allocation14 + $0x758] sm:$0xff] }
 0x4f5   :  { %v3161_v3 = vadd.f32 %v3160_v33, %v6069_v28  ;;  %v3224_v34 = vrot.slane %v3211_v45, 4  ;;  %v4850_v33 = vcombine.low %v1475_v15, %v1479_v13 }
 0x4f6   :  { %v3156_v37 = vrot.slane %v3155_v8, 2  ;;  %v3219_v38 = vadd.f32 %v3218_v10, %v3210_v32  ;;  %v1487_v32 = vld [vmem:[#allocation14 + $0x778] sm:$0xff] }
 0x4f7   :  { %v3162_v39 = vrot.slane %v3161_v3, 2  ;;  %v3225_v40 = vadd.f32 %v3224_v34, %v3211_v45  ;;  %3128 = vmatpush1.bf16.msra.mxu1 %v4810_v47  ;;  %v4859_v45 = vcombine.high %v1483_v31, %v1487_v32  ;;  %v1491_v47 = vld [vmem:[#allocation14 + $0x798] sm:$0xff]  ;;  %v4858_v10 = vcombine.low %v1483_v31, %v1487_v32 }
 0x4f8   :  { %v3157_v42 = vadd.f32 %v3156_v37, %v3155_v8  ;;  %v3220_v43 = vrot.slane %v3219_v38, 2  ;;  %3129 = vmatprep.subr.bf16.mxu1 %v4819_v5  ;;  %v1495_v8 = vld [vmem:[#allocation14 + $0x7b8] sm:$0xff] }
 0x4f9   :  { %v3163_v46 = vadd.f32 %v3162_v39, %v3161_v3  ;;  %v3226_v49 = vrot.slane %v3225_v40, 2  ;;  %v4867_v5 = vcombine.high %v1491_v47, %v1495_v8  ;;  %v1499_v3 = vld [vmem:[#allocation14 + $0x7d8] sm:$0xff]  ;;  %v4866_v35 = vcombine.low %v1491_v47, %v1495_v8 }
 0x4fa   :  { %v3158_v51 = vrot.slane %v3157_v42, 1  ;;  %v3221_v54 = vadd.f32 %v3220_v43, %v3219_v38  ;;  %v1503_v34 = vld [vmem:[#allocation14 + $0x7f8] sm:$0xff] }
 0x4fb   :  { %v3164_v55 = vrot.slane %v3163_v46, 1  ;;  %v3227_v59 = vadd.f32 %v3226_v49, %v3225_v40  ;;  %3130 = vmatpush1.bf16.msra.mxu1 %v4818_v41  ;;  %v4875_v37 = vcombine.high %v1499_v3, %v1503_v34  ;;  %v4874_v40 = vcombine.low %v1499_v3, %v1503_v34  ;;  %v5222_v31 = vld [vmem:[#allocation16 + $0x10] ss:$8 sps:$4 sm:$0xff]  }
 0x4fc   :  { %v3159_v56 = vadd.f32 %v3158_v51, %v3157_v42  ;;  %v3222_v0 = vrot.slane %v3221_v54, 1  ;;  %3131 = vmatprep.subr.bf16.mxu1 %v4827_v44  ;;  %v1517_v41 = vrot.slane %v6061_v53, %v5989_v62  ;;  %v1521_v42 = vrot.slane %v6061_v53, %v5992_v63 }
 0x4fd   :  { %v3165_v2 = vadd.f32 %v3164_v55, %v3163_v46  ;;  %v3228_v4 = vrot.slane %v3227_v59, 1 }
 0x4fe   :  { %v6079_v18 = vmul.f32 0.125, %v3159_v56  ;;  %v3223_v19 = vadd.f32 %v3222_v0, %v3221_v54 }
 0x4ff   :  { %v6081_v20 = vmul.f32 0.125, %v3165_v2  ;;  %v3229_v22 = vadd.f32 %v3228_v4, %v3227_v59  ;;  %3132 = vmatpush1.bf16.msra.mxu1 %v4826_v60 }
 0x500   :  { %v3266_v23 = vmul.f32 0.125, %v3223_v19  ;;  %v3274_v12 = vmul.f32 %v6079_v18, %v6079_v18  ;;  %3133 = vmatprep.subr.bf16.mxu1 %v4835_v1 }
 0x501   :  { %v3267_v16 = vmul.f32 0.125, %v3229_v22  ;;  %v3275_v21 = vmul.f32 %v6081_v20, %v6081_v20 }
 0x502   :  { %v3282_v24 = vsub.f32 %v3266_v23, %v3274_v12  ;;  %v5221_v23 = vld [vmem:[#allocation16 + $0x4] ss:$8 sps:$4 sm:$0xff]  }
 0x503   :  { %v3283_v26 = vsub.f32 %v3267_v16, %v3275_v21  ;;  %3134 = vmatpush1.bf16.msra.mxu1 %v4834_v61  ;;  %v5219_v16 = vld [vmem:[#allocation16] ss:$8 sps:$4 sm:$0xff]   ;;  %4344 = vmatprep.subr.bf16.mxu0 %v5221_v23  ;;  %v5245_v23 = vld [vmem:[#allocation16 + $0x84] ss:$8 sps:$4 sm:$0xff]  }
 0x504   :  { %v3291_v27 = vadd.f32 0.8, %v3282_v24  ;;  %3135 = vmatprep.subr.bf16.mxu1 %v4843_v14  ;;  %4345 = vmatpush1.bf16.msra.mxu0 %v5219_v16  ;;  %v5246_v16 = vld [vmem:[#allocation16 + $0x90] ss:$8 sps:$4 sm:$0xff]  }
 0x505   :  { %v3292_v30 = vadd.f32 0.8, %v3283_v26 }
 0x506   :  { %5423 = vrsqrt.f32 %v3291_v27  ;;  %v5224_v27 = vld [vmem:[#allocation16 + $0x14] ss:$8 sps:$4 sm:$0xff]  }
 0x507   :  { %5425 = vrsqrt.f32 %v3292_v30  ;;  %3136 = vmatpush1.bf16.msra.mxu1 %v4842_v48  ;;  %4346 = vmatprep.subr.bf16.mxu0 %v5224_v27  ;;  %v5261_v27 = vld [vmem:[#allocation16 + $0xe0] ss:$8 sps:$4 sm:$0xff]  }
 0x508   :  { %3137 = vmatprep.subr.bf16.mxu1 %v4851_v29  ;;  %4347 = vmatpush1.bf16.msra.mxu0 %v5222_v31  ;;  %v5269_v31 = vld [vmem:[#allocation16 + $0x104] ss:$8 sps:$4 sm:$0xff]  }
 0x50b   :  { %3138 = vmatpush1.bf16.msra.mxu1 %v4850_v33 }
 0x50c   :  { %3139 = vmatprep.subr.bf16.mxu1 %v4859_v45 }
 0x50f   :  { %3140 = vmatpush1.bf16.msra.mxu1 %v4858_v10 }
 0x510   :  { %v6087_v36 = vpop.eup %5423  ;;  %3141 = vmatprep.subr.bf16.mxu1 %v4867_v5  ;;  %v5227_v5 = vld [vmem:[#allocation16 + $0x24] ss:$8 sps:$4 sm:$0xff]  }
 0x511   :  { %v6089_v38 = vpop.eup %5425  ;;  %4348 = vmatprep.subr.bf16.mxu0 %v5227_v5 }
 0x512   :  { %v3315_v39 = vcombine.low %v6087_v36, %v6089_v38  ;;  %v5249_v36 = vld [vmem:[#allocation16 + $0xa0] ss:$8 sps:$4 sm:$0xff]   ;;  %v5254_v38 = vld [vmem:[#allocation16 + $0xb4] ss:$8 sps:$4 sm:$0xff]  }
 0x513   :  { %3142 = vmatpush1.bf16.msra.mxu1 %v4866_v35  ;;  %v5225_v35 = vld [vmem:[#allocation16 + $0x20] ss:$8 sps:$4 sm:$0xff]  }
 0x514   :  { %3143 = vmatprep.subr.bf16.mxu1 %v4875_v37  ;;  %4349 = vmatpush1.bf16.msra.mxu0 %v5225_v35 }
 0x517   :  { %3144 = vmatpush1.bf16.msra.mxu1 %v4874_v40 }
 0x51a   :  { %3146 = vmatmul.mubr.bf16.vlgmr.msra.gmra.mrb[20].mxu1 %v6035_v57 }
 0x56d   :  { %v2983_v43 = vpop.f32.mrb[16].mxu1 }
 0x56e   :  { %v6098_v44 = vadd.f32 %v2983_v43, %v1517_v41  ;;  %v6100_v46 = vpop.f32.mrb[8].mxu0  ;;  %v2985_v49 = vpop.f32.mrb[17].mxu1  ;;  %v5230_v43 = vld [vmem:[#allocation16 + $0x34] ss:$8 sps:$4 sm:$0xff]  }
 0x56f   :  { %v6102_v52 = vadd.f32 %v2985_v49, %v1521_v42  ;;  %v6104_v50 = vpop.f32.mrb[9].mxu0  ;;  %v2987_v51 = vpop.f32.mrb[18].mxu1  ;;  %4350 = vmatprep.subr.bf16.mxu0 %v5230_v43 }
 0x570   :  { %v3166_v54 = vrot.slane %v6098_v44, 4  ;;  %v3212_v57 = vmul.f32 %v6098_v44, %v6098_v44  ;;  %v3069_v55 = vpop.f32.mrb[10].mxu0  ;;  %v2988_v59 = vpop.f32.mrb[19].mxu1  ;;  %v5228_v51 = vld [vmem:[#allocation16 + $0x30] ss:$8 sps:$4 sm:$0xff]  }
 0x571   :  { %v3172_v60 = vrot.slane %v6102_v52, 4  ;;  %v3213_v56 = vmul.f32 %v6102_v52, %v6102_v52  ;;  %v3070_v0 = vpop.f32.mrb[11].mxu0  ;;  %4351 = vmatpush1.bf16.msra.mxu0 %v5228_v51  ;;  %v5231_v55 = vld [vmem:[#allocation16 + $0x40] ss:$8 sps:$4 sm:$0xff]   ;;  %v5236_v59 = vld [vmem:[#allocation16 + $0x54] ss:$8 sps:$4 sm:$0xff]  }
 0x572   :  { %v3167_v1 = vadd.f32 %v6098_v44, %v3166_v54  ;;  %v3230_v2 = vrot.slane %v3212_v57, 4 }
 0x573   :  { %v3173_v4 = vadd.f32 %v6102_v52, %v3172_v60  ;;  %v3236_v11 = vrot.slane %v3213_v56, 4  ;;  %v5234_v60 = vld [vmem:[#allocation16 + $0x50] ss:$8 sps:$4 sm:$0xff]  }
 0x574   :  { %v3168_v17 = vrot.slane %v3167_v1, 2  ;;  %v3231_v19 = vadd.f32 %v3230_v2, %v3212_v57  ;;  %v5233_v57 = vld [vmem:[#allocation16 + $0x44] ss:$8 sps:$4 sm:$0xff]  }
 0x575   :  { %v3174_v22 = vrot.slane %v3173_v4, 2  ;;  %v3237_v61 = vadd.f32 %v3236_v11, %v3213_v56  ;;  %4352 = vmatprep.subr.bf16.mxu0 %v5233_v57  ;;  %v5239_v56 = vld [vmem:[#allocation16 + $0x64] ss:$8 sps:$4 sm:$0xff]   ;;  %v5242_v11 = vld [vmem:[#allocation16 + $0x74] ss:$8 sps:$4 sm:$0xff]  }
 0x576   :  { %v3169_v12 = vadd.f32 %v3168_v17, %v3167_v1  ;;  %v3232_v14 = vrot.slane %v3231_v19, 2  ;;  %4353 = vmatpush1.bf16.msra.mxu0 %v5231_v55  ;;  %v5237_v1 = vld [vmem:[#allocation16 + $0x60] ss:$8 sps:$4 sm:$0xff]   ;;  %v5240_v17 = vld [vmem:[#allocation16 + $0x70] ss:$8 sps:$4 sm:$0xff]  }
 0x577   :  { %v3175_v21 = vadd.f32 %v3174_v22, %v3173_v4  ;;  %v3238_v15 = vrot.slane %v3237_v61, 2  ;;  %4354 = vmatprep.subr.bf16.mxu0 %v5236_v59 }
 0x578   :  { %v3170_v13 = vrot.slane %v3169_v12, 1  ;;  %v3233_v24 = vadd.f32 %v3232_v14, %v3231_v19  ;;  %v6126_v19 = vrot.slane %v3315_v39, %v5929_v58  ;;  %v5248_v14 = vld [vmem:[#allocation16 + $0x94] ss:$8 sps:$4 sm:$0xff]   ;;  %v5252_v39 = vld [vmem:[#allocation16 + $0xb0] ss:$8 sps:$4 sm:$0xff]  }
 0x579   :  { %v3176_v26 = vrot.slane %v3175_v21, 1  ;;  %v3239_v48 = vadd.f32 %v3238_v15, %v3237_v61  ;;  %v5257_v15 = vld [vmem:[#allocation16 + $0xc4] ss:$8 sps:$4 sm:$0xff]  }
 0x57a   :  { %v3171_v29 = vadd.f32 %v3170_v13, %v3169_v12  ;;  %v3234_v30 = vrot.slane %v3233_v24, 1  ;;  %4355 = vmatpush1.bf16.msra.mxu0 %v5234_v60  ;;  %v5243_v12 = vld [vmem:[#allocation16 + $0x80] ss:$8 sps:$4 sm:$0xff]  }
 0x57b   :  { %v3177_v32 = vadd.f32 %v3176_v26, %v3175_v21  ;;  %v3240_v33 = vrot.slane %v3239_v48, 1  ;;  %4356 = vmatprep.subr.bf16.mxu0 %v5239_v56  ;;  %v5251_v21 = vld [vmem:[#allocation16 + $0xa4] ss:$8 sps:$4 sm:$0xff]   ;;  %v5255_v13 = vld [vmem:[#allocation16 + $0xc0] ss:$8 sps:$4 sm:$0xff]   ;;  %v6158_v56 = vsub.s32 6, %v5918_v6 }
 0x57c   :  { %v6114_v45 = vmul.f32 0.125, %v3171_v29  ;;  %v3235_v47 = vadd.f32 %v3234_v30, %v3233_v24  ;;  %v5260_v24 = vld [vmem:[#allocation16 + $0xd4] ss:$8 sps:$4 sm:$0xff]   ;;  %v5258_v26 = vld [vmem:[#allocation16 + $0xd0] ss:$8 sps:$4 sm:$0xff]  }
 0x57d   :  { %v6116_v8 = vmul.f32 0.125, %v3177_v32  ;;  %v3241_v10 = vadd.f32 %v3240_v33, %v3239_v48  ;;  %v5263_v48 = vld [vmem:[#allocation16 + $0xe4] ss:$8 sps:$4 sm:$0xff]   ;;  %v5266_v29 = vld [vmem:[#allocation16 + $0xf4] ss:$8 sps:$4 sm:$0xff]   ;;  %v6134_v32 = vsub.s32 4, %v5918_v6 }
 0x57e   :  { %v3268_v3 = vmul.f32 0.125, %v3235_v47  ;;  %v3276_v34 = vmul.f32 %v6114_v45, %v6114_v45  ;;  %4357 = vmatpush1.bf16.msra.mxu0 %v5237_v1  ;;  %v5264_v30 = vld [vmem:[#allocation16 + $0xf0] ss:$8 sps:$4 sm:$0xff]   ;;  %v6137_v33 = vsub.s32 5, %v5918_v6 }
 0x57f   :  { %v3269_v37 = vmul.f32 0.125, %v3241_v10  ;;  %v3277_v40 = vmul.f32 %v6116_v8, %v6116_v8  ;;  %4358 = vmatprep.subr.bf16.mxu0 %v5242_v11  ;;  %v1525_v47 = vrot.slane %v6061_v53, %v6134_v32 }
 0x580   :  { %v3284_v41 = vsub.f32 %v3268_v3, %v3276_v34  ;;  %v1529_v10 = vrot.slane %v6061_v53, %v6137_v33 }
 0x581   :  { %v3285_v42 = vsub.f32 %v3269_v37, %v3277_v40  ;;  %v6144_v5 = vadd.f32 %v6100_v46, %v1525_v47 }
 0x582   :  { %v3293_v49 = vadd.f32 0.8, %v3284_v41  ;;  %4359 = vmatpush1.bf16.msra.mxu0 %v5240_v17  ;;  %v6147_v3 = vadd.f32 %v6104_v50, %v1529_v10  ;;  %v1533_v17 = vrot.slane %v6061_v53, %v6158_v56 }
 0x583   :  { %v3294_v54 = vadd.f32 0.8, %v3285_v42  ;;  %4360 = vmatprep.subr.bf16.mxu0 %v5245_v23  ;;  %v3178_v34 = vrot.slane %v6144_v5, 4  ;;  %v3214_v35 = vmul.f32 %v6144_v5, %v6144_v5 }
 0x584   :  { %5427 = vrsqrt.f32 %v3293_v49  ;;  %v3184_v37 = vrot.slane %v6147_v3, 4  ;;  %v3215_v40 = vmul.f32 %v6147_v3, %v6147_v3 }
 0x585   :  { %5429 = vrsqrt.f32 %v3294_v54  ;;  %v3179_v41 = vadd.f32 %v6144_v5, %v3178_v34  ;;  %v3242_v42 = vrot.slane %v3214_v35, 4 }
 0x586   :  { %4361 = vmatpush1.bf16.msra.mxu0 %v5243_v12  ;;  %v3185_v43 = vadd.f32 %v6147_v3, %v3184_v37  ;;  %v3248_v46 = vrot.slane %v3215_v40, 4 }
 0x587   :  { %4362 = vmatprep.subr.bf16.mxu0 %v5248_v14  ;;  %v3180_v49 = vrot.slane %v3179_v41, 2  ;;  %v3243_v51 = vadd.f32 %v3242_v42, %v3214_v35 }
 0x588   :  { %v3186_v50 = vrot.slane %v3185_v43, 2  ;;  %v3249_v54 = vadd.f32 %v3248_v46, %v3215_v40 }
 0x589   :  { %v3181_v57 = vadd.f32 %v3180_v49, %v3179_v41  ;;  %v3244_v55 = vrot.slane %v3243_v51, 2 }
 0x58a   :  { %4363 = vmatpush1.bf16.msra.mxu0 %v5246_v16  ;;  %v3187_v59 = vadd.f32 %v3186_v50, %v3185_v43  ;;  %v3250_v60 = vrot.slane %v3249_v54, 2 }
 0x58b   :  { %4364 = vmatprep.subr.bf16.mxu0 %v5251_v21  ;;  %v3182_v1 = vrot.slane %v3181_v57, 1 }
 0x58c   :  { %v3251_v11 = vadd.f32 %v3250_v60, %v3249_v54 }
 0x58d   :  { %v3183_v12 = vadd.f32 %v3182_v1, %v3181_v57 }
 0x58e   :  { %v5428_v0 = vpop.eup %5427  ;;  %4365 = vmatpush1.bf16.msra.mxu0 %v5249_v36  ;;  %v3252_v21 = vrot.slane %v3251_v11, 1 }
 0x58f   :  { %v5430_v2 = vpop.eup %5429  ;;  %4366 = vmatprep.subr.bf16.mxu0 %v5254_v38 }
 0x590   :  { %v3316_v4 = vcombine.low %v5428_v0, %v5430_v2  ;;  %v6161_v0 = vsub.s32 7, %v5918_v6  ;;  %v3245_v2 = vadd.f32 %v3244_v55, %v3243_v51 }
 0x592   :  { %v6129_v22 = vrot.slane %v3316_v4, %v5929_v58  ;;  %4367 = vmatpush1.bf16.msra.mxu0 %v5252_v39  ;;  %v3188_v4 = vrot.slane %v3187_v59, 1  ;;  %v1537_v23 = vrot.slane %v6061_v53, %v6161_v0  ;;  %v3246_v14 = vrot.slane %v3245_v2, 1 }
 0x593   :  { %4368 = vmatprep.subr.bf16.mxu0 %v5257_v15 }
 0x594   :  { %v3347_v61 = vcombine.low %v6126_v19, %v6129_v22  ;;  %v3189_v16 = vadd.f32 %v3188_v4, %v3187_v59 }
 0x596   :  { %4369 = vmatpush1.bf16.msra.mxu0 %v5255_v13  ;;  %v6171_v13 = vmul.f32 0.125, %v3183_v12 }
 0x597   :  { %4370 = vmatprep.subr.bf16.mxu0 %v5260_v24  ;;  %v3247_v24 = vadd.f32 %v3246_v14, %v3245_v2 }
 0x598   :  { %v3278_v40 = vmul.f32 %v6171_v13, %v6171_v13 }
 0x599   :  { %v3270_v37 = vmul.f32 0.125, %v3247_v24 }
 0x59a   :  { %4371 = vmatpush1.bf16.msra.mxu0 %v5258_v26 }
 0x59b   :  { %4372 = vmatprep.subr.bf16.mxu0 %v5263_v48  ;;  %v3286_v59 = vsub.f32 %v3270_v37, %v3278_v40 }
 0x59e   :  { %4373 = vmatpush1.bf16.msra.mxu0 %v5261_v27  ;;  %v6176_v27 = vmul.f32 0.125, %v3189_v16  ;;  %v3295_v16 = vadd.f32 0.8, %v3286_v59 }
 0x59f   :  { %4374 = vmatprep.subr.bf16.mxu0 %v5266_v29  ;;  %v3253_v29 = vadd.f32 %v3252_v21, %v3251_v11 }
 0x5a0   :  { %v3279_v46 = vmul.f32 %v6176_v27, %v6176_v27  ;;  %5431 = vrsqrt.f32 %v3295_v16 }
 0x5a1   :  { %v3271_v43 = vmul.f32 0.125, %v3253_v29 }
 0x5a2   :  { %4375 = vmatpush1.bf16.msra.mxu0 %v5264_v30 }
 0x5a3   :  { %4385 = vmatprep.subr.bf16.mxu0 %v5269_v31  ;;  %v3287_v2 = vsub.f32 %v3271_v43, %v3279_v46 }
 0x5ed   :  { %v3147_v36 = vpop.f32.mrb[20].mxu1 }
 0x5ee   :  { %v6167_v38 = vadd.f32 %v3147_v36, %v1533_v17  ;;  %v3149_v39 = vpop.f32.mrb[21].mxu1 }
 0x5ef   :  { %v6169_v6 = vadd.f32 %v3149_v39, %v1537_v23  ;;  %v3151_v15 = vpop.f32.mrb[22].mxu1  ;;  %v3296_v39 = vadd.f32 0.8, %v3287_v2 }
 0x5f0   :  { %v3190_v26 = vrot.slane %v6167_v38, 4  ;;  %v3216_v48 = vmul.f32 %v6167_v38, %v6167_v38  ;;  %v3152_v53 = vpop.f32.mrb[23].mxu1 }
 0x5f1   :  { %v3196_v30 = vrot.slane %v6169_v6, 4  ;;  %v3217_v31 = vmul.f32 %v6169_v6, %v6169_v6  ;;  %5433 = vrsqrt.f32 %v3296_v39 }
 0x5f2   :  { %v3191_v47 = vadd.f32 %v6167_v38, %v3190_v26  ;;  %v3254_v10 = vrot.slane %v3216_v48, 4 }
 0x5f3   :  { %v3197_v34 = vadd.f32 %v6169_v6, %v3196_v30  ;;  %v3260_v35 = vrot.slane %v3217_v31, 4 }
 0x5f4   :  { %v3192_v41 = vrot.slane %v3191_v47, 2  ;;  %v3255_v42 = vadd.f32 %v3254_v10, %v3216_v48 }
 0x5f5   :  { %v3198_v49 = vrot.slane %v3197_v34, 2  ;;  %v3261_v51 = vadd.f32 %v3260_v35, %v3217_v31 }
 0x5f6   :  { %v3193_v50 = vadd.f32 %v3192_v41, %v3191_v47  ;;  %v3256_v54 = vrot.slane %v3255_v42, 2 }
 0x5f7   :  { %v3199_v57 = vadd.f32 %v3198_v49, %v3197_v34  ;;  %v3262_v55 = vrot.slane %v3261_v51, 2  ;;  %v5432_v34 = vpop.eup %5431 }
 0x5f8   :  { %v3194_v60 = vrot.slane %v3193_v50, 1  ;;  %v3257_v1 = vadd.f32 %v3256_v54, %v3255_v42  ;;  %v3290_v54 = vld [vmem:[%s6291_s13] sm:$0xff] }
 0x5f9   :  { %v3200_v4 = vrot.slane %v3199_v57, 1  ;;  %v3263_v11 = vadd.f32 %v3262_v55, %v3261_v51  ;;  %v3355_v51 = vrot.slane %v3347_v61, %v5929_v58 }
 0x5fa   :  { %v3195_v17 = vadd.f32 %v3194_v60, %v3193_v50  ;;  %v3258_v23 = vrot.slane %v3257_v1, 1 }
 0x5fb   :  { %v3201_v12 = vadd.f32 %v3200_v4, %v3199_v57  ;;  %v3264_v14 = vrot.slane %v3263_v11, 1  ;;  %v5434_v35 = vpop.eup %5433 }
 0x5fc   :  { %v3208_v21 = vmul.f32 0.125, %v3195_v17  ;;  %v3259_v36 = vadd.f32 %v3258_v23, %v3257_v1  ;;  %v3317_v40 = vcombine.low %v5432_v34, %v5434_v35 }
 0x5fd   :  { %v3209_v15 = vmul.f32 0.125, %v3201_v12  ;;  %v3265_v24 = vadd.f32 %v3264_v14, %v3263_v11 }
 0x5fe   :  { %v3272_v26 = vmul.f32 0.125, %v3259_v36  ;;  %v3280_v48 = vmul.f32 %v3208_v21, %v3208_v21  ;;  %v3339_v43 = vrot.slane %v3317_v40, %v5929_v58 }
 0x5ff   :  { %v3273_v53 = vmul.f32 0.125, %v3265_v24  ;;  %v3281_v29 = vmul.f32 %v3209_v15, %v3209_v15 }
 0x600   :  { %v3288_v30 = vsub.f32 %v3272_v26, %v3280_v48 }
 0x601   :  { %v3289_v31 = vsub.f32 %v3273_v53, %v3281_v29 }
 0x602   :  { %v3297_v47 = vadd.f32 0.8, %v3288_v30 }
 0x603   :  { %v3298_v10 = vadd.f32 0.8, %v3289_v31 }
 0x604   :  { %5435 = vrsqrt.f32 %v3297_v47 }
 0x605   :  { %5437 = vrsqrt.f32 %v3298_v10 }
 0x60e   :  { %v5436_v37 = vpop.eup %5435 }
 0x60f   :  { %v5438_v41 = vpop.eup %5437 }
 0x610   :  { %v3318_v42 = vcombine.low %v5436_v37, %v5438_v41 }
 0x612   :  { %v3346_v46 = vrot.slane %v3318_v42, %v5929_v58 }
 0x614   :  { %v3348_v49 = vcombine.low %v3339_v43, %v3346_v46 }
 0x616   :  { %v3362_v50 = vrot.slane %v3348_v49, %v5929_v58 }
 0x618   :  { %v3363_v57 = vcombine.low %v3355_v51, %v3362_v50 }
 0x61a   :  { %v3365_v55 = vmul.f32 %v3363_v57, %v3290_v54 }
 0x61c   :  { %v3387_v59 = vrot.slane %v3365_v55, %v6134_v32  ;;  %v3391_v60 = vrot.slane %v3365_v55, %v6137_v33  ;;  %v3395_v1 = vrot.slane %v3365_v55, %v6158_v56  ;;  %v3399_v2 = vrot.slane %v3365_v55, %v6161_v0 }
 0x61d   :  { %v3371_v4 = vrot.slane %v3365_v55, %v5921_v7  ;;  %v3375_v19 = vrot.slane %v3365_v55, %v5924_v9  ;;  %v3379_v22 = vrot.slane %v3365_v55, %v5989_v62  ;;  %v3383_v61 = vrot.slane %v3365_v55, %v5992_v63  ;;  %v5267_v55 = vld [vmem:[#allocation16 + $0x100] ss:$8 sps:$4 sm:$0xff]  }
 0x61e   :  { %v3412_v11 = vmul.f32 %v3387_v59, %v6171_v13  ;;  %v3413_v17 = vmul.f32 %v3391_v60, %v6176_v27  ;;  %v3414_v23 = vmul.f32 %v3395_v1, %v3208_v21  ;;  %v3415_v12 = vmul.f32 %v3399_v2, %v3209_v15 }
 0x61f   :  { %v3482_v14 = vmul.f32 %v6169_v6, %v3399_v2  ;;  %v3408_v16 = vmul.f32 %v3371_v4, %v6079_v18  ;;  %v3409_v36 = vmul.f32 %v3375_v19, %v6081_v20  ;;  %v3410_v39 = vmul.f32 %v3379_v22, %v6114_v45 }
 0x620   :  { %v3426_v24 = vcombine.low %v3412_v11, %v3413_v17  ;;  %v3427_v26 = vcombine.low %v3414_v23, %v3415_v12  ;;  %v3411_v48 = vmul.f32 %v3383_v61, %v6116_v8  ;;  %v3476_v53 = vmul.f32 %v3375_v19, %v6069_v28  ;;  %v5275_v19 = vld [vmem:[#allocation16 + $0x124] ss:$8 sps:$4 sm:$0xff]   ;;  %v5276_v11 = vld [vmem:[#allocation16 + $0x130] ss:$8 sps:$4 sm:$0xff]   ;;  %v5279_v23 = vld [vmem:[#allocation16 + $0x140] ss:$8 sps:$4 sm:$0xff]  }
 0x621   :  { %v3424_v29 = vcombine.low %v3408_v16, %v3409_v36  ;;  %v3475_v13 = vmul.f32 %v3371_v4, %v6067_v25  ;;  %v3478_v27 = vmul.f32 %v6102_v52, %v3383_v61  ;;  %v3481_v45 = vmul.f32 %v6167_v38, %v3395_v1  ;;  %v3366_v25 = vld [vmem:[%s6292_s14] sm:$0xff]  ;;  %v5270_v4 = vld [vmem:[#allocation16 + $0x110] ss:$8 sps:$4 sm:$0xff]  }
 0x622   :  { %v3448_v21 = vrot.slane %v3426_v24, %v5929_v58  ;;  %v3455_v6 = vrot.slane %v3427_v26, %v5929_v58  ;;  %v3425_v18 = vcombine.low %v3410_v39, %v3411_v48  ;;  %v3477_v10 = vmul.f32 %v6098_v44, %v3379_v22  ;;  %v5272_v1 = vld [vmem:[#allocation16 + $0x114] ss:$8 sps:$4 sm:$0xff]   ;;  %v5273_v22 = vld [vmem:[#allocation16 + $0x120] ss:$8 sps:$4 sm:$0xff]   ;;  %v5281_v17 = vld [vmem:[#allocation16 + $0x144] ss:$8 sps:$4 sm:$0xff]  }
 0x623   :  { %v3434_v20 = vrot.slane %v3424_v29, %v5929_v58  ;;  %v3480_v34 = vmul.f32 %v6147_v3, %v3391_v60  ;;  %v3479_v38 = vmul.f32 %v6144_v5, %v3387_v59  ;;  %v5278_v61 = vld [vmem:[#allocation16 + $0x134] ss:$8 sps:$4 sm:$0xff]   ;;  %v5287_v16 = vld [vmem:[#allocation16 + $0x164] ss:$8 sps:$4 sm:$0xff]   ;;  %v5285_v36 = vld [vmem:[#allocation16 + $0x160] ss:$8 sps:$4 sm:$0xff]  }
 0x624   :  { %v3457_v15 = vcombine.low %v3448_v21, %v3455_v6  ;;  %v3441_v30 = vrot.slane %v3425_v18, %v5929_v58  ;;  %v5284_v12 = vld [vmem:[#allocation16 + $0x154] ss:$8 sps:$4 sm:$0xff]   ;;  %v5288_v24 = vld [vmem:[#allocation16 + $0x170] ss:$8 sps:$4 sm:$0xff]   ;;  %v5293_v26 = vld [vmem:[#allocation16 + $0x184] ss:$8 sps:$4 sm:$0xff]  }
 0x625   :  { %v5290_v39 = vld [vmem:[#allocation16 + $0x174] ss:$8 sps:$4 sm:$0xff]   ;;  %v5291_v48 = vld [vmem:[#allocation16 + $0x180] ss:$8 sps:$4 sm:$0xff]   ;;  %v5294_v29 = vld [vmem:[#allocation16 + $0x190] ss:$8 sps:$4 sm:$0xff]  }
 0x626   :  { %v3471_v8 = vrot.slane %v3457_v15, %v5929_v58  ;;  %v3456_v28 = vcombine.low %v3434_v20, %v3441_v30  ;;  %v5302_v21 = vld [vmem:[#allocation16 + $0x1b4] ss:$8 sps:$4 sm:$0xff]   ;;  %v5300_v6 = vld [vmem:[#allocation16 + $0x1b0] ss:$8 sps:$4 sm:$0xff]   ;;  %v5305_v18 = vld [vmem:[#allocation16 + $0x1c4] ss:$8 sps:$4 sm:$0xff]  }
 0x627   :  { %v5303_v20 = vld [vmem:[#allocation16 + $0x1c0] ss:$8 sps:$4 sm:$0xff]   ;;  %v5306_v15 = vld [vmem:[#allocation16 + $0x1d0] ss:$8 sps:$4 sm:$0xff]   ;;  %v5311_v30 = vld [vmem:[#allocation16 + $0x1e4] ss:$8 sps:$4 sm:$0xff]  }
 0x628   :  { %v3464_v31 = vrot.slane %v3456_v28, %v5929_v58  ;;  %v5314_v28 = vld [vmem:[#allocation16 + $0x1f4] ss:$8 sps:$4 sm:$0xff]  }
 0x62a   :  { %v3472_v52 = vcombine.low %v3464_v31, %v3471_v8  ;;  %v5309_v8 = vld [vmem:[#allocation16 + $0x1e0] ss:$8 sps:$4 sm:$0xff]  }
 0x62c   :  { %v3474_v47 = vsub.f32 %v3366_v25, %v3472_v52  ;;  %v5312_v52 = vld [vmem:[#allocation16 + $0x1f0] ss:$8 sps:$4 sm:$0xff]  }
 0x62e   :  { %v3491_v35 = vrot.slane %v3474_v47, %v5924_v9  ;;  %v3487_v37 = vrot.slane %v3474_v47, %v5921_v7  ;;  %v3499_v40 = vrot.slane %v3474_v47, %v5992_v63  ;;  %v3495_v58 = vrot.slane %v3474_v47, %v5989_v62 }
 0x62f   :  { %v3507_v41 = vrot.slane %v3474_v47, %v6137_v33  ;;  %v3503_v42 = vrot.slane %v3474_v47, %v6134_v32  ;;  %v3515_v43 = vrot.slane %v3474_v47, %v6161_v0  ;;  %v3511_v44 = vrot.slane %v3474_v47, %v6158_v56  ;;  %v5317_v47 = vld [vmem:[#allocation16 + $0x204] ss:$8 sps:$4 sm:$0xff]  }
 0x630   :  { %v3525_v46 = vadd.f32 %v3491_v35, %v3476_v53  ;;  %v3524_v3 = vadd.f32 %v3487_v37, %v3475_v13  ;;  %v3527_v49 = vadd.f32 %v3499_v40, %v3478_v27  ;;  %v6236_v5 = vadd.f32 %v3495_v58, %v3477_v10  ;;  %v5296_v53 = vld [vmem:[#allocation16 + $0x194] ss:$8 sps:$4 sm:$0xff]   ;;  %v5299_v13 = vld [vmem:[#allocation16 + $0x1a4] ss:$8 sps:$4 sm:$0xff]   ;;  %v5297_v27 = vld [vmem:[#allocation16 + $0x1a0] ss:$8 sps:$4 sm:$0xff]  }
 0x631   :  { %v6238_v51 = vadd.f32 %v3507_v41, %v3480_v34  ;;  %v6240_v50 = vadd.f32 %v3503_v42, %v3479_v38  ;;  %v6242_v63 = vadd.f32 %v3515_v43, %v3482_v14  ;;  %v6244_v62 = vadd.f32 %v3511_v44, %v3481_v45  ;;  %v5282_v14 = vld [vmem:[#allocation16 + $0x150] ss:$8 sps:$4 sm:$0xff]   ;;  %v5308_v45 = vld [vmem:[#allocation16 + $0x1d4] ss:$8 sps:$4 sm:$0xff]   ;;  %v5315_v38 = vld [vmem:[#allocation16 + $0x200] ss:$8 sps:$4 sm:$0xff]  }
 0x632   :  { %vm3533_vm8 = vcmp.ge.f32.partialorder %v3525_v46, 0.0  ;;  %v3541_v33 = vmul.f32 0.2, %v3525_v46  ;;  %vm3532_vm9 = vcmp.ge.f32.partialorder %v3524_v3, 0.0  ;;  %v3540_v32 = vmul.f32 0.2, %v3524_v3 }
 0x633   :  { %vm3535_vm10 = vcmp.ge.f32.partialorder %v3527_v49, 0.0  ;;  %v3543_v0 = vmul.f32 0.2, %v3527_v49  ;;  %v3542_v31 = vmul.f32 0.2, %v6236_v5  ;;  %vm3534_vm11 = vcmp.ge.f32.partialorder %v6236_v5, 0.0 }
 0x634   :  { %v3549_v56 = vsel %vm3533_vm8, %v3525_v46, %v3541_v33  ;;  %v3548_v54 = vsel %vm3532_vm9, %v3524_v3, %v3540_v32  ;;  %v3545_v25 = vmul.f32 0.2, %v6238_v51  ;;  %vm3537_vm12 = vcmp.ge.f32.partialorder %v6238_v51, 0.0  ;;  %v5320_v37 = vld [vmem:[#allocation16 + $0x214] ss:$8 sps:$4 sm:$0xff]  }
 0x635   :  { %v3557_v57 = vpack.c.bf16 %v3549_v56, %v3549_v56  ;;  %v3556_v59 = vpack.c.bf16 %v3548_v54, %v3548_v54  ;;  %v3551_v60 = vsel %vm3535_vm10, %v3527_v49, %v3543_v0  ;;  %v3550_v10 = vsel %vm3534_vm11, %v6236_v5, %v3542_v31  ;;  %v5318_v58 = vld [vmem:[#allocation16 + $0x210] ss:$8 sps:$4 sm:$0xff]   ;;  %v5323_v41 = vld [vmem:[#allocation16 + $0x224] ss:$8 sps:$4 sm:$0xff]   ;;  %v5321_v42 = vld [vmem:[#allocation16 + $0x220] ss:$8 sps:$4 sm:$0xff]  }
 0x636   :  { %v3559_v2 = vpack.c.bf16 %v3551_v60, %v3551_v60  ;;  %v3553_v34 = vsel %vm3537_vm12, %v6238_v51, %v3545_v25  ;;  %v3558_v35 = vpack.c.bf16 %v3550_v10, %v3550_v10  ;;  %v5326_v43 = vld [vmem:[#allocation16 + $0x234] ss:$8 sps:$4 sm:$0xff]   ;;  %v5324_v44 = vld [vmem:[#allocation16 + $0x230] ss:$8 sps:$4 sm:$0xff]   ;;  %v5329_v46 = vld [vmem:[#allocation16 + $0x244] ss:$8 sps:$4 sm:$0xff]  }
 0x637   :  { %4376 = vmatprep.mubr.bf16.mxu0 %v3557_v57  ;;  %v3561_v40 = vpack.c.bf16 %v3553_v34, %v3553_v34  ;;  %v5327_v3 = vld [vmem:[#allocation16 + $0x240] ss:$8 sps:$4 sm:$0xff]   ;;  %v5332_v49 = vld [vmem:[#allocation16 + $0x254] ss:$8 sps:$4 sm:$0xff]   ;;  %v5330_v5 = vld [vmem:[#allocation16 + $0x250] ss:$8 sps:$4 sm:$0xff]  }
 0x638   :  { %4377 = vmatmul.mubr.bf16.vlgmr.msra.gmra.mrb[12].mxu0 %v3556_v59  ;;  %v5335_v51 = vld [vmem:[#allocation16 + $0x264] ss:$8 sps:$4 sm:$0xff]   ;;  %v5333_v33 = vld [vmem:[#allocation16 + $0x260] ss:$8 sps:$4 sm:$0xff]   ;;  %v5338_v32 = vld [vmem:[#allocation16 + $0x274] ss:$8 sps:$4 sm:$0xff]  }
 0x639   :  { %4386 = vmatpush1.bf16.msra.mxu0 %v5267_v55  ;;  %4417 = vmatprep.mubr.bf16.mxu0 %v3559_v2  ;;  %v5336_v0 = vld [vmem:[#allocation16 + $0x270] ss:$8 sps:$4 sm:$0xff]   ;;  %v5341_v56 = vld [vmem:[#allocation16 + $0x284] ss:$8 sps:$4 sm:$0xff]   ;;  %v5339_v54 = vld [vmem:[#allocation16 + $0x280] ss:$8 sps:$4 sm:$0xff]  }
 0x63a   :  { %4387 = vmatprep.subr.bf16.mxu0 %v5272_v1  ;;  %v5344_v57 = vld [vmem:[#allocation16 + $0x294] ss:$8 sps:$4 sm:$0xff]   ;;  %v5342_v55 = vld [vmem:[#allocation16 + $0x290] ss:$8 sps:$4 sm:$0xff]   ;;  %v5347_v59 = vld [vmem:[#allocation16 + $0x2a4] ss:$8 sps:$4 sm:$0xff]  }
 0x63b   :  { %v5345_v60 = vld [vmem:[#allocation16 + $0x2a0] ss:$8 sps:$4 sm:$0xff]   ;;  %v5350_v1 = vld [vmem:[#allocation16 + $0x2b4] ss:$8 sps:$4 sm:$0xff]   ;;  %v5348_v2 = vld [vmem:[#allocation16 + $0x2b0] ss:$8 sps:$4 sm:$0xff]  }
 0x63c   :  { %vm3536_vm13 = vcmp.ge.f32.partialorder %v6240_v50, 0.0  ;;  %vm3539_vm14 = vcmp.ge.f32.partialorder %v6242_v63, 0.0  ;;  %v5389_v31 = vld [vmem:[#allocation16 + $0x384] ss:$8 sps:$4 sm:$0xff]   ;;  %v5387_v25 = vld [vmem:[#allocation16 + $0x380] ss:$8 sps:$4 sm:$0xff]  }
 0x63d   :  { %4388 = vmatpush1.bf16.msra.mxu0 %v5270_v4  ;;  %v5353_v4 = vld [vmem:[#allocation16 + $0x2c4] ss:$8 sps:$4 sm:$0xff]   ;;  %v5393_v34 = vld [vmem:[#allocation16 + $0x3a0] ss:$8 sps:$4 sm:$0xff]   ;;  %vm3538_vm15 = vcmp.ge.f32.partialorder %v6244_v62, 0.0 }
 0x63e   :  { %4389 = vmatprep.subr.bf16.mxu0 %v5275_v19  ;;  %v5351_v19 = vld [vmem:[#allocation16 + $0x2c0] ss:$8 sps:$4 sm:$0xff]   ;;  %v5395_v10 = vld [vmem:[#allocation16 + $0x3a4] ss:$8 sps:$4 sm:$0xff]  }
 0x641   :  { %4390 = vmatpush1.bf16.msra.mxu0 %v5273_v22  ;;  %v5356_v22 = vld [vmem:[#allocation16 + $0x2d4] ss:$8 sps:$4 sm:$0xff]  }
 0x642   :  { %4391 = vmatprep.subr.bf16.mxu0 %v5278_v61  ;;  %v5354_v61 = vld [vmem:[#allocation16 + $0x2d0] ss:$8 sps:$4 sm:$0xff]  }
 0x645   :  { %4392 = vmatpush1.bf16.msra.mxu0 %v5276_v11  ;;  %v5359_v11 = vld [vmem:[#allocation16 + $0x2e4] ss:$8 sps:$4 sm:$0xff]  }
 0x646   :  { %4393 = vmatprep.subr.bf16.mxu0 %v5281_v17  ;;  %v5357_v17 = vld [vmem:[#allocation16 + $0x2e0] ss:$8 sps:$4 sm:$0xff]  }
 0x649   :  { %4394 = vmatpush1.bf16.msra.mxu0 %v5279_v23  ;;  %v5362_v23 = vld [vmem:[#allocation16 + $0x2f4] ss:$8 sps:$4 sm:$0xff]  }
 0x64a   :  { %4395 = vmatprep.subr.bf16.mxu0 %v5284_v12  ;;  %v3544_v12 = vmul.f32 0.2, %v6240_v50 }
 0x64d   :  { %4396 = vmatpush1.bf16.msra.mxu0 %v5282_v14  ;;  %v3547_v14 = vmul.f32 0.2, %v6242_v63 }
 0x64e   :  { %4397 = vmatprep.subr.bf16.mxu0 %v5287_v16  ;;  %v5360_v16 = vld [vmem:[#allocation16 + $0x2f0] ss:$8 sps:$4 sm:$0xff]  }
 0x651   :  { %4398 = vmatpush1.bf16.msra.mxu0 %v5285_v36  ;;  %v5365_v36 = vld [vmem:[#allocation16 + $0x304] ss:$8 sps:$4 sm:$0xff]  }
 0x652   :  { %4399 = vmatprep.subr.bf16.mxu0 %v5290_v39  ;;  %v3552_v39 = vsel %vm3536_vm13, %v6240_v50, %v3544_v12  ;;  %v5372_v50 = vld [vmem:[#allocation16 + $0x330] ss:$8 sps:$4 sm:$0xff]  }
 0x655   :  { %4400 = vmatpush1.bf16.msra.mxu0 %v5288_v24  ;;  %v3555_v24 = vsel %vm3539_vm14, %v6242_v63, %v3547_v14  ;;  %v5377_v63 = vld [vmem:[#allocation16 + $0x344] ss:$8 sps:$4 sm:$0xff]  }
 0x656   :  { %4401 = vmatprep.subr.bf16.mxu0 %v5293_v26  ;;  %v5363_v26 = vld [vmem:[#allocation16 + $0x300] ss:$8 sps:$4 sm:$0xff]  }
 0x659   :  { %4402 = vmatpush1.bf16.msra.mxu0 %v5291_v48  ;;  %v3560_v48 = vpack.c.bf16 %v3552_v39, %v3552_v39 }
 0x65a   :  { %4403 = vmatprep.subr.bf16.mxu0 %v5296_v53  ;;  %v5368_v53 = vld [vmem:[#allocation16 + $0x314] ss:$8 sps:$4 sm:$0xff]  }
 0x65d   :  { %4404 = vmatpush1.bf16.msra.mxu0 %v5294_v29  ;;  %v3563_v29 = vpack.c.bf16 %v3555_v24, %v3555_v24 }
 0x65e   :  { %4405 = vmatprep.subr.bf16.mxu0 %v5299_v13  ;;  %v5366_v13 = vld [vmem:[#allocation16 + $0x310] ss:$8 sps:$4 sm:$0xff]  }
 0x661   :  { %4406 = vmatpush1.bf16.msra.mxu0 %v5297_v27  ;;  %v5371_v27 = vld [vmem:[#allocation16 + $0x324] ss:$8 sps:$4 sm:$0xff]  }
 0x662   :  { %4407 = vmatprep.subr.bf16.mxu0 %v5302_v21  ;;  %v5369_v21 = vld [vmem:[#allocation16 + $0x320] ss:$8 sps:$4 sm:$0xff]  }
 0x665   :  { %4408 = vmatpush1.bf16.msra.mxu0 %v5300_v6  ;;  %v5374_v6 = vld [vmem:[#allocation16 + $0x334] ss:$8 sps:$4 sm:$0xff]  }
 0x666   :  { %4409 = vmatprep.subr.bf16.mxu0 %v5305_v18  ;;  %v5375_v18 = vld [vmem:[#allocation16 + $0x340] ss:$8 sps:$4 sm:$0xff]  }
 0x669   :  { %4410 = vmatpush1.bf16.msra.mxu0 %v5303_v20  ;;  %v5380_v20 = vld [vmem:[#allocation16 + $0x354] ss:$8 sps:$4 sm:$0xff]  }
 0x66a   :  { %4411 = vmatprep.subr.bf16.mxu0 %v5308_v45  ;;  %v5378_v45 = vld [vmem:[#allocation16 + $0x350] ss:$8 sps:$4 sm:$0xff]  }
 0x66d   :  { %4412 = vmatpush1.bf16.msra.mxu0 %v5306_v15  ;;  %v5383_v15 = vld [vmem:[#allocation16 + $0x364] ss:$8 sps:$4 sm:$0xff]  }
 0x66e   :  { %4413 = vmatprep.subr.bf16.mxu0 %v5311_v30  ;;  %v5381_v30 = vld [vmem:[#allocation16 + $0x360] ss:$8 sps:$4 sm:$0xff]  }
 0x671   :  { %4414 = vmatpush1.bf16.msra.mxu0 %v5309_v8  ;;  %v5386_v8 = vld [vmem:[#allocation16 + $0x374] ss:$8 sps:$4 sm:$0xff]  }
 0x672   :  { %4415 = vmatprep.subr.bf16.mxu0 %v5314_v28  ;;  %v5384_v28 = vld [vmem:[#allocation16 + $0x370] ss:$8 sps:$4 sm:$0xff]  }
 0x675   :  { %4416 = vmatpush1.bf16.msra.mxu0 %v5312_v52  ;;  %v5392_v52 = vld [vmem:[#allocation16 + $0x394] ss:$8 sps:$4 sm:$0xff]  }
 0x676   :  { %4426 = vmatprep.subr.bf16.mxu0 %v5317_v47  ;;  %v5390_v47 = vld [vmem:[#allocation16 + $0x390] ss:$8 sps:$4 sm:$0xff]  }
 0x678   :  { %4418 = vmatmul.mubr.bf16.vlgmr.msra.gmra.mrb[12].mxu0 %v3558_v35  ;;  %v5396_v35 = vld [vmem:[#allocation16 + $0x3b0] ss:$8 sps:$4 sm:$0xff]  }
 0x679   :  { %4427 = vmatpush1.bf16.msra.mxu0 %v5315_v38  ;;  %4458 = vmatprep.mubr.bf16.mxu0 %v3561_v40  ;;  %v5398_v38 = vld [vmem:[#allocation16 + $0x3b4] ss:$8 sps:$4 sm:$0xff]   ;;  %v5399_v40 = vld [vmem:[#allocation16 + $0x3c0] ss:$8 sps:$4 sm:$0xff]  }
 0x67a   :  { %4428 = vmatprep.subr.bf16.mxu0 %v5320_v37  ;;  %v5401_v37 = vld [vmem:[#allocation16 + $0x3c4] ss:$8 sps:$4 sm:$0xff]  }
 0x67d   :  { %4429 = vmatpush1.bf16.msra.mxu0 %v5318_v58  ;;  %v5404_v58 = vld [vmem:[#allocation16 + $0x3d4] ss:$8 sps:$4 sm:$0xff]  }
 0x67e   :  { %4430 = vmatprep.subr.bf16.mxu0 %v5323_v41  ;;  %v5402_v41 = vld [vmem:[#allocation16 + $0x3d0] ss:$8 sps:$4 sm:$0xff]  }
 0x681   :  { %4431 = vmatpush1.bf16.msra.mxu0 %v5321_v42  ;;  %v5407_v42 = vld [vmem:[#allocation16 + $0x3e4] ss:$8 sps:$4 sm:$0xff]  }
 0x682   :  { %4432 = vmatprep.subr.bf16.mxu0 %v5326_v43  ;;  %v5405_v43 = vld [vmem:[#allocation16 + $0x3e0] ss:$8 sps:$4 sm:$0xff]  }
 0x685   :  { %4433 = vmatpush1.bf16.msra.mxu0 %v5324_v44  ;;  %v5410_v44 = vld [vmem:[#allocation16 + $0x3f4] ss:$8 sps:$4 sm:$0xff]  }
 0x686   :  { %4434 = vmatprep.subr.bf16.mxu0 %v5329_v46  ;;  %v3546_v46 = vmul.f32 0.2, %v6244_v62 }
 0x689   :  { %4435 = vmatpush1.bf16.msra.mxu0 %v5327_v3  ;;  %v5408_v3 = vld [vmem:[#allocation16 + $0x3f0] ss:$8 sps:$4 sm:$0xff]  }
 0x68a   :  { %4436 = vmatprep.subr.bf16.mxu0 %v5332_v49  ;;  %v3554_v49 = vsel %vm3538_vm15, %v6244_v62, %v3546_v46 }
 0x68d   :  { %4437 = vmatpush1.bf16.msra.mxu0 %v5330_v5  ;;  %v3562_v5 = vpack.c.bf16 %v3554_v49, %v3554_v49 }
 0x68e   :  { %4438 = vmatprep.subr.bf16.mxu0 %v5335_v51  ;;  %v3692_v51 = vld [vmem:[%s6305_s28] sm:$0x3] }
 0x691   :  { %4439 = vmatpush1.bf16.msra.mxu0 %v5333_v33  ;;  %v3697_v33 = vrot.slane %v3692_v51, %v5921_v7 }
 0x692   :  { %4440 = vmatprep.subr.bf16.mxu0 %v5338_v32  ;;  %v3701_v32 = vrot.slane %v3692_v51, %v5924_v9 }
 0x695   :  { %4441 = vmatpush1.bf16.msra.mxu0 %v5336_v0 }
 0x696   :  { %4442 = vmatprep.subr.bf16.mxu0 %v5341_v56 }
 0x699   :  { %4443 = vmatpush1.bf16.msra.mxu0 %v5339_v54 }
 0x69a   :  { %4444 = vmatprep.subr.bf16.mxu0 %v5344_v57 }
 0x69d   :  { %4445 = vmatpush1.bf16.msra.mxu0 %v5342_v55 }
 0x69e   :  { %4446 = vmatprep.subr.bf16.mxu0 %v5347_v59 }
 0x6a1   :  { %4447 = vmatpush1.bf16.msra.mxu0 %v5345_v60 }
 0x6a2   :  { %4448 = vmatprep.subr.bf16.mxu0 %v5350_v1 }
 0x6a5   :  { %4449 = vmatpush1.bf16.msra.mxu0 %v5348_v2 }
 0x6a6   :  { %4450 = vmatprep.subr.bf16.mxu0 %v5353_v4 }
 0x6a9   :  { %4451 = vmatpush1.bf16.msra.mxu0 %v5351_v19 }
 0x6aa   :  { %4452 = vmatprep.subr.bf16.mxu0 %v5356_v22 }
 0x6ad   :  { %4453 = vmatpush1.bf16.msra.mxu0 %v5354_v61 }
 0x6ae   :  { %4454 = vmatprep.subr.bf16.mxu0 %v5359_v11 }
 0x6b1   :  { %4455 = vmatpush1.bf16.msra.mxu0 %v5357_v17 }
 0x6b2   :  { %4456 = vmatprep.subr.bf16.mxu0 %v5362_v23 }
 0x6b5   :  { %4457 = vmatpush1.bf16.msra.mxu0 %v5360_v16 }
 0x6b6   :  { %4467 = vmatprep.subr.bf16.mxu0 %v5365_v36 }
 0x6b8   :  { %4459 = vmatmul.mubr.bf16.vlgmr.msra.gmra.mrb[12].mxu0 %v3560_v48 }
 0x6b9   :  { %4468 = vmatpush1.bf16.msra.mxu0 %v5363_v26  ;;  %4499 = vmatprep.mubr.bf16.mxu0 %v3563_v29 }
 0x6ba   :  { %4469 = vmatprep.subr.bf16.mxu0 %v5368_v53 }
 0x6bd   :  { %4470 = vmatpush1.bf16.msra.mxu0 %v5366_v13 }
 0x6be   :  { %4471 = vmatprep.subr.bf16.mxu0 %v5371_v27 }
 0x6c1   :  { %4472 = vmatpush1.bf16.msra.mxu0 %v5369_v21 }
 0x6c2   :  { %4473 = vmatprep.subr.bf16.mxu0 %v5374_v6 }
 0x6c5   :  { %4474 = vmatpush1.bf16.msra.mxu0 %v5372_v50 }
 0x6c6   :  { %4475 = vmatprep.subr.bf16.mxu0 %v5377_v63 }
 0x6c9   :  { %4476 = vmatpush1.bf16.msra.mxu0 %v5375_v18 }
 0x6ca   :  { %4477 = vmatprep.subr.bf16.mxu0 %v5380_v20 }
 0x6cd   :  { %4478 = vmatpush1.bf16.msra.mxu0 %v5378_v45 }
 0x6ce   :  { %4479 = vmatprep.subr.bf16.mxu0 %v5383_v15 }
 0x6d1   :  { %4480 = vmatpush1.bf16.msra.mxu0 %v5381_v30 }
 0x6d2   :  { %4481 = vmatprep.subr.bf16.mxu0 %v5386_v8 }
 0x6d5   :  { %4482 = vmatpush1.bf16.msra.mxu0 %v5384_v28 }
 0x6d6   :  { %4483 = vmatprep.subr.bf16.mxu0 %v5389_v31 }
 0x6d9   :  { %4484 = vmatpush1.bf16.msra.mxu0 %v5387_v25 }
 0x6da   :  { %4485 = vmatprep.subr.bf16.mxu0 %v5392_v52 }
 0x6dd   :  { %4486 = vmatpush1.bf16.msra.mxu0 %v5390_v47 }
 0x6de   :  { %4487 = vmatprep.subr.bf16.mxu0 %v5395_v10 }
 0x6e1   :  { %4488 = vmatpush1.bf16.msra.mxu0 %v5393_v34 }
 0x6e2   :  { %4489 = vmatprep.subr.bf16.mxu0 %v5398_v38 }
 0x6e5   :  { %4490 = vmatpush1.bf16.msra.mxu0 %v5396_v35 }
 0x6e6   :  { %4491 = vmatprep.subr.bf16.mxu0 %v5401_v37 }
 0x6e9   :  { %4492 = vmatpush1.bf16.msra.mxu0 %v5399_v40 }
 0x6ea   :  { %4493 = vmatprep.subr.bf16.mxu0 %v5404_v58 }
 0x6ed   :  { %4494 = vmatpush1.bf16.msra.mxu0 %v5402_v41 }
 0x6ee   :  { %4495 = vmatprep.subr.bf16.mxu0 %v5407_v42 }
 0x6f1   :  { %4496 = vmatpush1.bf16.msra.mxu0 %v5405_v43 }
 0x6f2   :  { %4497 = vmatprep.subr.bf16.mxu0 %v5410_v44 }
 0x6f5   :  { %4498 = vmatpush1.bf16.msra.mxu0 %v5408_v3 }
 0x6f8   :  { %4500 = vmatmul.mubr.bf16.vlgmr.msra.gmra.mrb[12].mxu0 %v3562_v5 }
 0x7cb   :  { %v4501_v0 = vpop.f32.mrb[12].mxu0 }
 0x7cc   :  { %v5043_v56 = vadd.f32 %v4501_v0, %v3697_v33  ;;  %v4503_v54 = vpop.f32.mrb[13].mxu0 }
 0x7cd   :  { %v5044_v57 = vadd.f32 %v4503_v54, %v3701_v32  ;;  %v4505_v55 = vpop.f32.mrb[14].mxu0 }
 0x7ce   :  { %5439 = vtanh.f32 %v5043_v56  ;;  %v4506_v59 = vpop.f32.mrb[15].mxu0 }
 0x7cf   :  { %5441 = vtanh.f32 %v5044_v57 }
 0x7d8   :  { %v5440_v62 = vpop.eup %5439 }
 0x7d9   :  { %v5442_v60 = vpop.eup %5441  ;;  %4510 = vst [vmem:[#allocation17] sm:$0xff] %v5440_v62 }
 0x7da   :  { %4511 = vst [vmem:[#allocation17 + $0x8] sm:$0xff] %v5442_v60 }
 0x7db   :  { %5652 = shalt.err (!%p5649_p6)
}
 0x7dc   :  { %s6306_s16 = sld [smem:[#allocation27_spill]] }
 0x7e2   :  { %s5653_s3 = scalar_lea.hbm %s6306_s16, 256 }
 0x7e3   :  { %p5654_p7 = scmp.ne.s32.totalorder %s6306_s16, %s5653_s3  ;;  %p5657_p8 = scmp.lt.u32.totalorder %s5653_s3, %s6306_s16 }
 0x7e5   :  { %p5659_p9 = pnand %p5657_p8, %p5654_p7 }
 0x7e7   :  { %5662 = shalt.err (!%p5659_p9)
}
 0x7e8   :  { %4521 = dma.vmem_to_hbm [thread:$0]  %s4519_s22, 256, %s6306_s16, [#allocation4]  }
 0x7e9   :  { %5673 = dma.done.wait [#allocation4], 256  }
 0x7ea   :  { %5674 = vsyncadd [#allocation4], 4294967040 }
 0x7eb   :  { %4525 = vsyncpa [#allocation3], 1 }
 0x7ec   :  { %4526 = vsyncpa [#allocation6], 1 }
 0x7ed   :  { %4527 = vsyncpa [#allocation9], 1 }
 0x7ee   :  { %4528 = vsyncpa [#allocation12], 1 }
 0x7ef   :  { %4529 = vsyncpa [#allocation15], 1 }
 0x7f0   :  { %4530 = vsyncpa [#allocation4], 1 }

</bundles_post_ra>
